<compile_context>
chip_gen: v6e
topology: v6e:2x2x1
jax: 0.10.0
libtpu: 0.0.40
codegen_flags: <defaults>
</compile_context>

<pallas_src>
import functools

import jax
import jax.numpy as jnp
from jax.experimental import pallas as pl
from jax.experimental.pallas import tpu as pltpu


def _round_up(x: int, m: int) -> int:
    return ((x + m - 1) // m) * m


def selectivenet_kernel(
    x_ref,      # [B_pad, tk]      bf16  zero-padded input tile
    w_ref,      # [tk, N_total]    bf16  fused [fc1 | classifier | aux] weight tile
    b_ref,      # [1, N_total]     f32   fused bias row
    g_ref,      # [1, D_pad]       f32   BN gamma (pad = 1)
    bt_ref,     # [1, D_pad]       f32   BN beta  (pad = 0)
    ws2_ref,    # [1, D_pad]       f32   selector fc2 weight row (pad = 0)
    bs2_ref,    # [1]              f32   selector fc2 bias (SMEM scalar)
    pred_ref,   # [B_pad, C_pad]   f32   classifier out (lane-dense)
    sel_ref,    # [B_pad, 128]     f32   selection score broadcast over lanes
    aux_ref,    # [B_pad, C_pad]   f32   aux classifier out (lane-dense)
    acc_ref,    # [B_pad, N_total] f32   VMEM accumulator scratch
    *, num_valid_rows,
):
    k = pl.program_id(0)
    nk = pl.num_programs(0)

    # One fused MXU pass over this K tile (fc1 | classifier | aux share x).
    prod = jnp.dot(x_ref[...], w_ref[...], preferred_element_type=jnp.float32)

    @pl.when(k == 0)
    def _():
        acc_ref[...] = prod            # first tile: plain store, no zero-init RMW

    @pl.when(k != 0)
    def _():
        acc_ref[...] += prod

    @pl.when(k == nk - 1)
    def _():
        d_pad = g_ref.shape[1]
        c_pad = pred_ref.shape[1]
        acc = acc_ref[...] + b_ref[...]

        # Heads are 128-lane-aligned slices of the fused accumulator.
        h = jnp.maximum(acc[:, :d_pad], 0.0)                   # selector fc1 + ReLU
        pred = acc[:, d_pad:d_pad + c_pad]                     # classifier
        aux = acc[:, d_pad + c_pad:d_pad + 2 * c_pad]          # aux classifier

        # Training-mode BatchNorm1d over the REAL batch rows only (padded rows
        # must not pollute batch statistics). Single masked pass:
        # biased var = E[h^2] - mean^2 (matches torch), no `centered` temps.
        row_mask = jax.lax.broadcasted_iota(jnp.int32, h.shape, 0) < num_valid_rows
        hm = jnp.where(row_mask, h, 0.0)
        inv_b = 1.0 / float(num_valid_rows)
        mean = jnp.sum(hm, axis=0, keepdims=True) * inv_b
        ex2 = jnp.sum(hm * hm, axis=0, keepdims=True) * inv_b
        var = ex2 - mean * mean
        scale = jax.lax.rsqrt(var + 1e-5) * g_ref[...]
        h_norm = (h - mean) * scale + bt_ref[...]

        # Selector fc2 (D -> 1): VPU multiply + lane reduce (avoid N=1 matmul).
        s = jnp.sum(h_norm * ws2_ref[...], axis=-1, keepdims=True) + bs2_ref[0]

        # Numerically-stable sigmoid; exp and approx reciprocal run on the EUP.
        z = jnp.exp(-jnp.abs(s))
        r = pl.reciprocal(1.0 + z, approx=True)
        sel = jnp.where(s >= 0, r, z * r)

        pred_ref[...] = pred.astype(pred_ref.dtype)
        aux_ref[...] = aux.astype(aux_ref.dtype)
        sel_ref[...] = jnp.broadcast_to(sel, sel_ref.shape).astype(sel_ref.dtype)


def pack_params(params, *, batch_hint=8, vmem_cap_bytes=None):
    """Pad / fuse / bf16-cast the head parameters ONCE (cache across calls).

    The fused [K_pad, D_pad + 2*C_pad] bf16 weight is the dominant HBM stream
    of the kernel; re-building it every forward call would roughly triple HBM
    traffic. Also derives a generation-aware K tile (tk) and VMEM target from
    the chip's VMEM capacity.
    """
    D = params["ws1"].shape[0]
    C = params["wc"].shape[1]
    d_pad = _round_up(D, 128)
    c_pad = _round_up(C, 128)
    n_total = d_pad + 2 * c_pad
    b_pad = _round_up(max(int(batch_hint), 1), 8)

    # --- generation-aware VMEM budget ------------------------------------
    if vmem_cap_bytes is None:
        try:
            vmem_cap_bytes = getattr(pltpu.get_tpu_info(), "vmem_capacity_bytes", None)
        except Exception:  # query unavailable
            vmem_cap_bytes = None
    if not vmem_cap_bytes:
        vmem_cap_bytes = 64 << 20            # conservative: v7x per-core VMEM
    # Headroom for Mosaic internal scratch: ~48 MiB target on v7x, ~96 MiB on v5e/v6e.
    vmem_target = max(min(vmem_cap_bytes * 3 // 4, vmem_cap_bytes - (16 << 20)),
                      16 << 20)

    # --- size tk from the budget (double-buffered bf16 x-tile + weight-tile) ---
    fixed = (b_pad * n_total * 4                    # f32 accumulator scratch
             + 2 * b_pad * (2 * c_pad + 128) * 4    # lane-dense outputs
             + 2 * n_total * 4                      # fused bias
             + 2 * 3 * d_pad * 4)                   # gamma / beta / ws2 row
    per_k = 2 * (b_pad + n_total) * 2               # bytes per unit of tk
    tk_budget = max((vmem_target - fixed - (4 << 20)) // per_k, 128)
    tk = int(min(_round_up(D, 128), (tk_budget // 128) * 128))
    tk = max(tk, 128)
    k_pad = _round_up(D, tk)                        # 1 grid step if it all fits

    # --- pack / pad operands (exact zero padding keeps the math identical) ---
    w_fused = jnp.zeros((k_pad, n_total), jnp.float32)
    w_fused = w_fused.at[:D, :D].set(params["ws1"])
    w_fused = w_fused.at[:D, d_pad:d_pad + C].set(params["wc"])
    w_fused = w_fused.at[:D, d_pad + c_pad:d_pad + c_pad + C].set(params["wa"])
    w_fused = w_fused.astype(jnp.bfloat16)

    b_fused = jnp.zeros((1, n_total), jnp.float32)
    b_fused = b_fused.at[:, :D].set(params["bs1"])
    b_fused = b_fused.at[:, d_pad:d_pad + C].set(params["bc"])
    b_fused = b_fused.at[:, d_pad + c_pad:d_pad + c_pad + C].set(params["ba"])

    gamma = jnp.ones((1, d_pad), jnp.float32).at[:, :D].set(params["bn_gamma"])
    beta = jnp.zeros((1, d_pad), jnp.float32).at[:, :D].set(params["bn_beta"])
    ws2_row = jnp.zeros((1, d_pad), jnp.float32).at[:, :D].set(params["ws2"].T)
    bs2 = params["bs2"].reshape(1).astype(jnp.float32)

    packed = {"w_fused": w_fused, "b_fused": b_fused, "gamma": gamma,
              "beta": beta, "ws2_row": ws2_row, "bs2": bs2}
    meta = {"tk": int(tk), "vmem_target": int(vmem_target), "num_classes": int(C)}
    return packed, meta


def selectivenet_forward(x_nchw, packed, *, tk, vmem_target, num_classes):
    """x_nchw: [B, C, H, W] float32. packed/meta come from pack_params (cached)."""
    B = x_nchw.shape[0]
    # features := identity body block (synthetic); flatten like x.view(B, -1)
    x_flat = x_nchw.reshape(B, -1)
    D = x_flat.shape[1]

    w_fused = packed["w_fused"]
    k_pad, n_total = w_fused.shape
    d_pad = packed["gamma"].shape[1]
    c_pad = (n_total - d_pad) // 2
    C = num_classes
    b_pad = _round_up(B, 8)                       # sublane-pad the batch
    nk = k_pad // tk

    # Only x is padded / cast per call (weights were pre-packed once).
    x_pad = jnp.zeros((b_pad, k_pad), jnp.bfloat16)
    x_pad = x_pad.at[:B, :D].set(x_flat.astype(jnp.bfloat16))

    # Actual VMEM usage (double-buffered streamed tiles + residents) + headroom.
    fixed_bytes = (b_pad * n_total * 4
                   + 2 * b_pad * (2 * c_pad + 128) * 4
                   + 2 * n_total * 4
                   + 2 * 3 * d_pad * 4)
    stream_bytes = 2 * (b_pad + n_total) * tk * 2
    vmem_limit = int(min(vmem_target,
                         max(8 << 20, fixed_bytes + stream_bytes + (4 << 20))))

    cost = pl.CostEstimate(
        flops=2 * b_pad * k_pad * n_total,
        transcendentals=2 * b_pad,                          # exp + reciprocal per row
        bytes_accessed=(b_pad * k_pad * 2                   # x (bf16)
                        + k_pad * n_total * 2               # fused weight (bf16)
                        + (n_total + 3 * d_pad + 1) * 4     # small params
                        + b_pad * (2 * c_pad + 128) * 4),   # outputs
    )

    grid_spec = pltpu.PrefetchScalarGridSpec(
        num_scalar_prefetch=0,
        grid=(nk,),
        in_specs=[
            pl.BlockSpec((b_pad, tk), lambda k: (0, k)),
            pl.BlockSpec((tk, n_total), lambda k: (k, 0)),
            pl.BlockSpec((1, n_total), lambda k: (0, 0)),
            pl.BlockSpec((1, d_pad), lambda k: (0, 0)),
            pl.BlockSpec((1, d_pad), lambda k: (0, 0)),
            pl.BlockSpec((1, d_pad), lambda k: (0, 0)),
            pl.BlockSpec(memory_space=pltpu.MemorySpace.SMEM),   # bs2 scalar
        ],
        out_specs=(
            pl.BlockSpec((b_pad, c_pad), lambda k: (0, 0)),
            pl.BlockSpec((b_pad, 128), lambda k: (0, 0)),
            pl.BlockSpec((b_pad, c_pad), lambda k: (0, 0)),
        ),
        scratch_shapes=[pltpu.VMEM((b_pad, n_total), jnp.float32)],
    )

    pred_p, sel_p, aux_p = pl.pallas_call(
        functools.partial(selectivenet_kernel, num_valid_rows=B),
        out_shape=(
            jax.ShapeDtypeStruct((b_pad, c_pad), jnp.float32),
            jax.ShapeDtypeStruct((b_pad, 128), jnp.float32),
            jax.ShapeDtypeStruct((b_pad, c_pad), jnp.float32),
        ),
        grid_spec=grid_spec,
        compiler_params=pltpu.CompilerParams(
            # K is a reduction axis (BatchNorm needs full-batch statistics, so
            # only K is tiled, never B).
            # TODO(synk): on v7x a second "parallel" axis over output columns
            # would let the 2nd TensorCore share the weight stream; it needs a
            # cross-core combine for the selector-fc2 reduction, not done here.
            dimension_semantics=("arbitrary",),
            vmem_limit_bytes=vmem_limit,
        ),
        cost_estimate=cost,
    )(x_pad, w_fused, packed["b_fused"], packed["gamma"], packed["beta"],
      packed["ws2_row"], packed["bs2"])

    return pred_p[:B, :C], sel_p[:B, :1], aux_p[:B, :C]


def init_params(key, dim_features, num_classes):
    """Deterministic init matching SelectiveNet._initialize_weights:
    Linear: weight ~ N(0, 0.01), bias = 0; BatchNorm1d: gamma = 1, beta = 0."""
    k1, k2, k3, k4 = jax.random.split(key, 4)
    D, C = dim_features, num_classes
    std = 0.01
    return {
        # stored transposed relative to torch ([in, out]) so the math is x @ W
        "wc":  std * jax.random.normal(k1, (D, C), jnp.float32),
        "bc":  jnp.zeros((1, C), jnp.float32),
        "ws1": std * jax.random.normal(k2, (D, D), jnp.float32),
        "bs1": jnp.zeros((1, D), jnp.float32),
        "bn_gamma": jnp.ones((1, D), jnp.float32),
        "bn_beta":  jnp.zeros((1, D), jnp.float32),
        "ws2": std * jax.random.normal(k3, (D, 1), jnp.float32),
        "bs2": jnp.zeros((1, 1), jnp.float32),
        "wa":  std * jax.random.normal(k4, (D, C), jnp.float32),
        "ba":  jnp.zeros((1, C), jnp.float32),
    }


def reference_forward(x_nchw, params):
    """Pure-JAX f32 reference (same math) for the correctness check."""
    B = x_nchw.shape[0]
    x = x_nchw.reshape(B, -1)
    pred = x @ params["wc"] + params["bc"]
    h = jnp.maximum(x @ params["ws1"] + params["bs1"], 0.0)
    mean = jnp.mean(h, axis=0, keepdims=True)
    var = jnp.mean((h - mean) ** 2, axis=0, keepdims=True)
    h = (h - mean) / jnp.sqrt(var + 1e-5) * params["bn_gamma"] + params["bn_beta"]
    sel = jax.nn.sigmoid(h @ params["ws2"] + params["bs2"])
    aux = x @ params["wa"] + params["ba"]
    return pred, sel, aux


if __name__ == "__main__":
    key = jax.random.PRNGKey(0)
    k_x, k_p = jax.random.split(key)

    # small synthetic shapes: batch=2, channels=4, spatial=16x16 -> D = 1024
    B, Cin, H, W = 2, 4, 16, 16
    num_classes = 10
    dim_features = Cin * H * W

    x = jax.random.normal(k_x, (B, Cin, H, W), jnp.float32)
    params = init_params(k_p, dim_features, num_classes)

    # Pack / pad / fuse the head weights ONCE (cached across forward calls).
    packed, meta = pack_params(params, batch_hint=B)
    fwd = jax.jit(functools.partial(selectivenet_forward, **meta))

    pred, sel, aux = fwd(x, packed)
    jax.block_until_ready((pred, sel, aux))

    # correctness sanity check vs pure-JAX f32 reference (bf16 matmuls -> 1e-2)
    pred_r, sel_r, aux_r = reference_forward(x, params)
    assert pred.shape == (B, num_classes) and sel.shape == (B, 1) and aux.shape == (B, num_classes)
    assert jnp.allclose(pred, pred_r, atol=1e-2), "prediction mismatch"
    assert jnp.allclose(sel, sel_r, atol=1e-2), "selection mismatch"
    assert jnp.allclose(aux, aux_r, atol=1e-2), "auxiliary mismatch"

    print("KERNEL_OK")
</pallas_src>

<mosaic_0001>
module attributes {stable_mosaic.version = 11 : i64} {
  func.func @selectivenet_kernel(%arg0: i32, %arg1: memref<8x1024xbf16, #tpu.memory_space<vmem>>, %arg2: memref<1024x1280xbf16, #tpu.memory_space<vmem>>, %arg3: memref<1x1280xf32, #tpu.memory_space<vmem>>, %arg4: memref<1x1024xf32, #tpu.memory_space<vmem>>, %arg5: memref<1x1024xf32, #tpu.memory_space<vmem>>, %arg6: memref<1x1024xf32, #tpu.memory_space<vmem>>, %arg7: memref<1xf32, #tpu.memory_space<smem>>, %arg8: memref<8x128xf32, #tpu.memory_space<vmem>>, %arg9: memref<8x128xf32, #tpu.memory_space<vmem>>, %arg10: memref<8x128xf32, #tpu.memory_space<vmem>>, %arg11: memref<8x1280xf32, #tpu.memory_space<vmem>>) attributes {dimension_semantics = [#tpu.dimension_semantics<arbitrary>], iteration_bounds = array<i64: 1>, scalar_prefetch = 0 : i64, scratch_operands = 1 : i64, tpu.core_type = #tpu.core_type<tc>, window_params = [{transform_indices = @transform_0, window_bounds = array<i64: 8, 1024>}, {transform_indices = @transform_1, window_bounds = array<i64: 1024, 1280>}, {pipeline_mode = #tpu.pipeline_mode<synchronous>, transform_indices = @transform_2, window_bounds = array<i64: 1, 1280>}, {pipeline_mode = #tpu.pipeline_mode<synchronous>, transform_indices = @transform_3, window_bounds = array<i64: 1, 1024>}, {pipeline_mode = #tpu.pipeline_mode<synchronous>, transform_indices = @transform_4, window_bounds = array<i64: 1, 1024>}, {pipeline_mode = #tpu.pipeline_mode<synchronous>, transform_indices = @transform_5, window_bounds = array<i64: 1, 1024>}, {transform_indices = @transform_6, window_bounds = array<i64: 1>}, {pipeline_mode = #tpu.pipeline_mode<synchronous>, transform_indices = @transform_7, window_bounds = array<i64: 8, 128>}, {pipeline_mode = #tpu.pipeline_mode<synchronous>, transform_indices = @transform_8, window_bounds = array<i64: 8, 128>}, {pipeline_mode = #tpu.pipeline_mode<synchronous>, transform_indices = @transform_9, window_bounds = array<i64: 8, 128>}]} {
    %c0 = arith.constant 0 : index
    %c0_0 = arith.constant 0 : index
    %0 = vector.load %arg1[%c0, %c0_0] : memref<8x1024xbf16, #tpu.memory_space<vmem>>, vector<8x1024xbf16>
    %c0_1 = arith.constant 0 : index
    %c0_2 = arith.constant 0 : index
    %1 = vector.load %arg2[%c0_1, %c0_2] : memref<1024x1280xbf16, #tpu.memory_space<vmem>>, vector<1024x1280xbf16>
    %cst = arith.constant dense<0.000000e+00> : vector<8x1280xf32>
    %2 = tpu.matmul %0, %1, %cst {dimension_numbers = #tpu.dot_dimension_numbers<[1], [0], [0], [1], [0, 0, 1, 1], [], []>} : vector<8x1024xbf16>, vector<1024x1280xbf16>, vector<8x1280xf32> -> vector<8x1280xf32>
    %c0_i32 = arith.constant 0 : i32
    %3 = arith.cmpi eq, %arg0, %c0_i32 : i32
    %4 = arith.extui %3 : i1 to i32
    %c0_i32_3 = arith.constant 0 : i32
    %5 = arith.cmpi ne, %4, %c0_i32_3 : i32
    scf.if %5 {
      %c0_8 = arith.constant 0 : index
      %c0_9 = arith.constant 0 : index
      %12 = vector.load %arg11[%c0_8, %c0_9] : memref<8x1280xf32, #tpu.memory_space<vmem>>, vector<8x1280xf32>
      tpu.vector_store %arg11[%c0_8, %c0_9], %2 {strides = array<i32>} : memref<8x1280xf32, #tpu.memory_space<vmem>>, vector<8x1280xf32>,
    } else {
    }
    %c0_i32_4 = arith.constant 0 : i32
    %6 = arith.cmpi ne, %arg0, %c0_i32_4 : i32
    %7 = arith.extui %6 : i1 to i32
    %c0_i32_5 = arith.constant 0 : i32
    %8 = arith.cmpi ne, %7, %c0_i32_5 : i32
    scf.if %8 {
      %c0_8 = arith.constant 0 : index
      %c0_9 = arith.constant 0 : index
      %12 = vector.load %arg11[%c0_8, %c0_9] : memref<8x1280xf32, #tpu.memory_space<vmem>>, vector<8x1280xf32>
      %13 = arith.addf %12, %2 : vector<8x1280xf32>
      %c0_10 = arith.constant 0 : index
      %c0_11 = arith.constant 0 : index
      %14 = vector.load %arg11[%c0_10, %c0_11] : memref<8x1280xf32, #tpu.memory_space<vmem>>, vector<8x1280xf32>
      tpu.vector_store %arg11[%c0_10, %c0_11], %13 {strides = array<i32>} : memref<8x1280xf32, #tpu.memory_space<vmem>>, vector<8x1280xf32>,
    } else {
    }
    %c0_i32_6 = arith.constant 0 : i32
    %9 = arith.cmpi eq, %arg0, %c0_i32_6 : i32
    %10 = arith.extui %9 : i1 to i32
    %c0_i32_7 = arith.constant 0 : i32
    %11 = arith.cmpi ne, %10, %c0_i32_7 : i32
    scf.if %11 {
      %c0_8 = arith.constant 0 : index
      %c0_9 = arith.constant 0 : index
      %12 = vector.load %arg11[%c0_8, %c0_9] : memref<8x1280xf32, #tpu.memory_space<vmem>>, vector<8x1280xf32>
      %c0_10 = arith.constant 0 : index
      %c0_11 = arith.constant 0 : index
      %13 = vector.load %arg3[%c0_10, %c0_11] : memref<1x1280xf32, #tpu.memory_space<vmem>>, vector<1x1280xf32>
      %14 = vector.broadcast %13 : vector<1x1280xf32> to vector<8x1280xf32>
      %15 = arith.addf %12, %14 : vector<8x1280xf32>
      %16 = vector.extract_strided_slice %15 {offsets = [0, 0], sizes = [8, 1024], strides = [1, 1]} : vector<8x1280xf32> to vector<8x1024xf32>
      %cst_12 = arith.constant 0.000000e+00 : f32
      %17 = vector.broadcast %cst_12 : f32 to vector<8x1024xf32>
      %18 = arith.maximumf %16, %17 : vector<8x1024xf32>
      %19 = vector.extract_strided_slice %15 {offsets = [0, 1024], sizes = [8, 128], strides = [1, 1]} : vector<8x1280xf32> to vector<8x128xf32>
      %20 = vector.extract_strided_slice %15 {offsets = [0, 1152], sizes = [8, 128], strides = [1, 1]} : vector<8x1280xf32> to vector<8x128xf32>
      %21 = tpu.iota {dimensions = array<i32: 0>} : vector<8x1024xi32>
      %c2_i32 = arith.constant 2 : i32
      %22 = vector.broadcast %c2_i32 : i32 to vector<8x1024xi32>
      %23 = arith.cmpi slt, %21, %22 : vector<8x1024xi32>
      %cst_13 = arith.constant 0.000000e+00 : f32
      %24 = vector.broadcast %cst_13 : f32 to vector<8x1024xf32>
      %25 = arith.select %23, %18, %24 : vector<8x1024xi1>, vector<8x1024xf32>
      %cst_14 = arith.constant dense<0.000000e+00> : vector<1024xf32>
      %26 = vector.multi_reduction <add>, %25, %cst_14 [0] : vector<8x1024xf32> to vector<1024xf32>
      %27 = vector.shape_cast %26 : vector<1024xf32> to vector<1x1024xf32>
      %cst_15 = arith.constant 5.000000e-01 : f32
      %28 = vector.broadcast %cst_15 : f32 to vector<1x1024xf32>
      %29 = arith.mulf %27, %28 : vector<1x1024xf32>
      %30 = arith.mulf %25, %25 : vector<8x1024xf32>
      %cst_16 = arith.constant dense<0.000000e+00> : vector<1024xf32>
      %31 = vector.multi_reduction <add>, %30, %cst_16 [0] : vector<8x1024xf32> to vector<1024xf32>
      %32 = vector.shape_cast %31 : vector<1024xf32> to vector<1x1024xf32>
      %cst_17 = arith.constant 5.000000e-01 : f32
      %33 = vector.broadcast %cst_17 : f32 to vector<1x1024xf32>
      %34 = arith.mulf %32, %33 : vector<1x1024xf32>
      %35 = arith.mulf %29, %29 : vector<1x1024xf32>
      %36 = arith.subf %34, %35 : vector<1x1024xf32>
      %cst_18 = arith.constant 9.99999974E-6 : f32
      %37 = vector.broadcast %cst_18 : f32 to vector<1x1024xf32>
      %38 = arith.addf %36, %37 : vector<1x1024xf32>
      %39 = math.rsqrt %38 : vector<1x1024xf32>
      %c0_19 = arith.constant 0 : index
      %c0_20 = arith.constant 0 : index
      %40 = vector.load %arg4[%c0_19, %c0_20] : memref<1x1024xf32, #tpu.memory_space<vmem>>, vector<1x1024xf32>
      %41 = arith.mulf %39, %40 : vector<1x1024xf32>
      %42 = vector.broadcast %29 : vector<1x1024xf32> to vector<8x1024xf32>
      %43 = arith.subf %18, %42 : vector<8x1024xf32>
      %44 = vector.broadcast %41 : vector<1x1024xf32> to vector<8x1024xf32>
      %45 = arith.mulf %43, %44 : vector<8x1024xf32>
      %c0_21 = arith.constant 0 : index
      %c0_22 = arith.constant 0 : index
      %46 = vector.load %arg5[%c0_21, %c0_22] : memref<1x1024xf32, #tpu.memory_space<vmem>>, vector<1x1024xf32>
      %47 = vector.broadcast %46 : vector<1x1024xf32> to vector<8x1024xf32>
      %48 = arith.addf %45, %47 : vector<8x1024xf32>
      %c0_23 = arith.constant 0 : index
      %c0_24 = arith.constant 0 : index
      %49 = vector.load %arg6[%c0_23, %c0_24] : memref<1x1024xf32, #tpu.memory_space<vmem>>, vector<1x1024xf32>
      %50 = vector.broadcast %49 : vector<1x1024xf32> to vector<8x1024xf32>
      %51 = arith.mulf %48, %50 : vector<8x1024xf32>
      %cst_25 = arith.constant dense<0.000000e+00> : vector<8xf32>
      %52 = vector.multi_reduction <add>, %51, %cst_25 [1] : vector<8x1024xf32> to vector<8xf32>
      %53 = vector.shape_cast %52 : vector<8xf32> to vector<8x1xf32>
      %c0_26 = arith.constant 0 : index
      %54 = memref.load %arg7[%c0_26] : memref<1xf32, #tpu.memory_space<smem>>
      %55 = vector.broadcast %54 : f32 to vector<8x1xf32>
      %56 = arith.addf %53, %55 : vector<8x1xf32>
      %57 = math.absf %56 : vector<8x1xf32>
      %cst_27 = arith.constant 0.000000e+00 : f32
      %58 = vector.broadcast %cst_27 : f32 to vector<8x1xf32>
      %59 = arith.subf %58, %57 : vector<8x1xf32>
      %60 = math.exp %59 : vector<8x1xf32>
      %cst_28 = arith.constant 1.000000e+00 : f32
      %61 = vector.broadcast %cst_28 : f32 to vector<8x1xf32>
      %62 = arith.addf %61, %60 : vector<8x1xf32>
      %63 = tpu.reciprocal %62 {approx = true} : vector<8x1xf32> -> vector<8x1xf32>
      %cst_29 = arith.constant 0.000000e+00 : f32
      %64 = vector.broadcast %cst_29 : f32 to vector<8x1xf32>
      %65 = arith.cmpf oge, %56, %64 : vector<8x1xf32>
      %66 = arith.mulf %60, %63 : vector<8x1xf32>
      %67 = arith.select %65, %63, %66 : vector<8x1xi1>, vector<8x1xf32>
      %c0_30 = arith.constant 0 : index
      %c0_31 = arith.constant 0 : index
      %68 = vector.load %arg8[%c0_30, %c0_31] : memref<8x128xf32, #tpu.memory_space<vmem>>, vector<8x128xf32>
      tpu.vector_store %arg8[%c0_30, %c0_31], %19 {strides = array<i32>} : memref<8x128xf32, #tpu.memory_space<vmem>>, vector<8x128xf32>,
      %c0_32 = arith.constant 0 : index
      %c0_33 = arith.constant 0 : index
      %69 = vector.load %arg10[%c0_32, %c0_33] : memref<8x128xf32, #tpu.memory_space<vmem>>, vector<8x128xf32>
      tpu.vector_store %arg10[%c0_32, %c0_33], %20 {strides = array<i32>} : memref<8x128xf32, #tpu.memory_space<vmem>>, vector<8x128xf32>,
      %70 = vector.shape_cast %67 : vector<8x1xf32> to vector<8x1xf32>
      %71 = vector.broadcast %70 : vector<8x1xf32> to vector<8x128xf32>
      %c0_34 = arith.constant 0 : index
      %c0_35 = arith.constant 0 : index
      %72 = vector.load %arg9[%c0_34, %c0_35] : memref<8x128xf32, #tpu.memory_space<vmem>>, vector<8x128xf32>
      tpu.vector_store %arg9[%c0_34, %c0_35], %71 {strides = array<i32>} : memref<8x128xf32, #tpu.memory_space<vmem>>, vector<8x128xf32>,
    } else {
    }
    return
  }
  func.func @transform_0(%arg0: i32) -> (i32, i32) {
    %c0_i32 = arith.constant 0 : i32
    %c0_i32_0 = arith.constant 0 : i32
    return %c0_i32, %arg0 : i32, i32
  }
  func.func @transform_1(%arg0: i32) -> (i32, i32) {
    %c0_i32 = arith.constant 0 : i32
    %c0_i32_0 = arith.constant 0 : i32
    return %arg0, %c0_i32 : i32, i32
  }
  func.func @transform_2(%arg0: i32) -> (i32, i32) {
    %c0_i32 = arith.constant 0 : i32
    %c0_i32_0 = arith.constant 0 : i32
    %c0_i32_1 = arith.constant 0 : i32
    return %c0_i32, %c0_i32_0 : i32, i32
  }
  func.func @transform_3(%arg0: i32) -> (i32, i32) {
    %c0_i32 = arith.constant 0 : i32
    %c0_i32_0 = arith.constant 0 : i32
    %c0_i32_1 = arith.constant 0 : i32
    return %c0_i32, %c0_i32_0 : i32, i32
  }
  func.func @transform_4(%arg0: i32) -> (i32, i32) {
    %c0_i32 = arith.constant 0 : i32
    %c0_i32_0 = arith.constant 0 : i32
    %c0_i32_1 = arith.constant 0 : i32
    return %c0_i32, %c0_i32_0 : i32, i32
  }
  func.func @transform_5(%arg0: i32) -> (i32, i32) {
    %c0_i32 = arith.constant 0 : i32
    %c0_i32_0 = arith.constant 0 : i32
    %c0_i32_1 = arith.constant 0 : i32
    return %c0_i32, %c0_i32_0 : i32, i32
  }
  func.func @transform_6(%arg0: i32) -> i32 {
    %c0_i32 = arith.constant 0 : i32
    %c0_i32_0 = arith.constant 0 : i32
    return %c0_i32 : i32
  }
  func.func @transform_7(%arg0: i32) -> (i32, i32) {
    %c0_i32 = arith.constant 0 : i32
    %c0_i32_0 = arith.constant 0 : i32
    %c0_i32_1 = arith.constant 0 : i32
    return %c0_i32, %c0_i32_0 : i32, i32
  }
  func.func @transform_8(%arg0: i32) -> (i32, i32) {
    %c0_i32 = arith.constant 0 : i32
    %c0_i32_0 = arith.constant 0 : i32
    %c0_i32_1 = arith.constant 0 : i32
    return %c0_i32, %c0_i32_0 : i32, i32
  }
  func.func @transform_9(%arg0: i32) -> (i32, i32) {
    %c0_i32 = arith.constant 0 : i32
    %c0_i32_0 = arith.constant 0 : i32
    %c0_i32_1 = arith.constant 0 : i32
    return %c0_i32, %c0_i32_0 : i32, i32
  }
}

</mosaic_0001>

<bundles_post_ra>
// kernel: selectivenet_forward.1
= control target key start
LH: loop header
LB: loop body
LE: loop exit
PB: predicated region body
PF: predicated region fallthrough
CT: control target
= control target key end

     0   :  { %16 = vsyncpa [#allocation5], 0  ;;  %s7459_s0 = inlined_call_operand.vmem [shape: bf16[8,1024], index: 0, kind: input, shape index: {}]   ;;  %s7460_s1 = inlined_call_operand.hbm [shape: bf16[1024,1280], index: 1, kind: input, shape index: {}]   ;;  %s7461_s2 = inlined_call_operand.hbm [shape: f32[1,1280], index: 2, kind: input, shape index: {}]   ;;  %s7462_s3 = inlined_call_operand.hbm [shape: f32[1,1024], index: 3, kind: input, shape index: {}]   ;;  %s7463_s4 = inlined_call_operand.hbm [shape: f32[1,1024], index: 4, kind: input, shape index: {}]   ;;  %s7464_s5 = inlined_call_operand.hbm [shape: f32[1,1024], index: 5, kind: input, shape index: {}]   ;;  %s7465_s6 = inlined_call_operand.<no memory space> [shape: f32[1], index: 6, kind: input, shape index: {}]   ;;  %s7466_s7 = inlined_call_operand.vmem [shape: f32[8,128], index: 7, kind: output, shape index: {0}]   ;;  %s7467_s8 = inlined_call_operand.vmem [shape: f32[8,128], index: 8, kind: output, shape index: {1}]   ;;  %s7468_s9 = inlined_call_operand.vmem [shape: f32[8,128], index: 9, kind: output, shape index: {2}]  }
   0x1   :  { %17 = vsyncpa [#allocation7], 0 }
   0x2   :  { %18 = vsyncpa [#allocation10], 0  ;;  %s7069_s30 = smov [#allocation6]   ;;  %s7070_s11 = smov [#allocation9]  }
   0x3   :  { %s39_s10 = sshll.u32 %s7069_s30, 4  ;;  %s59_s12 = sshll.u32 %s7070_s11, 4  ;;  %s40_s10 = int_to_ptr.vmem [resolvable:$true] %s39_s10  ;;  %s60_s12 = int_to_ptr.vmem [resolvable:$true] %s59_s12 }
   0x4   :  { %s6971_s13 = scalar_lea.vmem %s40_s10, 160  ;;  %p6976_p1 = scmp.lt.s32.totalorder %s40_s10, %s40_s10 }
   0x5   :  { %p6972_p0 = scmp.ne.s32.totalorder %s40_s10, %s6971_s13  ;;  %p6977_p2 = scmp.lt.s32.totalorder %s6971_s13, %s6971_s13 }
   0x7   :  { %p6978_p3 = por %p6977_p2, %p6976_p1 }
   0x9   :  { %p6979_p4 = pnand %p6978_p3, %p6972_p0 }
   0xb   :  { %6982 = shalt.err (!%p6979_p4)
}
   0xc   :  { %42 = dma.hbm_to_vmem [thread:$0]  %s7461_s2, 160, %s40_s10, [#allocation7]  }
   0xd   :  { %s6991_s16 = scalar_lea.vmem %s60_s12, 128  ;;  %p6996_p6 = scmp.lt.s32.totalorder %s60_s12, %s60_s12 }
   0xe   :  { %p6992_p5 = scmp.ne.s32.totalorder %s60_s12, %s6991_s16  ;;  %p6997_p7 = scmp.lt.s32.totalorder %s6991_s16, %s6991_s16 }
  0x10   :  { %p6998_p8 = por %p6997_p7, %p6996_p6 }
  0x12   :  { %p6999_p9 = pnand %p6998_p8, %p6992_p5 }
  0x14   :  { %7002 = shalt.err (!%p6999_p9)
}
  0x15   :  { %62 = dma.hbm_to_vmem [thread:$0]  %s7463_s4, 128, %s60_s12, [#allocation10]  }
  0x16   :  { %s7071_s19 = smov [#allocation4]  }
  0x17   :  { %s26_s20 = sshll.u32 %s7071_s19, 4  ;;  %s27_s20 = int_to_ptr.vmem [resolvable:$true] %s26_s20 }
  0x18   :  { %s7011_s21 = scalar_lea.vmem %s27_s20, 81920  ;;  %p7016_p11 = scmp.lt.s32.totalorder %s27_s20, %s27_s20 }
  0x19   :  { %p7012_p10 = scmp.ne.s32.totalorder %s27_s20, %s7011_s21  ;;  %p7017_p12 = scmp.lt.s32.totalorder %s7011_s21, %s7011_s21 }
  0x1b   :  { %p7018_p13 = por %p7017_p12, %p7016_p11 }
  0x1d   :  { %p7019_p0 = pnand %p7018_p13, %p7012_p10 }
  0x1f   :  { %7022 = shalt.err (!%p7019_p0)
}
  0x20   :  { %s7072_s2 = smov 640   ;;  %s7073_s22 = smov 40  }
  0x21   :  { %32 = dma.hbm_to_vmem [thread:$0]  %s7460_s1, 81920, %s27_s20, [#allocation5], %s7072_s2, %s7072_s2, %s7073_s22  }
  0x22   :  { %s7074_s25 = smov [#allocation8]   ;;  %s7075_s4 = smov [#allocation11]  }
  0x23   :  { %s49_s26 = sshll.u32 %s7074_s25, 4  ;;  %s69_s27 = sshll.u32 %s7075_s4, 4  ;;  %s50_s26 = int_to_ptr.vmem [resolvable:$true] %s49_s26  ;;  %s70_s27 = int_to_ptr.vmem [resolvable:$true] %s69_s27 }
  0x24   :  { %s7031_s28 = scalar_lea.vmem %s50_s26, 128  ;;  %p7036_p2 = scmp.lt.s32.totalorder %s50_s26, %s50_s26 }
  0x25   :  { %p7032_p1 = scmp.ne.s32.totalorder %s50_s26, %s7031_s28  ;;  %p7037_p3 = scmp.lt.s32.totalorder %s7031_s28, %s7031_s28 }
  0x27   :  { %p7038_p4 = por %p7037_p3, %p7036_p2 }
  0x29   :  { %p7039_p5 = pnand %p7038_p4, %p7032_p1 }
  0x2b   :  { %7042 = shalt.err (!%p7039_p5)
}
  0x2c   :  { %52 = dma.hbm_to_vmem [thread:$0]  %s7462_s3, 128, %s50_s26, [#allocation7]  }
  0x2d   :  { %s7051_s10 = scalar_lea.vmem %s70_s27, 128  ;;  %p7056_p7 = scmp.lt.s32.totalorder %s70_s27, %s70_s27 }
  0x2e   :  { %p7052_p6 = scmp.ne.s32.totalorder %s70_s27, %s7051_s10  ;;  %p7057_p8 = scmp.lt.s32.totalorder %s7051_s10, %s7051_s10 }
  0x30   :  { %p7058_p9 = por %p7057_p8, %p7056_p7 }
  0x32   :  { %p7059_p10 = pnand %p7058_p9, %p7052_p6 }
  0x34   :  { %7062 = shalt.err (!%p7059_p10)
}
  0x35   :  { %72 = dma.hbm_to_vmem [thread:$0]  %s7464_s5, 128, %s70_s27, [#allocation10]  }
  0x36   :  { %7063 = dma.done.wait [#allocation5], 81920  }
  0x37   :  { %7064 = vsyncadd [#allocation5], 4294885376 }
  0x38   :  { %7065 = dma.done.wait [#allocation7], 288  }
  0x39   :  { %7066 = vsyncadd [#allocation7], 4294967008 }
  0x3a   :  { %7067 = dma.done.wait [#allocation10], 256  }
  0x3b   :  { %7068 = vsyncadd [#allocation10], 4294967040  ;;  %v5970_v0 = vld [vmem:[#allocation4 + $0x234] ss:$40 sps:$4 sm:$0xff]   ;;  %v5974_v2 = vld [vmem:[#allocation4 + $0x230] ss:$40 sps:$4 sm:$0xff]  }
  0x3c   :  { %v5972_v1 = vld [vmem:[#allocation4 + $0x734] ss:$40 sps:$4 sm:$0xff]   ;;  %3962 = vmatprep.subr.bf16.mxu0 %v5970_v0  ;;  %v5975_v3 = vld [vmem:[#allocation4 + $0x730] ss:$40 sps:$4 sm:$0xff]   ;;  %v5976_v4 = vld [vmem:[#allocation4 + $0x1e4] ss:$40 sps:$4 sm:$0xff]  }
  0x3d   :  { %4003 = vmatprep.subr.bf16.mxu1 %v5972_v1  ;;  %3963 = vmatpush1.bf16.msra.mxu0 %v5974_v2  ;;  %v5978_v5 = vld [vmem:[#allocation4 + $0x6e4] ss:$40 sps:$4 sm:$0xff]   ;;  %v5980_v6 = vld [vmem:[#allocation4 + $0x1e0] ss:$40 sps:$4 sm:$0xff]   ;;  %v5982_v8 = vld [vmem:[#allocation4 + $0x194] ss:$40 sps:$4 sm:$0xff]  }
  0x3e   :  { %4004 = vmatpush1.bf16.msra.mxu1 %v5975_v3  ;;  %3964 = vmatprep.subr.bf16.mxu0 %v5976_v4  ;;  %v5981_v7 = vld [vmem:[#allocation4 + $0x6e0] ss:$40 sps:$4 sm:$0xff]   ;;  %v5984_v9 = vld [vmem:[#allocation4 + $0x694] ss:$40 sps:$4 sm:$0xff]   ;;  %v5986_v10 = vld [vmem:[#allocation4 + $0x190] ss:$40 sps:$4 sm:$0xff]  }
  0x3f   :  { %4005 = vmatprep.subr.bf16.mxu1 %v5978_v5  ;;  %v5987_v11 = vld [vmem:[#allocation4 + $0x690] ss:$40 sps:$4 sm:$0xff]   ;;  %v5988_v12 = vld [vmem:[#allocation4 + $0x144] ss:$40 sps:$4 sm:$0xff]   ;;  %v5992_v14 = vld [vmem:[#allocation4 + $0x140] ss:$40 sps:$4 sm:$0xff]  }
  0x40   :  { %v5990_v13 = vld [vmem:[#allocation4 + $0x644] ss:$40 sps:$4 sm:$0xff]   ;;  %v5993_v15 = vld [vmem:[#allocation4 + $0x640] ss:$40 sps:$4 sm:$0xff]   ;;  %v5994_v16 = vld [vmem:[#allocation4 + $0xf4] ss:$40 sps:$4 sm:$0xff]  }
  0x41   :  { %3965 = vmatpush1.bf16.msra.mxu0 %v5980_v6  ;;  %v5996_v17 = vld [vmem:[#allocation4 + $0x5f4] ss:$40 sps:$4 sm:$0xff]   ;;  %v5998_v18 = vld [vmem:[#allocation4 + $0xf0] ss:$40 sps:$4 sm:$0xff]   ;;  %v6000_v20 = vld [vmem:[#allocation4 + $0xa4] ss:$40 sps:$4 sm:$0xff]  }
  0x42   :  { %4006 = vmatpush1.bf16.msra.mxu1 %v5981_v7  ;;  %3966 = vmatprep.subr.bf16.mxu0 %v5982_v8  ;;  %v5999_v19 = vld [vmem:[#allocation4 + $0x5f0] ss:$40 sps:$4 sm:$0xff]   ;;  %v6002_v21 = vld [vmem:[#allocation4 + $0x5a4] ss:$40 sps:$4 sm:$0xff]   ;;  %v6004_v22 = vld [vmem:[#allocation4 + $0xa0] ss:$40 sps:$4 sm:$0xff]  }
  0x43   :  { %4007 = vmatprep.subr.bf16.mxu1 %v5984_v9  ;;  %v6005_v23 = vld [vmem:[#allocation4 + $0x5a0] ss:$40 sps:$4 sm:$0xff]   ;;  %v6006_v24 = vld [vmem:[#allocation4 + $0x54] ss:$40 sps:$4 sm:$0xff]   ;;  %v6010_v26 = vld [vmem:[#allocation4 + $0x50] ss:$40 sps:$4 sm:$0xff]  }
  0x44   :  { %v6008_v25 = vld [vmem:[#allocation4 + $0x554] ss:$40 sps:$4 sm:$0xff]   ;;  %v6011_v27 = vld [vmem:[#allocation4 + $0x550] ss:$40 sps:$4 sm:$0xff]   ;;  %v6012_v28 = vld [vmem:[#allocation4 + $0x4] ss:$40 sps:$4 sm:$0xff]  }
  0x45   :  { %3967 = vmatpush1.bf16.msra.mxu0 %v5986_v10  ;;  %v6014_v29 = vld [vmem:[#allocation4 + $0x504] ss:$40 sps:$4 sm:$0xff]   ;;  %v6016_v30 = vld [vmem:[#allocation4] ss:$40 sps:$4 sm:$0xff]   ;;  %v6018_v32 = vld [vmem:[#allocation4 + $0x4b4] ss:$40 sps:$4 sm:$0xff]  }
  0x46   :  { %4008 = vmatpush1.bf16.msra.mxu1 %v5987_v11  ;;  %3968 = vmatprep.subr.bf16.mxu0 %v5988_v12  ;;  %v6017_v31 = vld [vmem:[#allocation4 + $0x500] ss:$40 sps:$4 sm:$0xff]   ;;  %v6020_v33 = vld [vmem:[#allocation4 + $0x9b4] ss:$40 sps:$4 sm:$0xff]   ;;  %v6022_v34 = vld [vmem:[#allocation4 + $0x4b0] ss:$40 sps:$4 sm:$0xff]  }
  0x47   :  { %4009 = vmatprep.subr.bf16.mxu1 %v5990_v13  ;;  %v6023_v35 = vld [vmem:[#allocation4 + $0x9b0] ss:$40 sps:$4 sm:$0xff]   ;;  %v6024_v36 = vld [vmem:[#allocation4 + $0x464] ss:$40 sps:$4 sm:$0xff]   ;;  %v6028_v38 = vld [vmem:[#allocation4 + $0x460] ss:$40 sps:$4 sm:$0xff]  }
  0x48   :  { %v6026_v37 = vld [vmem:[#allocation4 + $0x964] ss:$40 sps:$4 sm:$0xff]   ;;  %v6029_v39 = vld [vmem:[#allocation4 + $0x960] ss:$40 sps:$4 sm:$0xff]   ;;  %v6030_v40 = vld [vmem:[#allocation4 + $0x414] ss:$40 sps:$4 sm:$0xff]  }
  0x49   :  { %3969 = vmatpush1.bf16.msra.mxu0 %v5992_v14  ;;  %v6032_v41 = vld [vmem:[#allocation4 + $0x914] ss:$40 sps:$4 sm:$0xff]   ;;  %v6034_v42 = vld [vmem:[#allocation4 + $0x410] ss:$40 sps:$4 sm:$0xff]   ;;  %v6036_v44 = vld [vmem:[#allocation4 + $0x3c4] ss:$40 sps:$4 sm:$0xff]  }
  0x4a   :  { %4010 = vmatpush1.bf16.msra.mxu1 %v5993_v15  ;;  %3970 = vmatprep.subr.bf16.mxu0 %v5994_v16  ;;  %v6035_v43 = vld [vmem:[#allocation4 + $0x910] ss:$40 sps:$4 sm:$0xff]   ;;  %v6038_v45 = vld [vmem:[#allocation4 + $0x8c4] ss:$40 sps:$4 sm:$0xff]   ;;  %v6040_v49 = vld [vmem:[#allocation4 + $0x3c0] ss:$40 sps:$4 sm:$0xff]  }
  0x4b   :  { %4011 = vmatprep.subr.bf16.mxu1 %v5996_v17  ;;  %v90_v46 = vld [vmem:[%s7459_s0] sm:$0xff]  ;;  %v91_v48 = vld [vmem:[%s7459_s0 + $0x8] sm:$0xff]  ;;  %v6042_v52 = vld [vmem:[#allocation4 + $0x374] ss:$40 sps:$4 sm:$0xff]  }
  0x4c   :  { %v7144_v47 = vcombine.high %v90_v46, %v90_v46  ;;  %v6041_v50 = vld [vmem:[#allocation4 + $0x8c0] ss:$40 sps:$4 sm:$0xff]   ;;  %v7149_v51 = vcombine.high %v91_v48, %v91_v48  ;;  %v6044_v53 = vld [vmem:[#allocation4 + $0x874] ss:$40 sps:$4 sm:$0xff]   ;;  %v6046_v54 = vld [vmem:[#allocation4 + $0x370] ss:$40 sps:$4 sm:$0xff]   ;;  %v7153_v6 = vcombine.low %v90_v46, %v90_v46  ;;  %v7155_v7 = vcombine.low %v91_v48, %v91_v48 }
  0x4d   :  { %3971 = vmatpush1.bf16.msra.mxu0 %v5998_v18  ;;  %v6047_v55 = vld [vmem:[#allocation4 + $0x870] ss:$40 sps:$4 sm:$0xff]   ;;  %v6048_v56 = vld [vmem:[#allocation4 + $0x324] ss:$40 sps:$4 sm:$0xff]   ;;  %v6052_v58 = vld [vmem:[#allocation4 + $0x320] ss:$40 sps:$4 sm:$0xff]  }
  0x4e   :  { %4012 = vmatpush1.bf16.msra.mxu1 %v5999_v19  ;;  %3972 = vmatprep.subr.bf16.mxu0 %v6000_v20  ;;  %v6050_v57 = vld [vmem:[#allocation4 + $0x824] ss:$40 sps:$4 sm:$0xff]   ;;  %v6053_v59 = vld [vmem:[#allocation4 + $0x820] ss:$40 sps:$4 sm:$0xff]   ;;  %v6054_v60 = vld [vmem:[#allocation4 + $0x2d4] ss:$40 sps:$4 sm:$0xff]  }
  0x4f   :  { %4013 = vmatprep.subr.bf16.mxu1 %v6002_v21  ;;  %3994 = vmatprep.mubr.bf16.mxu0 %v7144_v47  ;;  %v6056_v61 = vld [vmem:[#allocation4 + $0x7d4] ss:$40 sps:$4 sm:$0xff]   ;;  %v6058_v62 = vld [vmem:[#allocation4 + $0x2d0] ss:$40 sps:$4 sm:$0xff]   ;;  %v6060_v0 = vld [vmem:[#allocation4 + $0x284] ss:$40 sps:$4 sm:$0xff]  }
  0x50   :  { %4035 = vmatprep.mubr.bf16.mxu1 %v7149_v51  ;;  %v6059_v63 = vld [vmem:[#allocation4 + $0x7d0] ss:$40 sps:$4 sm:$0xff]   ;;  %v6062_v1 = vld [vmem:[#allocation4 + $0x784] ss:$40 sps:$4 sm:$0xff]   ;;  %v6064_v2 = vld [vmem:[#allocation4 + $0x280] ss:$40 sps:$4 sm:$0xff]  }
  0x51   :  { %3973 = vmatpush1.bf16.msra.mxu0 %v6004_v22  ;;  %v6065_v3 = vld [vmem:[#allocation4 + $0x780] ss:$40 sps:$4 sm:$0xff]   ;;  %v6072_v4 = vld [vmem:[#allocation4 + $0xc34] ss:$40 sps:$4 sm:$0xff]   ;;  %v6070_v8 = vld [vmem:[#allocation4 + $0xc30] ss:$40 sps:$4 sm:$0xff]  }
  0x52   :  { %4014 = vmatpush1.bf16.msra.mxu1 %v6005_v23  ;;  %3974 = vmatprep.subr.bf16.mxu0 %v6006_v24  ;;  %v6075_v5 = vld [vmem:[#allocation4 + $0x1134] ss:$40 sps:$4 sm:$0xff]   ;;  %v6073_v9 = vld [vmem:[#allocation4 + $0x1130] ss:$40 sps:$4 sm:$0xff]   ;;  %v6078_v10 = vld [vmem:[#allocation4 + $0xbe4] ss:$40 sps:$4 sm:$0xff]  }
  0x53   :  { %4015 = vmatprep.subr.bf16.mxu1 %v6008_v25  ;;  %v6081_v11 = vld [vmem:[#allocation4 + $0x10e4] ss:$40 sps:$4 sm:$0xff]   ;;  %v6076_v12 = vld [vmem:[#allocation4 + $0xbe0] ss:$40 sps:$4 sm:$0xff]   ;;  %v6084_v14 = vld [vmem:[#allocation4 + $0xb94] ss:$40 sps:$4 sm:$0xff]  }
  0x54   :  { %v6079_v13 = vld [vmem:[#allocation4 + $0x10e0] ss:$40 sps:$4 sm:$0xff]   ;;  %v6087_v15 = vld [vmem:[#allocation4 + $0x1094] ss:$40 sps:$4 sm:$0xff]   ;;  %v6082_v16 = vld [vmem:[#allocation4 + $0xb90] ss:$40 sps:$4 sm:$0xff]  }
  0x55   :  { %3975 = vmatpush1.bf16.msra.mxu0 %v6010_v26  ;;  %v6085_v17 = vld [vmem:[#allocation4 + $0x1090] ss:$40 sps:$4 sm:$0xff]   ;;  %v6090_v18 = vld [vmem:[#allocation4 + $0xb44] ss:$40 sps:$4 sm:$0xff]   ;;  %v6088_v20 = vld [vmem:[#allocation4 + $0xb40] ss:$40 sps:$4 sm:$0xff]  }
  0x56   :  { %4016 = vmatpush1.bf16.msra.mxu1 %v6011_v27  ;;  %3976 = vmatprep.subr.bf16.mxu0 %v6012_v28  ;;  %v6093_v19 = vld [vmem:[#allocation4 + $0x1044] ss:$40 sps:$4 sm:$0xff]   ;;  %v6091_v21 = vld [vmem:[#allocation4 + $0x1040] ss:$40 sps:$4 sm:$0xff]   ;;  %v6096_v22 = vld [vmem:[#allocation4 + $0xaf4] ss:$40 sps:$4 sm:$0xff]  }
  0x57   :  { %4017 = vmatprep.subr.bf16.mxu1 %v6014_v29  ;;  %v6099_v23 = vld [vmem:[#allocation4 + $0xff4] ss:$40 sps:$4 sm:$0xff]   ;;  %v6094_v24 = vld [vmem:[#allocation4 + $0xaf0] ss:$40 sps:$4 sm:$0xff]   ;;  %v6102_v26 = vld [vmem:[#allocation4 + $0xaa4] ss:$40 sps:$4 sm:$0xff]  }
  0x58   :  { %v6097_v25 = vld [vmem:[#allocation4 + $0xff0] ss:$40 sps:$4 sm:$0xff]   ;;  %v6105_v27 = vld [vmem:[#allocation4 + $0xfa4] ss:$40 sps:$4 sm:$0xff]   ;;  %v6100_v28 = vld [vmem:[#allocation4 + $0xaa0] ss:$40 sps:$4 sm:$0xff]  }
  0x59   :  { %3977 = vmatpush1.bf16.msra.mxu0 %v6016_v30  ;;  %v6103_v29 = vld [vmem:[#allocation4 + $0xfa0] ss:$40 sps:$4 sm:$0xff]   ;;  %v6108_v30 = vld [vmem:[#allocation4 + $0xa54] ss:$40 sps:$4 sm:$0xff]   ;;  %v6126_v46 = vld [vmem:[#allocation4 + $0xe64] ss:$40 sps:$4 sm:$0xff]  }
  0x5a   :  { %4018 = vmatpush1.bf16.msra.mxu1 %v6017_v31  ;;  %3978 = vmatprep.subr.bf16.mxu0 %v6018_v32  ;;  %v6111_v31 = vld [vmem:[#allocation4 + $0xf54] ss:$40 sps:$4 sm:$0xff]   ;;  %v6129_v48 = vld [vmem:[#allocation4 + $0x1364] ss:$40 sps:$4 sm:$0xff]  }
  0x5b   :  { %4019 = vmatprep.subr.bf16.mxu1 %v6020_v33  ;;  %v7162_v32 = vld [vmem:[%s7459_s0 + $0x10] sm:$0xff]  ;;  %v7167_v33 = vld [vmem:[%s7459_s0 + $0x18] sm:$0xff] }
  0x5d   :  { %3979 = vmatpush2.bf16.msra.mxu0 %v6022_v34  ;;  %v6106_v34 = vld [vmem:[#allocation4 + $0xa50] ss:$40 sps:$4 sm:$0xff]  }
  0x5e   :  { %4020 = vmatpush2.bf16.msra.mxu1 %v6023_v35  ;;  %3980 = vmatprep.subr.bf16.mxu0 %v6024_v36  ;;  %v6109_v35 = vld [vmem:[#allocation4 + $0xf50] ss:$40 sps:$4 sm:$0xff]   ;;  %v7171_v36 = vcombine.high %v7162_v32, %v7162_v32 }
  0x5f   :  { %4021 = vmatprep.subr.bf16.mxu1 %v6026_v37  ;;  %v7175_v37 = vcombine.high %v7167_v33, %v7167_v33 }
  0x61   :  { %3981 = vmatpush2.bf16.msra.mxu0 %v6028_v38  ;;  %v6114_v38 = vld [vmem:[#allocation4 + $0xa04] ss:$40 sps:$4 sm:$0xff]  }
  0x62   :  { %4022 = vmatpush2.bf16.msra.mxu1 %v6029_v39  ;;  %3982 = vmatprep.subr.bf16.mxu0 %v6030_v40  ;;  %v6117_v39 = vld [vmem:[#allocation4 + $0xf04] ss:$40 sps:$4 sm:$0xff]   ;;  %v6112_v40 = vld [vmem:[#allocation4 + $0xa00] ss:$40 sps:$4 sm:$0xff]  }
  0x63   :  { %4023 = vmatprep.subr.bf16.mxu1 %v6032_v41  ;;  %v6115_v41 = vld [vmem:[#allocation4 + $0xf00] ss:$40 sps:$4 sm:$0xff]  }
  0x65   :  { %3983 = vmatpush2.bf16.msra.mxu0 %v6034_v42  ;;  %v6120_v42 = vld [vmem:[#allocation4 + $0xeb4] ss:$40 sps:$4 sm:$0xff]  }
  0x66   :  { %4024 = vmatpush2.bf16.msra.mxu1 %v6035_v43  ;;  %3984 = vmatprep.subr.bf16.mxu0 %v6036_v44  ;;  %v6123_v43 = vld [vmem:[#allocation4 + $0x13b4] ss:$40 sps:$4 sm:$0xff]   ;;  %v6118_v44 = vld [vmem:[#allocation4 + $0xeb0] ss:$40 sps:$4 sm:$0xff]  }
  0x67   :  { %4025 = vmatprep.subr.bf16.mxu1 %v6038_v45  ;;  %v6121_v45 = vld [vmem:[#allocation4 + $0x13b0] ss:$40 sps:$4 sm:$0xff]  }
  0x69   :  { %3985 = vmatpush2.bf16.msra.mxu0 %v6040_v49  ;;  %v6124_v49 = vld [vmem:[#allocation4 + $0xe60] ss:$40 sps:$4 sm:$0xff]  }
  0x6a   :  { %4026 = vmatpush2.bf16.msra.mxu1 %v6041_v50  ;;  %3986 = vmatprep.subr.bf16.mxu0 %v6042_v52  ;;  %v6127_v50 = vld [vmem:[#allocation4 + $0x1360] ss:$40 sps:$4 sm:$0xff]   ;;  %v6132_v52 = vld [vmem:[#allocation4 + $0xe14] ss:$40 sps:$4 sm:$0xff]  }
  0x6b   :  { %4027 = vmatprep.subr.bf16.mxu1 %v6044_v53  ;;  %v6135_v53 = vld [vmem:[#allocation4 + $0x1314] ss:$40 sps:$4 sm:$0xff]  }
  0x6d   :  { %3987 = vmatpush2.bf16.msra.mxu0 %v6046_v54  ;;  %v6130_v54 = vld [vmem:[#allocation4 + $0xe10] ss:$40 sps:$4 sm:$0xff]  }
  0x6e   :  { %4028 = vmatpush2.bf16.msra.mxu1 %v6047_v55  ;;  %3988 = vmatprep.subr.bf16.mxu0 %v6048_v56  ;;  %v6133_v55 = vld [vmem:[#allocation4 + $0x1310] ss:$40 sps:$4 sm:$0xff]   ;;  %v6138_v56 = vld [vmem:[#allocation4 + $0xdc4] ss:$40 sps:$4 sm:$0xff]  }
  0x6f   :  { %4029 = vmatprep.subr.bf16.mxu1 %v6050_v57  ;;  %v6141_v57 = vld [vmem:[#allocation4 + $0x12c4] ss:$40 sps:$4 sm:$0xff]  }
  0x71   :  { %3989 = vmatpush2.bf16.msra.mxu0 %v6052_v58  ;;  %v6136_v58 = vld [vmem:[#allocation4 + $0xdc0] ss:$40 sps:$4 sm:$0xff]  }
  0x72   :  { %4030 = vmatpush2.bf16.msra.mxu1 %v6053_v59  ;;  %3990 = vmatprep.subr.bf16.mxu0 %v6054_v60  ;;  %v6139_v59 = vld [vmem:[#allocation4 + $0x12c0] ss:$40 sps:$4 sm:$0xff]   ;;  %v6144_v60 = vld [vmem:[#allocation4 + $0xd74] ss:$40 sps:$4 sm:$0xff]  }
  0x73   :  { %4031 = vmatprep.subr.bf16.mxu1 %v6056_v61  ;;  %v6147_v61 = vld [vmem:[#allocation4 + $0x1274] ss:$40 sps:$4 sm:$0xff]  }
  0x75   :  { %3991 = vmatpush2.bf16.msra.mxu0 %v6058_v62  ;;  %v6142_v62 = vld [vmem:[#allocation4 + $0xd70] ss:$40 sps:$4 sm:$0xff]  }
  0x76   :  { %4032 = vmatpush2.bf16.msra.mxu1 %v6059_v63  ;;  %3992 = vmatprep.subr.bf16.mxu0 %v6060_v0  ;;  %v6145_v63 = vld [vmem:[#allocation4 + $0x1270] ss:$40 sps:$4 sm:$0xff]   ;;  %v6150_v0 = vld [vmem:[#allocation4 + $0xd24] ss:$40 sps:$4 sm:$0xff]  }
  0x77   :  { %4033 = vmatprep.subr.bf16.mxu1 %v6062_v1  ;;  %v6153_v1 = vld [vmem:[#allocation4 + $0x1224] ss:$40 sps:$4 sm:$0xff]  }
  0x79   :  { %3993 = vmatpush2.bf16.msra.mxu0 %v6064_v2  ;;  %v6148_v2 = vld [vmem:[#allocation4 + $0xd20] ss:$40 sps:$4 sm:$0xff]  }
  0x7a   :  { %4034 = vmatpush2.bf16.msra.mxu1 %v6065_v3  ;;  %4044 = vmatprep.subr.bf16.mxu0 %v6072_v4  ;;  %v6151_v3 = vld [vmem:[#allocation4 + $0x1220] ss:$40 sps:$4 sm:$0xff]   ;;  %v6156_v4 = vld [vmem:[#allocation4 + $0xcd4] ss:$40 sps:$4 sm:$0xff]  }
  0x7b   :  { %4085 = vmatprep.subr.bf16.mxu1 %v6075_v5  ;;  %v6159_v5 = vld [vmem:[#allocation4 + $0x11d4] ss:$40 sps:$4 sm:$0xff]  }
  0x7c   :  { %3995 = vmatmul.mubr.bf16.vlgmr.msra.gmra.mxu0 %v7153_v6 }
  0x7d   :  { %4036 = vmatmul.mubr.bf16.vlgmr.msra.gmra.mxu1 %v7155_v7  ;;  %4045 = vmatpush1.bf16.msra.mxu0 %v6070_v8  ;;  %v6154_v8 = vld [vmem:[#allocation4 + $0xcd0] ss:$40 sps:$4 sm:$0xff]  }
  0x7e   :  { %4086 = vmatpush1.bf16.msra.mxu1 %v6073_v9  ;;  %4046 = vmatprep.subr.bf16.mxu0 %v6078_v10  ;;  %v6157_v9 = vld [vmem:[#allocation4 + $0x11d0] ss:$40 sps:$4 sm:$0xff]   ;;  %v6162_v10 = vld [vmem:[#allocation4 + $0xc84] ss:$40 sps:$4 sm:$0xff]  }
  0x7f   :  { %4087 = vmatprep.subr.bf16.mxu1 %v6081_v11  ;;  %4076 = vmatprep.mubr.bf16.mxu0 %v7171_v36  ;;  %v6165_v11 = vld [vmem:[#allocation4 + $0x1184] ss:$40 sps:$4 sm:$0xff]  }
  0x80   :  { %4117 = vmatprep.mubr.bf16.mxu1 %v7175_v37 }
  0x81   :  { %4047 = vmatpush1.bf16.msra.mxu0 %v6076_v12  ;;  %v6160_v12 = vld [vmem:[#allocation4 + $0xc80] ss:$40 sps:$4 sm:$0xff]  }
  0x82   :  { %4088 = vmatpush1.bf16.msra.mxu1 %v6079_v13  ;;  %4048 = vmatprep.subr.bf16.mxu0 %v6084_v14  ;;  %v6163_v13 = vld [vmem:[#allocation4 + $0x1180] ss:$40 sps:$4 sm:$0xff]   ;;  %v6172_v14 = vld [vmem:[#allocation4 + $0x23c] ss:$40 sps:$4 sm:$0xff]  }
  0x83   :  { %4089 = vmatprep.subr.bf16.mxu1 %v6087_v15  ;;  %v6175_v15 = vld [vmem:[#allocation4 + $0x73c] ss:$40 sps:$4 sm:$0xff]  }
  0x85   :  { %4049 = vmatpush1.bf16.msra.mxu0 %v6082_v16  ;;  %v7181_v16 = vcombine.low %v7162_v32, %v7162_v32  ;;  %v6196_v32 = vld [vmem:[#allocation4 + $0xfc] ss:$40 sps:$4 sm:$0xff]  }
  0x86   :  { %4090 = vmatpush1.bf16.msra.mxu1 %v6085_v17  ;;  %4050 = vmatprep.subr.bf16.mxu0 %v6090_v18  ;;  %v7185_v17 = vcombine.low %v7167_v33, %v7167_v33  ;;  %v6170_v18 = vld [vmem:[#allocation4 + $0x238] ss:$40 sps:$4 sm:$0xff]   ;;  %v6199_v33 = vld [vmem:[#allocation4 + $0x5fc] ss:$40 sps:$4 sm:$0xff]  }
  0x87   :  { %4091 = vmatprep.subr.bf16.mxu1 %v6093_v19  ;;  %v6173_v19 = vld [vmem:[#allocation4 + $0x738] ss:$40 sps:$4 sm:$0xff]  }
  0x89   :  { %4051 = vmatpush1.bf16.msra.mxu0 %v6088_v20  ;;  %v6178_v20 = vld [vmem:[#allocation4 + $0x1ec] ss:$40 sps:$4 sm:$0xff]  }
  0x8a   :  { %4092 = vmatpush1.bf16.msra.mxu1 %v6091_v21  ;;  %4052 = vmatprep.subr.bf16.mxu0 %v6096_v22  ;;  %v6181_v21 = vld [vmem:[#allocation4 + $0x6ec] ss:$40 sps:$4 sm:$0xff]   ;;  %v6176_v22 = vld [vmem:[#allocation4 + $0x1e8] ss:$40 sps:$4 sm:$0xff]  }
  0x8b   :  { %4093 = vmatprep.subr.bf16.mxu1 %v6099_v23  ;;  %v6179_v23 = vld [vmem:[#allocation4 + $0x6e8] ss:$40 sps:$4 sm:$0xff]  }
  0x8d   :  { %4053 = vmatpush1.bf16.msra.mxu0 %v6094_v24  ;;  %v6184_v24 = vld [vmem:[#allocation4 + $0x19c] ss:$40 sps:$4 sm:$0xff]  }
  0x8e   :  { %4094 = vmatpush1.bf16.msra.mxu1 %v6097_v25  ;;  %4054 = vmatprep.subr.bf16.mxu0 %v6102_v26  ;;  %v6187_v25 = vld [vmem:[#allocation4 + $0x69c] ss:$40 sps:$4 sm:$0xff]   ;;  %v6182_v26 = vld [vmem:[#allocation4 + $0x198] ss:$40 sps:$4 sm:$0xff]  }
  0x8f   :  { %4095 = vmatprep.subr.bf16.mxu1 %v6105_v27  ;;  %v6185_v27 = vld [vmem:[#allocation4 + $0x698] ss:$40 sps:$4 sm:$0xff]  }
  0x91   :  { %4055 = vmatpush1.bf16.msra.mxu0 %v6100_v28  ;;  %v6190_v28 = vld [vmem:[#allocation4 + $0x14c] ss:$40 sps:$4 sm:$0xff]  }
  0x92   :  { %4096 = vmatpush1.bf16.msra.mxu1 %v6103_v29  ;;  %4056 = vmatprep.subr.bf16.mxu0 %v6108_v30  ;;  %v6193_v29 = vld [vmem:[#allocation4 + $0x64c] ss:$40 sps:$4 sm:$0xff]   ;;  %v6188_v30 = vld [vmem:[#allocation4 + $0x148] ss:$40 sps:$4 sm:$0xff]  }
  0x93   :  { %4097 = vmatprep.subr.bf16.mxu1 %v6111_v31  ;;  %v6191_v31 = vld [vmem:[#allocation4 + $0x648] ss:$40 sps:$4 sm:$0xff]  }
  0x95   :  { %4057 = vmatpush1.bf16.msra.mxu0 %v6106_v34  ;;  %v6194_v34 = vld [vmem:[#allocation4 + $0xf8] ss:$40 sps:$4 sm:$0xff]  }
  0x96   :  { %4098 = vmatpush1.bf16.msra.mxu1 %v6109_v35  ;;  %4058 = vmatprep.subr.bf16.mxu0 %v6114_v38  ;;  %v6197_v35 = vld [vmem:[#allocation4 + $0x5f8] ss:$40 sps:$4 sm:$0xff]   ;;  %v6202_v38 = vld [vmem:[#allocation4 + $0xac] ss:$40 sps:$4 sm:$0xff]  }
  0x97   :  { %4099 = vmatprep.subr.bf16.mxu1 %v6117_v39  ;;  %v6205_v39 = vld [vmem:[#allocation4 + $0x5ac] ss:$40 sps:$4 sm:$0xff]  }
  0x99   :  { %4059 = vmatpush1.bf16.msra.mxu0 %v6112_v40  ;;  %v6200_v40 = vld [vmem:[#allocation4 + $0xa8] ss:$40 sps:$4 sm:$0xff]  }
  0x9a   :  { %4100 = vmatpush1.bf16.msra.mxu1 %v6115_v41  ;;  %4060 = vmatprep.subr.bf16.mxu0 %v6120_v42  ;;  %v6203_v41 = vld [vmem:[#allocation4 + $0x5a8] ss:$40 sps:$4 sm:$0xff]   ;;  %v6208_v42 = vld [vmem:[#allocation4 + $0x5c] ss:$40 sps:$4 sm:$0xff]  }
  0x9b   :  { %4101 = vmatprep.subr.bf16.mxu1 %v6123_v43  ;;  %v6211_v43 = vld [vmem:[#allocation4 + $0x55c] ss:$40 sps:$4 sm:$0xff]  }
  0x9d   :  { %4061 = vmatpush2.bf16.msra.mxu0 %v6118_v44  ;;  %v6206_v44 = vld [vmem:[#allocation4 + $0x58] ss:$40 sps:$4 sm:$0xff]  }
  0x9e   :  { %4102 = vmatpush2.bf16.msra.mxu1 %v6121_v45  ;;  %4062 = vmatprep.subr.bf16.mxu0 %v6126_v46  ;;  %v6209_v45 = vld [vmem:[#allocation4 + $0x558] ss:$40 sps:$4 sm:$0xff]   ;;  %v6214_v46 = vld [vmem:[#allocation4 + $0xc] ss:$40 sps:$4 sm:$0xff]  }
  0x9f   :  { %4103 = vmatprep.subr.bf16.mxu1 %v6129_v48  ;;  %v6217_v48 = vld [vmem:[#allocation4 + $0x50c] ss:$40 sps:$4 sm:$0xff]  }
  0xa1   :  { %4063 = vmatpush2.bf16.msra.mxu0 %v6124_v49  ;;  %v6212_v49 = vld [vmem:[#allocation4 + $0x8] ss:$40 sps:$4 sm:$0xff]  }
  0xa2   :  { %4104 = vmatpush2.bf16.msra.mxu1 %v6127_v50  ;;  %4064 = vmatprep.subr.bf16.mxu0 %v6132_v52  ;;  %v6215_v50 = vld [vmem:[#allocation4 + $0x508] ss:$40 sps:$4 sm:$0xff]   ;;  %v6220_v52 = vld [vmem:[#allocation4 + $0x4bc] ss:$40 sps:$4 sm:$0xff]  }
  0xa3   :  { %4105 = vmatprep.subr.bf16.mxu1 %v6135_v53  ;;  %v6223_v53 = vld [vmem:[#allocation4 + $0x9bc] ss:$40 sps:$4 sm:$0xff]  }
  0xa5   :  { %4065 = vmatpush2.bf16.msra.mxu0 %v6130_v54  ;;  %v6218_v54 = vld [vmem:[#allocation4 + $0x4b8] ss:$40 sps:$4 sm:$0xff]  }
  0xa6   :  { %4106 = vmatpush2.bf16.msra.mxu1 %v6133_v55  ;;  %4066 = vmatprep.subr.bf16.mxu0 %v6138_v56  ;;  %v6221_v55 = vld [vmem:[#allocation4 + $0x9b8] ss:$40 sps:$4 sm:$0xff]   ;;  %v6226_v56 = vld [vmem:[#allocation4 + $0x46c] ss:$40 sps:$4 sm:$0xff]  }
  0xa7   :  { %4107 = vmatprep.subr.bf16.mxu1 %v6141_v57  ;;  %v6229_v57 = vld [vmem:[#allocation4 + $0x96c] ss:$40 sps:$4 sm:$0xff]  }
  0xa9   :  { %4067 = vmatpush2.bf16.msra.mxu0 %v6136_v58  ;;  %v6224_v58 = vld [vmem:[#allocation4 + $0x468] ss:$40 sps:$4 sm:$0xff]  }
  0xaa   :  { %4108 = vmatpush2.bf16.msra.mxu1 %v6139_v59  ;;  %4068 = vmatprep.subr.bf16.mxu0 %v6144_v60  ;;  %v6227_v59 = vld [vmem:[#allocation4 + $0x968] ss:$40 sps:$4 sm:$0xff]   ;;  %v6232_v60 = vld [vmem:[#allocation4 + $0x41c] ss:$40 sps:$4 sm:$0xff]  }
  0xab   :  { %4109 = vmatprep.subr.bf16.mxu1 %v6147_v61  ;;  %v6235_v61 = vld [vmem:[#allocation4 + $0x91c] ss:$40 sps:$4 sm:$0xff]  }
  0xad   :  { %4069 = vmatpush2.bf16.msra.mxu0 %v6142_v62  ;;  %v6230_v62 = vld [vmem:[#allocation4 + $0x418] ss:$40 sps:$4 sm:$0xff]  }
  0xae   :  { %4110 = vmatpush2.bf16.msra.mxu1 %v6145_v63  ;;  %4070 = vmatprep.subr.bf16.mxu0 %v6150_v0  ;;  %v6233_v63 = vld [vmem:[#allocation4 + $0x918] ss:$40 sps:$4 sm:$0xff]   ;;  %v6238_v0 = vld [vmem:[#allocation4 + $0x3cc] ss:$40 sps:$4 sm:$0xff]  }
  0xaf   :  { %4111 = vmatprep.subr.bf16.mxu1 %v6153_v1  ;;  %v6241_v1 = vld [vmem:[#allocation4 + $0x8cc] ss:$40 sps:$4 sm:$0xff]  }
  0xb1   :  { %4071 = vmatpush2.bf16.msra.mxu0 %v6148_v2  ;;  %v6236_v2 = vld [vmem:[#allocation4 + $0x3c8] ss:$40 sps:$4 sm:$0xff]  }
  0xb2   :  { %4112 = vmatpush2.bf16.msra.mxu1 %v6151_v3  ;;  %4072 = vmatprep.subr.bf16.mxu0 %v6156_v4  ;;  %v6239_v3 = vld [vmem:[#allocation4 + $0x8c8] ss:$40 sps:$4 sm:$0xff]   ;;  %v6244_v4 = vld [vmem:[#allocation4 + $0x37c] ss:$40 sps:$4 sm:$0xff]  }
  0xb3   :  { %4113 = vmatprep.subr.bf16.mxu1 %v6159_v5  ;;  %v6247_v5 = vld [vmem:[#allocation4 + $0x87c] ss:$40 sps:$4 sm:$0xff]  }
  0xb5   :  { %4073 = vmatpush2.bf16.msra.mxu0 %v6154_v8  ;;  %v6242_v8 = vld [vmem:[#allocation4 + $0x378] ss:$40 sps:$4 sm:$0xff]  }
  0xb6   :  { %4114 = vmatpush2.bf16.msra.mxu1 %v6157_v9  ;;  %4074 = vmatprep.subr.bf16.mxu0 %v6162_v10  ;;  %v6245_v9 = vld [vmem:[#allocation4 + $0x878] ss:$40 sps:$4 sm:$0xff]   ;;  %v6250_v10 = vld [vmem:[#allocation4 + $0x32c] ss:$40 sps:$4 sm:$0xff]  }
  0xb7   :  { %4115 = vmatprep.subr.bf16.mxu1 %v6165_v11  ;;  %v6253_v11 = vld [vmem:[#allocation4 + $0x82c] ss:$40 sps:$4 sm:$0xff]  }
  0xb9   :  { %4075 = vmatpush2.bf16.msra.mxu0 %v6160_v12  ;;  %v6248_v12 = vld [vmem:[#allocation4 + $0x328] ss:$40 sps:$4 sm:$0xff]  }
  0xba   :  { %4116 = vmatpush2.bf16.msra.mxu1 %v6163_v13  ;;  %4126 = vmatprep.subr.bf16.mxu0 %v6172_v14  ;;  %v6251_v13 = vld [vmem:[#allocation4 + $0x828] ss:$40 sps:$4 sm:$0xff]   ;;  %v6256_v14 = vld [vmem:[#allocation4 + $0x2dc] ss:$40 sps:$4 sm:$0xff]  }
  0xbb   :  { %4167 = vmatprep.subr.bf16.mxu1 %v6175_v15  ;;  %v6259_v15 = vld [vmem:[#allocation4 + $0x7dc] ss:$40 sps:$4 sm:$0xff]  }
  0xbc   :  { %4077 = vmatmul.mubr.bf16.vlgmr.msra.gmra.mxu0 %v7181_v16 }
  0xbd   :  { %4118 = vmatmul.mubr.bf16.vlgmr.msra.gmra.mxu1 %v7185_v17  ;;  %4127 = vmatpush1.bf16.msra.mxu0 %v6170_v18  ;;  %v6254_v18 = vld [vmem:[#allocation4 + $0x2d8] ss:$40 sps:$4 sm:$0xff]  }
  0xbe   :  { %4168 = vmatpush1.bf16.msra.mxu1 %v6173_v19  ;;  %4128 = vmatprep.subr.bf16.mxu0 %v6178_v20  ;;  %v6257_v19 = vld [vmem:[#allocation4 + $0x7d8] ss:$40 sps:$4 sm:$0xff]   ;;  %v6262_v20 = vld [vmem:[#allocation4 + $0x28c] ss:$40 sps:$4 sm:$0xff]  }
  0xbf   :  { %4169 = vmatprep.subr.bf16.mxu1 %v6181_v21  ;;  %4158 = vmatprep.mubr.bf16.mxu0 %v7144_v47  ;;  %v6265_v21 = vld [vmem:[#allocation4 + $0x78c] ss:$40 sps:$4 sm:$0xff]  }
  0xc0   :  { %4199 = vmatprep.mubr.bf16.mxu1 %v7149_v51 }
  0xc1   :  { %4129 = vmatpush1.bf16.msra.mxu0 %v6176_v22  ;;  %v6260_v22 = vld [vmem:[#allocation4 + $0x288] ss:$40 sps:$4 sm:$0xff]  }
  0xc2   :  { %4170 = vmatpush1.bf16.msra.mxu1 %v6179_v23  ;;  %4130 = vmatprep.subr.bf16.mxu0 %v6184_v24  ;;  %v6263_v23 = vld [vmem:[#allocation4 + $0x788] ss:$40 sps:$4 sm:$0xff]   ;;  %v6268_v24 = vld [vmem:[#allocation4 + $0xc3c] ss:$40 sps:$4 sm:$0xff]  }
  0xc3   :  { %4171 = vmatprep.subr.bf16.mxu1 %v6187_v25  ;;  %v6271_v25 = vld [vmem:[#allocation4 + $0x113c] ss:$40 sps:$4 sm:$0xff]  }
  0xc5   :  { %4131 = vmatpush1.bf16.msra.mxu0 %v6182_v26  ;;  %v6266_v26 = vld [vmem:[#allocation4 + $0xc38] ss:$40 sps:$4 sm:$0xff]  }
  0xc6   :  { %4172 = vmatpush1.bf16.msra.mxu1 %v6185_v27  ;;  %4132 = vmatprep.subr.bf16.mxu0 %v6190_v28  ;;  %v6269_v27 = vld [vmem:[#allocation4 + $0x1138] ss:$40 sps:$4 sm:$0xff]   ;;  %v6274_v28 = vld [vmem:[#allocation4 + $0xbec] ss:$40 sps:$4 sm:$0xff]  }
  0xc7   :  { %4173 = vmatprep.subr.bf16.mxu1 %v6193_v29  ;;  %v6277_v29 = vld [vmem:[#allocation4 + $0x10ec] ss:$40 sps:$4 sm:$0xff]  }
  0xc9   :  { %4133 = vmatpush1.bf16.msra.mxu0 %v6188_v30  ;;  %v6272_v30 = vld [vmem:[#allocation4 + $0xbe8] ss:$40 sps:$4 sm:$0xff]  }
  0xca   :  { %4174 = vmatpush1.bf16.msra.mxu1 %v6191_v31  ;;  %4134 = vmatprep.subr.bf16.mxu0 %v6196_v32  ;;  %v6275_v31 = vld [vmem:[#allocation4 + $0x10e8] ss:$40 sps:$4 sm:$0xff]   ;;  %v6280_v32 = vld [vmem:[#allocation4 + $0xb9c] ss:$40 sps:$4 sm:$0xff]  }
  0xcb   :  { %4175 = vmatprep.subr.bf16.mxu1 %v6199_v33  ;;  %v6283_v33 = vld [vmem:[#allocation4 + $0x109c] ss:$40 sps:$4 sm:$0xff]  }
  0xcd   :  { %4135 = vmatpush1.bf16.msra.mxu0 %v6194_v34  ;;  %v6278_v34 = vld [vmem:[#allocation4 + $0xb98] ss:$40 sps:$4 sm:$0xff]  }
  0xce   :  { %4176 = vmatpush1.bf16.msra.mxu1 %v6197_v35  ;;  %4136 = vmatprep.subr.bf16.mxu0 %v6202_v38  ;;  %v6281_v35 = vld [vmem:[#allocation4 + $0x1098] ss:$40 sps:$4 sm:$0xff]   ;;  %v6286_v38 = vld [vmem:[#allocation4 + $0xb4c] ss:$40 sps:$4 sm:$0xff]  }
  0xcf   :  { %4177 = vmatprep.subr.bf16.mxu1 %v6205_v39  ;;  %v6289_v39 = vld [vmem:[#allocation4 + $0x104c] ss:$40 sps:$4 sm:$0xff]  }
  0xd1   :  { %4137 = vmatpush1.bf16.msra.mxu0 %v6200_v40  ;;  %v6284_v40 = vld [vmem:[#allocation4 + $0xb48] ss:$40 sps:$4 sm:$0xff]  }
  0xd2   :  { %4178 = vmatpush1.bf16.msra.mxu1 %v6203_v41  ;;  %4138 = vmatprep.subr.bf16.mxu0 %v6208_v42  ;;  %v6287_v41 = vld [vmem:[#allocation4 + $0x1048] ss:$40 sps:$4 sm:$0xff]   ;;  %v6292_v42 = vld [vmem:[#allocation4 + $0xafc] ss:$40 sps:$4 sm:$0xff]  }
  0xd3   :  { %4179 = vmatprep.subr.bf16.mxu1 %v6211_v43  ;;  %v6295_v43 = vld [vmem:[#allocation4 + $0xffc] ss:$40 sps:$4 sm:$0xff]  }
  0xd5   :  { %4139 = vmatpush1.bf16.msra.mxu0 %v6206_v44  ;;  %v6290_v44 = vld [vmem:[#allocation4 + $0xaf8] ss:$40 sps:$4 sm:$0xff]  }
  0xd6   :  { %4180 = vmatpush1.bf16.msra.mxu1 %v6209_v45  ;;  %4140 = vmatprep.subr.bf16.mxu0 %v6214_v46  ;;  %v6293_v45 = vld [vmem:[#allocation4 + $0xff8] ss:$40 sps:$4 sm:$0xff]   ;;  %v6298_v46 = vld [vmem:[#allocation4 + $0xaac] ss:$40 sps:$4 sm:$0xff]  }
  0xd7   :  { %4181 = vmatprep.subr.bf16.mxu1 %v6217_v48  ;;  %v6301_v48 = vld [vmem:[#allocation4 + $0xfac] ss:$40 sps:$4 sm:$0xff]  }
  0xd9   :  { %4141 = vmatpush1.bf16.msra.mxu0 %v6212_v49  ;;  %v6296_v49 = vld [vmem:[#allocation4 + $0xaa8] ss:$40 sps:$4 sm:$0xff]  }
  0xda   :  { %4182 = vmatpush1.bf16.msra.mxu1 %v6215_v50  ;;  %4142 = vmatprep.subr.bf16.mxu0 %v6220_v52  ;;  %v6299_v50 = vld [vmem:[#allocation4 + $0xfa8] ss:$40 sps:$4 sm:$0xff]   ;;  %v6304_v52 = vld [vmem:[#allocation4 + $0xa5c] ss:$40 sps:$4 sm:$0xff]  }
  0xdb   :  { %4183 = vmatprep.subr.bf16.mxu1 %v6223_v53  ;;  %v6307_v53 = vld [vmem:[#allocation4 + $0xf5c] ss:$40 sps:$4 sm:$0xff]  }
  0xdd   :  { %4143 = vmatpush2.bf16.msra.mxu0 %v6218_v54  ;;  %v6302_v54 = vld [vmem:[#allocation4 + $0xa58] ss:$40 sps:$4 sm:$0xff]  }
  0xde   :  { %4184 = vmatpush2.bf16.msra.mxu1 %v6221_v55  ;;  %4144 = vmatprep.subr.bf16.mxu0 %v6226_v56  ;;  %v6305_v55 = vld [vmem:[#allocation4 + $0xf58] ss:$40 sps:$4 sm:$0xff]   ;;  %v6310_v56 = vld [vmem:[#allocation4 + $0xa0c] ss:$40 sps:$4 sm:$0xff]  }
  0xdf   :  { %4185 = vmatprep.subr.bf16.mxu1 %v6229_v57  ;;  %v6313_v57 = vld [vmem:[#allocation4 + $0xf0c] ss:$40 sps:$4 sm:$0xff]  }
  0xe1   :  { %4145 = vmatpush2.bf16.msra.mxu0 %v6224_v58  ;;  %v6308_v58 = vld [vmem:[#allocation4 + $0xa08] ss:$40 sps:$4 sm:$0xff]  }
  0xe2   :  { %4186 = vmatpush2.bf16.msra.mxu1 %v6227_v59  ;;  %4146 = vmatprep.subr.bf16.mxu0 %v6232_v60  ;;  %v6311_v59 = vld [vmem:[#allocation4 + $0xf08] ss:$40 sps:$4 sm:$0xff]   ;;  %v6316_v60 = vld [vmem:[#allocation4 + $0xebc] ss:$40 sps:$4 sm:$0xff]  }
  0xe3   :  { %4187 = vmatprep.subr.bf16.mxu1 %v6235_v61  ;;  %v6319_v61 = vld [vmem:[#allocation4 + $0x13bc] ss:$40 sps:$4 sm:$0xff]  }
  0xe5   :  { %4147 = vmatpush2.bf16.msra.mxu0 %v6230_v62  ;;  %v6314_v62 = vld [vmem:[#allocation4 + $0xeb8] ss:$40 sps:$4 sm:$0xff]  }
  0xe6   :  { %4188 = vmatpush2.bf16.msra.mxu1 %v6233_v63  ;;  %4148 = vmatprep.subr.bf16.mxu0 %v6238_v0  ;;  %v6317_v63 = vld [vmem:[#allocation4 + $0x13b8] ss:$40 sps:$4 sm:$0xff]   ;;  %v6322_v0 = vld [vmem:[#allocation4 + $0xe6c] ss:$40 sps:$4 sm:$0xff]  }
  0xe7   :  { %4189 = vmatprep.subr.bf16.mxu1 %v6241_v1  ;;  %v6325_v1 = vld [vmem:[#allocation4 + $0x136c] ss:$40 sps:$4 sm:$0xff]  }
  0xe9   :  { %4149 = vmatpush2.bf16.msra.mxu0 %v6236_v2  ;;  %v6320_v2 = vld [vmem:[#allocation4 + $0xe68] ss:$40 sps:$4 sm:$0xff]  }
  0xea   :  { %4190 = vmatpush2.bf16.msra.mxu1 %v6239_v3  ;;  %4150 = vmatprep.subr.bf16.mxu0 %v6244_v4  ;;  %v6323_v3 = vld [vmem:[#allocation4 + $0x1368] ss:$40 sps:$4 sm:$0xff]   ;;  %v6328_v4 = vld [vmem:[#allocation4 + $0xe1c] ss:$40 sps:$4 sm:$0xff]  }
  0xeb   :  { %4191 = vmatprep.subr.bf16.mxu1 %v6247_v5  ;;  %v6331_v5 = vld [vmem:[#allocation4 + $0x131c] ss:$40 sps:$4 sm:$0xff]  }
  0xed   :  { %4151 = vmatpush2.bf16.msra.mxu0 %v6242_v8  ;;  %v6326_v8 = vld [vmem:[#allocation4 + $0xe18] ss:$40 sps:$4 sm:$0xff]  }
  0xee   :  { %4192 = vmatpush2.bf16.msra.mxu1 %v6245_v9  ;;  %4152 = vmatprep.subr.bf16.mxu0 %v6250_v10  ;;  %v6329_v9 = vld [vmem:[#allocation4 + $0x1318] ss:$40 sps:$4 sm:$0xff]   ;;  %v6334_v10 = vld [vmem:[#allocation4 + $0xdcc] ss:$40 sps:$4 sm:$0xff]  }
  0xef   :  { %4193 = vmatprep.subr.bf16.mxu1 %v6253_v11  ;;  %v6337_v11 = vld [vmem:[#allocation4 + $0x12cc] ss:$40 sps:$4 sm:$0xff]  }
  0xf1   :  { %4153 = vmatpush2.bf16.msra.mxu0 %v6248_v12  ;;  %v6332_v12 = vld [vmem:[#allocation4 + $0xdc8] ss:$40 sps:$4 sm:$0xff]  }
  0xf2   :  { %4194 = vmatpush2.bf16.msra.mxu1 %v6251_v13  ;;  %4154 = vmatprep.subr.bf16.mxu0 %v6256_v14  ;;  %v6335_v13 = vld [vmem:[#allocation4 + $0x12c8] ss:$40 sps:$4 sm:$0xff]   ;;  %v6340_v14 = vld [vmem:[#allocation4 + $0xd7c] ss:$40 sps:$4 sm:$0xff]  }
  0xf3   :  { %4195 = vmatprep.subr.bf16.mxu1 %v6259_v15  ;;  %v6343_v15 = vld [vmem:[#allocation4 + $0x127c] ss:$40 sps:$4 sm:$0xff]  }
  0xf5   :  { %4155 = vmatpush2.bf16.msra.mxu0 %v6254_v18  ;;  %v6338_v18 = vld [vmem:[#allocation4 + $0xd78] ss:$40 sps:$4 sm:$0xff]  }
  0xf6   :  { %4196 = vmatpush2.bf16.msra.mxu1 %v6257_v19  ;;  %4156 = vmatprep.subr.bf16.mxu0 %v6262_v20  ;;  %v6341_v19 = vld [vmem:[#allocation4 + $0x1278] ss:$40 sps:$4 sm:$0xff]   ;;  %v6346_v20 = vld [vmem:[#allocation4 + $0xd2c] ss:$40 sps:$4 sm:$0xff]  }
  0xf7   :  { %4197 = vmatprep.subr.bf16.mxu1 %v6265_v21  ;;  %v6349_v21 = vld [vmem:[#allocation4 + $0x122c] ss:$40 sps:$4 sm:$0xff]  }
  0xf9   :  { %4157 = vmatpush2.bf16.msra.mxu0 %v6260_v22  ;;  %v6344_v22 = vld [vmem:[#allocation4 + $0xd28] ss:$40 sps:$4 sm:$0xff]  }
  0xfa   :  { %4198 = vmatpush2.bf16.msra.mxu1 %v6263_v23  ;;  %4208 = vmatprep.subr.bf16.mxu0 %v6268_v24  ;;  %v6347_v23 = vld [vmem:[#allocation4 + $0x1228] ss:$40 sps:$4 sm:$0xff]   ;;  %v6352_v24 = vld [vmem:[#allocation4 + $0xcdc] ss:$40 sps:$4 sm:$0xff]  }
  0xfb   :  { %4249 = vmatprep.subr.bf16.mxu1 %v6271_v25  ;;  %v6355_v25 = vld [vmem:[#allocation4 + $0x11dc] ss:$40 sps:$4 sm:$0xff]  }
  0xfc   :  { %4159 = vmatmul.mubr.bf16.vlgmr.msra.gmra.mxu0 %v7153_v6 }
  0xfd   :  { %4200 = vmatmul.mubr.bf16.vlgmr.msra.gmra.mxu1 %v7155_v7  ;;  %4209 = vmatpush1.bf16.msra.mxu0 %v6266_v26  ;;  %v6350_v26 = vld [vmem:[#allocation4 + $0xcd8] ss:$40 sps:$4 sm:$0xff]  }
  0xfe   :  { %4250 = vmatpush1.bf16.msra.mxu1 %v6269_v27  ;;  %4210 = vmatprep.subr.bf16.mxu0 %v6274_v28  ;;  %v6353_v27 = vld [vmem:[#allocation4 + $0x11d8] ss:$40 sps:$4 sm:$0xff]   ;;  %v6358_v28 = vld [vmem:[#allocation4 + $0xc8c] ss:$40 sps:$4 sm:$0xff]  }
  0xff   :  { %4251 = vmatprep.subr.bf16.mxu1 %v6277_v29  ;;  %4240 = vmatprep.mubr.bf16.mxu0 %v7171_v36  ;;  %v6361_v29 = vld [vmem:[#allocation4 + $0x118c] ss:$40 sps:$4 sm:$0xff]  }
 0x100   :  { %4281 = vmatprep.mubr.bf16.mxu1 %v7175_v37 }
 0x101   :  { %4211 = vmatpush1.bf16.msra.mxu0 %v6272_v30  ;;  %v6356_v30 = vld [vmem:[#allocation4 + $0xc88] ss:$40 sps:$4 sm:$0xff]  }
 0x102   :  { %4252 = vmatpush1.bf16.msra.mxu1 %v6275_v31  ;;  %4212 = vmatprep.subr.bf16.mxu0 %v6280_v32  ;;  %v6359_v31 = vld [vmem:[#allocation4 + $0x1188] ss:$40 sps:$4 sm:$0xff]   ;;  %v6364_v32 = vld [vmem:[#allocation4 + $0x244] ss:$40 sps:$4 sm:$0xff]  }
 0x103   :  { %4253 = vmatprep.subr.bf16.mxu1 %v6283_v33  ;;  %v6367_v33 = vld [vmem:[#allocation4 + $0x744] ss:$40 sps:$4 sm:$0xff]  }
 0x105   :  { %4213 = vmatpush1.bf16.msra.mxu0 %v6278_v34  ;;  %v6362_v34 = vld [vmem:[#allocation4 + $0x240] ss:$40 sps:$4 sm:$0xff]  }
 0x106   :  { %4254 = vmatpush1.bf16.msra.mxu1 %v6281_v35  ;;  %4214 = vmatprep.subr.bf16.mxu0 %v6286_v38  ;;  %v6365_v35 = vld [vmem:[#allocation4 + $0x740] ss:$40 sps:$4 sm:$0xff]   ;;  %v6370_v38 = vld [vmem:[#allocation4 + $0x1f4] ss:$40 sps:$4 sm:$0xff]  }
 0x107   :  { %4255 = vmatprep.subr.bf16.mxu1 %v6289_v39  ;;  %v6373_v39 = vld [vmem:[#allocation4 + $0x6f4] ss:$40 sps:$4 sm:$0xff]  }
 0x109   :  { %4215 = vmatpush1.bf16.msra.mxu0 %v6284_v40 }
 0x10a   :  { %4256 = vmatpush1.bf16.msra.mxu1 %v6287_v41  ;;  %4216 = vmatprep.subr.bf16.mxu0 %v6292_v42  ;;  %v6368_v42 = vld [vmem:[#allocation4 + $0x1f0] ss:$40 sps:$4 sm:$0xff]  }
 0x10b   :  { %4257 = vmatprep.subr.bf16.mxu1 %v6295_v43  ;;  %v6371_v43 = vld [vmem:[#allocation4 + $0x6f0] ss:$40 sps:$4 sm:$0xff]  }
 0x10d   :  { %4217 = vmatpush1.bf16.msra.mxu0 %v6290_v44 }
 0x10e   :  { %4258 = vmatpush1.bf16.msra.mxu1 %v6293_v45  ;;  %4218 = vmatprep.subr.bf16.mxu0 %v6298_v46  ;;  %v6376_v45 = vld [vmem:[#allocation4 + $0x1a4] ss:$40 sps:$4 sm:$0xff]  }
 0x10f   :  { %4259 = vmatprep.subr.bf16.mxu1 %v6301_v48 }
 0x111   :  { %4219 = vmatpush1.bf16.msra.mxu0 %v6296_v49  ;;  %v6379_v49 = vld [vmem:[#allocation4 + $0x6a4] ss:$40 sps:$4 sm:$0xff]  }
 0x112   :  { %4260 = vmatpush1.bf16.msra.mxu1 %v6299_v50  ;;  %4220 = vmatprep.subr.bf16.mxu0 %v6304_v52 }
 0x113   :  { %4261 = vmatprep.subr.bf16.mxu1 %v6307_v53 }
 0x115   :  { %4221 = vmatpush1.bf16.msra.mxu0 %v6302_v54  ;;  %v6374_v54 = vld [vmem:[#allocation4 + $0x1a0] ss:$40 sps:$4 sm:$0xff]  }
 0x116   :  { %4262 = vmatpush1.bf16.msra.mxu1 %v6305_v55  ;;  %4222 = vmatprep.subr.bf16.mxu0 %v6310_v56  ;;  %v6377_v55 = vld [vmem:[#allocation4 + $0x6a0] ss:$40 sps:$4 sm:$0xff]  }
 0x117   :  { %4263 = vmatprep.subr.bf16.mxu1 %v6313_v57 }
 0x119   :  { %4223 = vmatpush1.bf16.msra.mxu0 %v6308_v58  ;;  %v6382_v58 = vld [vmem:[#allocation4 + $0x154] ss:$40 sps:$4 sm:$0xff]  }
 0x11a   :  { %4264 = vmatpush1.bf16.msra.mxu1 %v6311_v59  ;;  %4224 = vmatprep.subr.bf16.mxu0 %v6316_v60  ;;  %v6385_v59 = vld [vmem:[#allocation4 + $0x654] ss:$40 sps:$4 sm:$0xff]   ;;  %v6380_v60 = vld [vmem:[#allocation4 + $0x150] ss:$40 sps:$4 sm:$0xff]  }
 0x11b   :  { %4265 = vmatprep.subr.bf16.mxu1 %v6319_v61  ;;  %v6383_v61 = vld [vmem:[#allocation4 + $0x650] ss:$40 sps:$4 sm:$0xff]  }
 0x11d   :  { %4225 = vmatpush2.bf16.msra.mxu0 %v6314_v62  ;;  %v6388_v62 = vld [vmem:[#allocation4 + $0x104] ss:$40 sps:$4 sm:$0xff]  }
 0x11e   :  { %4266 = vmatpush2.bf16.msra.mxu1 %v6317_v63  ;;  %4226 = vmatprep.subr.bf16.mxu0 %v6322_v0  ;;  %v6391_v63 = vld [vmem:[#allocation4 + $0x604] ss:$40 sps:$4 sm:$0xff]   ;;  %v6386_v0 = vld [vmem:[#allocation4 + $0x100] ss:$40 sps:$4 sm:$0xff]  }
 0x11f   :  { %4267 = vmatprep.subr.bf16.mxu1 %v6325_v1  ;;  %v6389_v1 = vld [vmem:[#allocation4 + $0x600] ss:$40 sps:$4 sm:$0xff]  }
 0x121   :  { %4227 = vmatpush2.bf16.msra.mxu0 %v6320_v2  ;;  %v6394_v2 = vld [vmem:[#allocation4 + $0xb4] ss:$40 sps:$4 sm:$0xff]  }
 0x122   :  { %4268 = vmatpush2.bf16.msra.mxu1 %v6323_v3  ;;  %4228 = vmatprep.subr.bf16.mxu0 %v6328_v4  ;;  %v6397_v3 = vld [vmem:[#allocation4 + $0x5b4] ss:$40 sps:$4 sm:$0xff]   ;;  %v6392_v4 = vld [vmem:[#allocation4 + $0xb0] ss:$40 sps:$4 sm:$0xff]  }
 0x123   :  { %4269 = vmatprep.subr.bf16.mxu1 %v6331_v5  ;;  %v6395_v5 = vld [vmem:[#allocation4 + $0x5b0] ss:$40 sps:$4 sm:$0xff]  }
 0x125   :  { %4229 = vmatpush2.bf16.msra.mxu0 %v6326_v8  ;;  %v6400_v8 = vld [vmem:[#allocation4 + $0x64] ss:$40 sps:$4 sm:$0xff]  }
 0x126   :  { %4270 = vmatpush2.bf16.msra.mxu1 %v6329_v9  ;;  %4230 = vmatprep.subr.bf16.mxu0 %v6334_v10  ;;  %v6403_v9 = vld [vmem:[#allocation4 + $0x564] ss:$40 sps:$4 sm:$0xff]   ;;  %v6398_v10 = vld [vmem:[#allocation4 + $0x60] ss:$40 sps:$4 sm:$0xff]  }
 0x127   :  { %4271 = vmatprep.subr.bf16.mxu1 %v6337_v11  ;;  %v6401_v11 = vld [vmem:[#allocation4 + $0x560] ss:$40 sps:$4 sm:$0xff]  }
 0x129   :  { %4231 = vmatpush2.bf16.msra.mxu0 %v6332_v12  ;;  %v6406_v12 = vld [vmem:[#allocation4 + $0x14] ss:$40 sps:$4 sm:$0xff]  }
 0x12a   :  { %4272 = vmatpush2.bf16.msra.mxu1 %v6335_v13  ;;  %4232 = vmatprep.subr.bf16.mxu0 %v6340_v14  ;;  %v6409_v13 = vld [vmem:[#allocation4 + $0x514] ss:$40 sps:$4 sm:$0xff]   ;;  %v6404_v14 = vld [vmem:[#allocation4 + $0x10] ss:$40 sps:$4 sm:$0xff]  }
 0x12b   :  { %4273 = vmatprep.subr.bf16.mxu1 %v6343_v15  ;;  %v6407_v15 = vld [vmem:[#allocation4 + $0x510] ss:$40 sps:$4 sm:$0xff]  }
 0x12d   :  { %4233 = vmatpush2.bf16.msra.mxu0 %v6338_v18  ;;  %v6412_v18 = vld [vmem:[#allocation4 + $0x4c4] ss:$40 sps:$4 sm:$0xff]  }
 0x12e   :  { %4274 = vmatpush2.bf16.msra.mxu1 %v6341_v19  ;;  %4234 = vmatprep.subr.bf16.mxu0 %v6346_v20  ;;  %v6415_v19 = vld [vmem:[#allocation4 + $0x9c4] ss:$40 sps:$4 sm:$0xff]   ;;  %v6410_v20 = vld [vmem:[#allocation4 + $0x4c0] ss:$40 sps:$4 sm:$0xff]  }
 0x12f   :  { %4275 = vmatprep.subr.bf16.mxu1 %v6349_v21  ;;  %v6413_v21 = vld [vmem:[#allocation4 + $0x9c0] ss:$40 sps:$4 sm:$0xff]  }
 0x131   :  { %4235 = vmatpush2.bf16.msra.mxu0 %v6344_v22  ;;  %v6418_v22 = vld [vmem:[#allocation4 + $0x474] ss:$40 sps:$4 sm:$0xff]  }
 0x132   :  { %4276 = vmatpush2.bf16.msra.mxu1 %v6347_v23  ;;  %4236 = vmatprep.subr.bf16.mxu0 %v6352_v24  ;;  %v6421_v23 = vld [vmem:[#allocation4 + $0x974] ss:$40 sps:$4 sm:$0xff]   ;;  %v6416_v24 = vld [vmem:[#allocation4 + $0x470] ss:$40 sps:$4 sm:$0xff]  }
 0x133   :  { %4277 = vmatprep.subr.bf16.mxu1 %v6355_v25  ;;  %v6419_v25 = vld [vmem:[#allocation4 + $0x970] ss:$40 sps:$4 sm:$0xff]  }
 0x135   :  { %4237 = vmatpush2.bf16.msra.mxu0 %v6350_v26  ;;  %v6424_v26 = vld [vmem:[#allocation4 + $0x424] ss:$40 sps:$4 sm:$0xff]  }
 0x136   :  { %4278 = vmatpush2.bf16.msra.mxu1 %v6353_v27  ;;  %4238 = vmatprep.subr.bf16.mxu0 %v6358_v28  ;;  %v6427_v27 = vld [vmem:[#allocation4 + $0x924] ss:$40 sps:$4 sm:$0xff]   ;;  %v6422_v28 = vld [vmem:[#allocation4 + $0x420] ss:$40 sps:$4 sm:$0xff]  }
 0x137   :  { %4279 = vmatprep.subr.bf16.mxu1 %v6361_v29  ;;  %v6425_v29 = vld [vmem:[#allocation4 + $0x920] ss:$40 sps:$4 sm:$0xff]  }
 0x139   :  { %4239 = vmatpush2.bf16.msra.mxu0 %v6356_v30  ;;  %v6430_v30 = vld [vmem:[#allocation4 + $0x3d4] ss:$40 sps:$4 sm:$0xff]  }
 0x13a   :  { %4280 = vmatpush2.bf16.msra.mxu1 %v6359_v31  ;;  %4290 = vmatprep.subr.bf16.mxu0 %v6364_v32  ;;  %v6433_v31 = vld [vmem:[#allocation4 + $0x8d4] ss:$40 sps:$4 sm:$0xff]   ;;  %v6428_v32 = vld [vmem:[#allocation4 + $0x3d0] ss:$40 sps:$4 sm:$0xff]  }
 0x13b   :  { %4331 = vmatprep.subr.bf16.mxu1 %v6367_v33  ;;  %v6431_v33 = vld [vmem:[#allocation4 + $0x8d0] ss:$40 sps:$4 sm:$0xff]  }
 0x13c   :  { %v3996_v40 = vpop.f32.mrf.mxu0  ;;  %4241 = vmatmul.mubr.bf16.vlgmr.msra.gmra.mxu0 %v7181_v16 }
 0x13d   :  { %v4037_v41 = vpop.f32.mrf.mxu1  ;;  %4282 = vmatmul.mubr.bf16.vlgmr.msra.gmra.mxu1 %v7185_v17  ;;  %4291 = vmatpush1.bf16.msra.mxu0 %v6362_v34  ;;  %v6436_v34 = vld [vmem:[#allocation4 + $0x384] ss:$40 sps:$4 sm:$0xff]  }
 0x13e   :  { %v7197_v44 = vadd.f32 %v4037_v41, %v3996_v40  ;;  %4332 = vmatpush1.bf16.msra.mxu1 %v6365_v35  ;;  %v3998_v46 = vpop.f32.mrf.mxu0  ;;  %4292 = vmatprep.subr.bf16.mxu0 %v6370_v38  ;;  %v6439_v35 = vld [vmem:[#allocation4 + $0x884] ss:$40 sps:$4 sm:$0xff]   ;;  %v6434_v38 = vld [vmem:[#allocation4 + $0x380] ss:$40 sps:$4 sm:$0xff]   ;;  %v6442_v40 = vld [vmem:[#allocation4 + $0x334] ss:$40 sps:$4 sm:$0xff]  }
 0x13f   :  { %v4039_v48 = vpop.f32.mrf.mxu1  ;;  %4333 = vmatprep.subr.bf16.mxu1 %v6373_v39  ;;  %4322 = vmatprep.mubr.bf16.mxu0 %v7144_v47  ;;  %v6437_v39 = vld [vmem:[#allocation4 + $0x880] ss:$40 sps:$4 sm:$0xff]   ;;  %v6445_v41 = vld [vmem:[#allocation4 + $0x834] ss:$40 sps:$4 sm:$0xff]  }
 0x140   :  { %v7199_v50 = vadd.f32 %v4039_v48, %v3998_v46  ;;  %4363 = vmatprep.mubr.bf16.mxu1 %v7149_v51  ;;  %v4000_v52 = vpop.f32.mrf.mxu0  ;;  %v6451_v46 = vld [vmem:[#allocation4 + $0x7e4] ss:$40 sps:$4 sm:$0xff]   ;;  %v6446_v48 = vld [vmem:[#allocation4 + $0x2e0] ss:$40 sps:$4 sm:$0xff]  }
 0x141   :  { %v4041_v53 = vpop.f32.mrf.mxu1  ;;  %4293 = vmatpush1.bf16.msra.mxu0 %v6368_v42  ;;  %v6440_v42 = vld [vmem:[#allocation4 + $0x330] ss:$40 sps:$4 sm:$0xff]   ;;  %v4847_v52 = vlaneseq }
 0x142   :  { %4334 = vmatpush1.bf16.msra.mxu1 %v6371_v43  ;;  %v4001_v56 = vpop.f32.mrf.mxu0  ;;  %4294 = vmatprep.subr.bf16.mxu0 %v6376_v45  ;;  %v6443_v43 = vld [vmem:[#allocation4 + $0x830] ss:$40 sps:$4 sm:$0xff]   ;;  %v6448_v45 = vld [vmem:[#allocation4 + $0x2e4] ss:$40 sps:$4 sm:$0xff]   ;;  %v6454_v53 = vld [vmem:[#allocation4 + $0x294] ss:$40 sps:$4 sm:$0xff]  }
 0x143   :  { %v4042_v57 = vpop.f32.mrf.mxu1  ;;  %4335 = vmatprep.subr.bf16.mxu1 %v6379_v49  ;;  %v6449_v49 = vld [vmem:[#allocation4 + $0x7e0] ss:$40 sps:$4 sm:$0xff]   ;;  %v6455_v56 = vld [vmem:[#allocation4 + $0x790] ss:$40 sps:$4 sm:$0xff]  }
 0x144   :  { %v7203_v57 = vshrl.u32 %v4847_v52, 7  ;;  %v6493_v52 = vld [vmem:[#allocation4 + $0xfb4] ss:$40 sps:$4 sm:$0xff]  }
 0x145   :  { %4295 = vmatpush1.bf16.msra.mxu0 %v6374_v54  ;;  %v6457_v54 = vld [vmem:[#allocation4 + $0x794] ss:$40 sps:$4 sm:$0xff]  }
 0x146   :  { %4336 = vmatpush1.bf16.msra.mxu1 %v6377_v55  ;;  %4296 = vmatprep.subr.bf16.mxu0 %v6382_v58  ;;  %v6452_v55 = vld [vmem:[#allocation4 + $0x290] ss:$40 sps:$4 sm:$0xff]   ;;  %v6460_v58 = vld [vmem:[#allocation4 + $0xc44] ss:$40 sps:$4 sm:$0xff]   ;;  %vm4917_vm0 = vcmp.lt.s32.totalorder %v7203_v57, 2 }
 0x147   :  { %4337 = vmatprep.subr.bf16.mxu1 %v6385_v59  ;;  %v6463_v59 = vld [vmem:[#allocation4 + $0x1144] ss:$40 sps:$4 sm:$0xff]  }
 0x149   :  { %4297 = vmatpush1.bf16.msra.mxu0 %v6380_v60  ;;  %v6458_v60 = vld [vmem:[#allocation4 + $0xc40] ss:$40 sps:$4 sm:$0xff]  }
 0x14a   :  { %4338 = vmatpush1.bf16.msra.mxu1 %v6383_v61  ;;  %4298 = vmatprep.subr.bf16.mxu0 %v6388_v62  ;;  %v6461_v61 = vld [vmem:[#allocation4 + $0x1140] ss:$40 sps:$4 sm:$0xff]  }
 0x14b   :  { %4339 = vmatprep.subr.bf16.mxu1 %v6391_v63  ;;  %v4843_v62 = vld [vmem:[#allocation6] sm:$0xff]  ;;  %v6466_v63 = vld [vmem:[#allocation4 + $0xbf4] ss:$40 sps:$4 sm:$0xff]  }
 0x14d   :  { %4299 = vmatpush1.bf16.msra.mxu0 %v6386_v0  ;;  %v6469_v0 = vld [vmem:[#allocation4 + $0x10f4] ss:$40 sps:$4 sm:$0xff]  }
 0x14e   :  { %4340 = vmatpush1.bf16.msra.mxu1 %v6389_v1  ;;  %4300 = vmatprep.subr.bf16.mxu0 %v6394_v2  ;;  %v7206_v1 = vsub.s32 0, %v7203_v57  ;;  %v7209_v2 = vsub.s32 1, %v7203_v57 }
 0x14f   :  { %4341 = vmatprep.subr.bf16.mxu1 %v6397_v3  ;;  %v6464_v3 = vld [vmem:[#allocation4 + $0xbf0] ss:$40 sps:$4 sm:$0xff]  }
 0x151   :  { %4301 = vmatpush1.bf16.msra.mxu0 %v6392_v4  ;;  %v6467_v4 = vld [vmem:[#allocation4 + $0x10f0] ss:$40 sps:$4 sm:$0xff]  }
 0x152   :  { %4342 = vmatpush1.bf16.msra.mxu1 %v6395_v5  ;;  %4302 = vmatprep.subr.bf16.mxu0 %v6400_v8 }
 0x153   :  { %4343 = vmatprep.subr.bf16.mxu1 %v6403_v9  ;;  %v6472_v9 = vld [vmem:[#allocation4 + $0xba4] ss:$40 sps:$4 sm:$0xff]  }
 0x155   :  { %4303 = vmatpush1.bf16.msra.mxu0 %v6398_v10  ;;  %v6475_v10 = vld [vmem:[#allocation4 + $0x10a4] ss:$40 sps:$4 sm:$0xff]  }
 0x156   :  { %4344 = vmatpush1.bf16.msra.mxu1 %v6401_v11  ;;  %4304 = vmatprep.subr.bf16.mxu0 %v6406_v12  ;;  %v4850_v12 = vrot.slane %v4843_v62, %v7206_v1 }
 0x157   :  { %4345 = vmatprep.subr.bf16.mxu1 %v6409_v13 }
 0x159   :  { %4305 = vmatpush1.bf16.msra.mxu0 %v6404_v14 }
 0x15a   :  { %4346 = vmatpush1.bf16.msra.mxu1 %v6407_v15  ;;  %4306 = vmatprep.subr.bf16.mxu0 %v6412_v18 }
 0x15b   :  { %4347 = vmatprep.subr.bf16.mxu1 %v6415_v19  ;;  %v4854_v19 = vrot.slane %v4843_v62, %v7209_v2 }
 0x15d   :  { %4307 = vmatpush2.bf16.msra.mxu0 %v6410_v20  ;;  %v6470_v20 = vld [vmem:[#allocation4 + $0xba0] ss:$40 sps:$4 sm:$0xff]  }
 0x15e   :  { %4348 = vmatpush2.bf16.msra.mxu1 %v6413_v21  ;;  %4308 = vmatprep.subr.bf16.mxu0 %v6418_v22  ;;  %v6473_v21 = vld [vmem:[#allocation4 + $0x10a0] ss:$40 sps:$4 sm:$0xff]  }
 0x15f   :  { %4349 = vmatprep.subr.bf16.mxu1 %v6421_v23  ;;  %v6478_v23 = vld [vmem:[#allocation4 + $0xb54] ss:$40 sps:$4 sm:$0xff]  }
 0x161   :  { %4309 = vmatpush2.bf16.msra.mxu0 %v6416_v24  ;;  %v6481_v24 = vld [vmem:[#allocation4 + $0x1054] ss:$40 sps:$4 sm:$0xff]  }
 0x162   :  { %4350 = vmatpush2.bf16.msra.mxu1 %v6419_v25  ;;  %4310 = vmatprep.subr.bf16.mxu0 %v6424_v26 }
 0x163   :  { %4351 = vmatprep.subr.bf16.mxu1 %v6427_v27 }
 0x165   :  { %4311 = vmatpush2.bf16.msra.mxu0 %v6422_v28 }
 0x166   :  { %4352 = vmatpush2.bf16.msra.mxu1 %v6425_v29  ;;  %4312 = vmatprep.subr.bf16.mxu0 %v6430_v30  ;;  %v6476_v30 = vld [vmem:[#allocation4 + $0xb50] ss:$40 sps:$4 sm:$0xff]  }
 0x167   :  { %4353 = vmatprep.subr.bf16.mxu1 %v6433_v31  ;;  %v6479_v31 = vld [vmem:[#allocation4 + $0x1050] ss:$40 sps:$4 sm:$0xff]  }
 0x169   :  { %4313 = vmatpush2.bf16.msra.mxu0 %v6428_v32  ;;  %v6484_v32 = vld [vmem:[#allocation4 + $0xb04] ss:$40 sps:$4 sm:$0xff]  }
 0x16a   :  { %4354 = vmatpush2.bf16.msra.mxu1 %v6431_v33  ;;  %4314 = vmatprep.subr.bf16.mxu0 %v6436_v34  ;;  %v6487_v33 = vld [vmem:[#allocation4 + $0x1004] ss:$40 sps:$4 sm:$0xff]  }
 0x16b   :  { %4355 = vmatprep.subr.bf16.mxu1 %v6439_v35 }
 0x16d   :  { %4315 = vmatpush2.bf16.msra.mxu0 %v6434_v38 }
 0x16e   :  { %4356 = vmatpush2.bf16.msra.mxu1 %v6437_v39  ;;  %4316 = vmatprep.subr.bf16.mxu0 %v6442_v40 }
 0x16f   :  { %4357 = vmatprep.subr.bf16.mxu1 %v6445_v41  ;;  %v6482_v41 = vld [vmem:[#allocation4 + $0xb00] ss:$40 sps:$4 sm:$0xff]  }
 0x171   :  { %4317 = vmatpush2.bf16.msra.mxu0 %v6440_v42  ;;  %v6485_v42 = vld [vmem:[#allocation4 + $0x1000] ss:$40 sps:$4 sm:$0xff]  }
 0x172   :  { %4358 = vmatpush2.bf16.msra.mxu1 %v6443_v43  ;;  %4318 = vmatprep.subr.bf16.mxu0 %v6448_v45 }
 0x173   :  { %4359 = vmatprep.subr.bf16.mxu1 %v6451_v46 }
 0x175   :  { %4319 = vmatpush2.bf16.msra.mxu0 %v6446_v48 }
 0x176   :  { %4360 = vmatpush2.bf16.msra.mxu1 %v6449_v49  ;;  %4320 = vmatprep.subr.bf16.mxu0 %v6454_v53  ;;  %v6490_v49 = vld [vmem:[#allocation4 + $0xab4] ss:$40 sps:$4 sm:$0xff]  }
 0x177   :  { %4361 = vmatprep.subr.bf16.mxu1 %v6457_v54 }
 0x179   :  { %4321 = vmatpush2.bf16.msra.mxu0 %v6452_v55 }
 0x17a   :  { %4362 = vmatpush2.bf16.msra.mxu1 %v6455_v56  ;;  %4372 = vmatprep.subr.bf16.mxu0 %v6460_v58  ;;  %v6488_v58 = vld [vmem:[#allocation4 + $0xab0] ss:$40 sps:$4 sm:$0xff]  }
 0x17b   :  { %4413 = vmatprep.subr.bf16.mxu1 %v6463_v59  ;;  %v6491_v59 = vld [vmem:[#allocation4 + $0xfb0] ss:$40 sps:$4 sm:$0xff]  }
 0x17c   :  { %v4078_v5 = vpop.f32.mrf.mxu0  ;;  %4323 = vmatmul.mubr.bf16.vlgmr.msra.gmra.mxu0 %v7153_v6 }
 0x17d   :  { %v4119_v8 = vpop.f32.mrf.mxu1  ;;  %4364 = vmatmul.mubr.bf16.vlgmr.msra.gmra.mxu1 %v7155_v7  ;;  %v4079_v11 = vadd.f32 %v4078_v5, %v7197_v44  ;;  %4373 = vmatpush1.bf16.msra.mxu0 %v6458_v60 }
 0x17e   :  { %4414 = vmatpush1.bf16.msra.mxu1 %v6461_v61  ;;  %v4080_v13 = vpop.f32.mrf.mxu0  ;;  %4374 = vmatprep.subr.bf16.mxu0 %v6466_v63 }
 0x17f   :  { %v4121_v14 = vpop.f32.mrf.mxu1  ;;  %4415 = vmatprep.subr.bf16.mxu1 %v6469_v0  ;;  %v4120_v15 = vadd.f32 %v4119_v8, %v4079_v11  ;;  %v4081_v18 = vadd.f32 %v4080_v13, %v7199_v50  ;;  %4404 = vmatprep.mubr.bf16.mxu0 %v7171_v36  ;;  %v6496_v0 = vld [vmem:[#allocation4 + $0xa64] ss:$40 sps:$4 sm:$0xff]   ;;  %v6497_v11 = vld [vmem:[#allocation4 + $0xf60] ss:$40 sps:$4 sm:$0xff]  }
 0x180   :  { %4445 = vmatprep.mubr.bf16.mxu1 %v7175_v37  ;;  %v4082_v44 = vpop.f32.mrf.mxu0 }
 0x181   :  { %v4123_v22 = vpop.f32.mrf.mxu1  ;;  %v7219_v25 = vadd.f32 %v4850_v12, %v4120_v15  ;;  %v4122_v26 = vadd.f32 %v4121_v14, %v4081_v18  ;;  %4375 = vmatpush1.bf16.msra.mxu0 %v6464_v3  ;;  %v6499_v3 = vld [vmem:[#allocation4 + $0xf64] ss:$40 sps:$4 sm:$0xff]   ;;  %v6502_v18 = vld [vmem:[#allocation4 + $0xa14] ss:$40 sps:$4 sm:$0xff]  }
 0x182   :  { %4416 = vmatpush1.bf16.msra.mxu1 %v6467_v4  ;;  %v4083_v50 = vpop.f32.mrf.mxu0  ;;  %4376 = vmatprep.subr.bf16.mxu0 %v6472_v9 }
 0x183   :  { %v4124_v27 = vpop.f32.mrf.mxu1  ;;  %4417 = vmatprep.subr.bf16.mxu1 %v6475_v10  ;;  %v4907_v28 = vmax.f32 %v7219_v25, 0.0  ;;  %v7223_v29 = vadd.f32 %v4854_v19, %v4122_v26  ;;  %v6494_v10 = vld [vmem:[#allocation4 + $0xa60] ss:$40 sps:$4 sm:$0xff]   ;;  %v6505_v19 = vld [vmem:[#allocation4 + $0xf14] ss:$40 sps:$4 sm:$0xff]  }
 0x185   :  { %v4918_v34 = vsel %vm4917_vm0, %v4907_v28, 0.0  ;;  %v4908_v35 = vmax.f32 %v7223_v29, 0.0  ;;  %4377 = vmatpush1.bf16.msra.mxu0 %v6470_v20  ;;  %v6542_v29 = vld [vmem:[#allocation4 + $0xce0] ss:$40 sps:$4 sm:$0xff]  }
 0x186   :  { %4418 = vmatpush1.bf16.msra.mxu1 %v6473_v21  ;;  %v4926_v38 = vrot.slane %v4918_v34, 4  ;;  %v4982_v39 = vmul.f32 %v4918_v34, %v4918_v34  ;;  %4378 = vmatprep.subr.bf16.mxu0 %v6478_v23  ;;  %v6500_v23 = vld [vmem:[#allocation4 + $0xa10] ss:$40 sps:$4 sm:$0xff]  }
 0x187   :  { %4419 = vmatprep.subr.bf16.mxu1 %v6481_v24  ;;  %v4919_v40 = vsel %vm4917_vm0, %v4908_v35, 0.0  ;;  %v6503_v24 = vld [vmem:[#allocation4 + $0xf10] ss:$40 sps:$4 sm:$0xff]  }
 0x188   :  { %v4927_v43 = vadd.f32 %v4926_v38, %v4918_v34  ;;  %v4990_v45 = vrot.slane %v4982_v39, 4  ;;  %v4932_v46 = vrot.slane %v4919_v40, 4  ;;  %v4983_v48 = vmul.f32 %v4919_v40, %v4919_v40 }
 0x189   :  { %4379 = vmatpush1.bf16.msra.mxu0 %v6476_v30  ;;  %v6508_v30 = vld [vmem:[#allocation4 + $0xec4] ss:$40 sps:$4 sm:$0xff]  }
 0x18a   :  { %4420 = vmatpush1.bf16.msra.mxu1 %v6479_v31  ;;  %v4928_v53 = vrot.slane %v4927_v43, 2  ;;  %v4991_v54 = vadd.f32 %v4990_v45, %v4982_v39  ;;  %v4933_v55 = vadd.f32 %v4932_v46, %v4919_v40  ;;  %v4996_v56 = vrot.slane %v4983_v48, 4  ;;  %4380 = vmatprep.subr.bf16.mxu0 %v6484_v32  ;;  %v6511_v31 = vld [vmem:[#allocation4 + $0x13c4] ss:$40 sps:$4 sm:$0xff]   ;;  %v6506_v39 = vld [vmem:[#allocation4 + $0xec0] ss:$40 sps:$4 sm:$0xff]  }
 0x18b   :  { %4421 = vmatprep.subr.bf16.mxu1 %v6487_v33  ;;  %v6509_v40 = vld [vmem:[#allocation4 + $0x13c0] ss:$40 sps:$4 sm:$0xff]  }
 0x18c   :  { %v4929_v60 = vadd.f32 %v4928_v53, %v4927_v43  ;;  %v4992_v61 = vrot.slane %v4991_v54, 2  ;;  %v4934_v62 = vrot.slane %v4933_v55, 2  ;;  %v4997_v63 = vadd.f32 %v4996_v56, %v4983_v48  ;;  %v6517_v43 = vld [vmem:[#allocation4 + $0x1374] ss:$40 sps:$4 sm:$0xff]   ;;  %v6512_v48 = vld [vmem:[#allocation4 + $0xe70] ss:$40 sps:$4 sm:$0xff]  }
 0x18d   :  { %4381 = vmatpush1.bf16.msra.mxu0 %v6482_v41  ;;  %v6523_v53 = vld [vmem:[#allocation4 + $0x1324] ss:$40 sps:$4 sm:$0xff]   ;;  %v6521_v56 = vld [vmem:[#allocation4 + $0x1320] ss:$40 sps:$4 sm:$0xff]  }
 0x18e   :  { %4422 = vmatpush1.bf16.msra.mxu1 %v6485_v42  ;;  %v4930_v4 = vrot.slane %v4929_v60, 1  ;;  %v4993_v5 = vadd.f32 %v4992_v61, %v4991_v54  ;;  %v4935_v8 = vadd.f32 %v4934_v62, %v4933_v55  ;;  %v4998_v9 = vrot.slane %v4997_v63, 2  ;;  %4382 = vmatprep.subr.bf16.mxu0 %v6490_v49  ;;  %v6514_v42 = vld [vmem:[#allocation4 + $0xe74] ss:$40 sps:$4 sm:$0xff]   ;;  %v6515_v49 = vld [vmem:[#allocation4 + $0x1370] ss:$40 sps:$4 sm:$0xff]  }
 0x18f   :  { %4423 = vmatprep.subr.bf16.mxu1 %v6493_v52  ;;  %v6520_v52 = vld [vmem:[#allocation4 + $0xe24] ss:$40 sps:$4 sm:$0xff]   ;;  %v6518_v55 = vld [vmem:[#allocation4 + $0xe20] ss:$40 sps:$4 sm:$0xff]   ;;  %v6527_v61 = vld [vmem:[#allocation4 + $0x12d0] ss:$40 sps:$4 sm:$0xff]  }
 0x190   :  { %v4931_v12 = vadd.f32 %v4930_v4, %v4929_v60  ;;  %v4994_v13 = vrot.slane %v4993_v5, 1  ;;  %v4936_v14 = vrot.slane %v4935_v8, 1  ;;  %v4999_v15 = vadd.f32 %v4998_v9, %v4997_v63  ;;  %v7242_v54 = vld [vmem:[#allocation8] sm:$0xff] }
 0x191   :  { %4383 = vmatpush1.bf16.msra.mxu0 %v6488_v58  ;;  %v6526_v58 = vld [vmem:[#allocation4 + $0xdd4] ss:$40 sps:$4 sm:$0xff]   ;;  %v6524_v60 = vld [vmem:[#allocation4 + $0xdd0] ss:$40 sps:$4 sm:$0xff]   ;;  %v5083_v62 = vrot.slane %v7242_v54, %v7206_v1  ;;  %v6532_v63 = vld [vmem:[#allocation4 + $0xd84] ss:$40 sps:$4 sm:$0xff]  }
 0x192   :  { %4424 = vmatpush1.bf16.msra.mxu1 %v6491_v59  ;;  %v7234_v20 = vmul.f32 0.5, %v4931_v12  ;;  %v4995_v21 = vadd.f32 %v4994_v13, %v4993_v5  ;;  %v4937_v44 = vadd.f32 %v4936_v14, %v4935_v8  ;;  %v5000_v22 = vrot.slane %v4999_v15, 1  ;;  %4384 = vmatprep.subr.bf16.mxu0 %v6496_v0  ;;  %v6529_v59 = vld [vmem:[#allocation4 + $0x12d4] ss:$40 sps:$4 sm:$0xff]   ;;  %v6535_v0 = vld [vmem:[#allocation4 + $0x1284] ss:$40 sps:$4 sm:$0xff]  }
 0x193   :  { %4425 = vmatprep.subr.bf16.mxu1 %v6499_v3  ;;  %v7246_v3 = vld [vmem:[#allocation9] sm:$0xff]  ;;  %v5087_v5 = vrot.slane %v7242_v54, %v7209_v2  ;;  %v6530_v8 = vld [vmem:[#allocation4 + $0xd80] ss:$40 sps:$4 sm:$0xff]  }
 0x194   :  { %v5038_v26 = vmul.f32 0.5, %v4995_v21  ;;  %v5046_v50 = vmul.f32 %v7234_v20, %v7234_v20  ;;  %v7238_v27 = vmul.f32 0.5, %v4937_v44  ;;  %v5001_v32 = vadd.f32 %v5000_v22, %v4999_v15  ;;  %v6533_v9 = vld [vmem:[#allocation4 + $0x1280] ss:$40 sps:$4 sm:$0xff]   ;;  %v6541_v12 = vld [vmem:[#allocation4 + $0x1234] ss:$40 sps:$4 sm:$0xff]  }
 0x195   :  { %4385 = vmatpush1.bf16.msra.mxu0 %v6494_v10  ;;  %v5128_v14 = vsub.f32 %v4907_v28, %v7234_v20  ;;  %v6536_v44 = vld [vmem:[#allocation4 + $0xd30] ss:$40 sps:$4 sm:$0xff]   ;;  %v5185_v20 = vrot.slane %v7246_v3, %v7209_v2 }
 0x196   :  { %4426 = vmatpush1.bf16.msra.mxu1 %v6497_v11  ;;  %v5054_v33 = vsub.f32 %v5038_v26, %v5046_v50  ;;  %v5047_v34 = vmul.f32 %v7238_v27, %v7238_v27  ;;  %4386 = vmatprep.subr.bf16.mxu0 %v6502_v18  ;;  %v5039_v38 = vmul.f32 0.5, %v5001_v32  ;;  %v6538_v11 = vld [vmem:[#allocation4 + $0xd34] ss:$40 sps:$4 sm:$0xff]   ;;  %v6539_v22 = vld [vmem:[#allocation4 + $0x1230] ss:$40 sps:$4 sm:$0xff]   ;;  %v5129_v25 = vsub.f32 %v4908_v35, %v7238_v27 }
 0x197   :  { %4427 = vmatprep.subr.bf16.mxu1 %v6505_v19  ;;  %v7254_v18 = vld [vmem:[#allocation11] sm:$0xff]  ;;  %v5181_v19 = vrot.slane %v7246_v3, %v7206_v1  ;;  %v6547_v26 = vld [vmem:[#allocation4 + $0x11e4] ss:$40 sps:$4 sm:$0xff]  }
 0x198   :  { %v5062_v41 = vadd.f32 1e-05, %v5054_v33  ;;  %v5055_v45 = vsub.f32 %v5039_v38, %v5047_v34  ;;  %v5235_v32 = vrot.slane %v7254_v18, %v7209_v2  ;;  %v6545_v35 = vld [vmem:[#allocation4 + $0x11e0] ss:$40 sps:$4 sm:$0xff]   ;;  %v6550_v27 = vld [vmem:[#allocation4 + $0xc94] ss:$40 sps:$4 sm:$0xff]  }
 0x199   :  { %4387 = vmatpush1.bf16.msra.mxu0 %v6500_v23  ;;  %v6553_v34 = vld [vmem:[#allocation4 + $0x1194] ss:$40 sps:$4 sm:$0xff]  }
 0x19a   :  { %4428 = vmatpush1.bf16.msra.mxu1 %v6503_v24  ;;  %6938 = vrsqrt.f32 %v5062_v41  ;;  %4388 = vmatprep.subr.bf16.mxu0 %v6508_v30  ;;  %v5063_v46 = vadd.f32 1e-05, %v5055_v45  ;;  %v6544_v24 = vld [vmem:[#allocation4 + $0xce4] ss:$40 sps:$4 sm:$0xff]   ;;  %v5231_v30 = vrot.slane %v7254_v18, %v7206_v1  ;;  %v6551_v41 = vld [vmem:[#allocation4 + $0x1190] ss:$40 sps:$4 sm:$0xff]  }
 0x19b   :  { %4429 = vmatprep.subr.bf16.mxu1 %v6511_v31  ;;  %v6559_v45 = vld [vmem:[#allocation4 + $0x74c] ss:$40 sps:$4 sm:$0xff]  }
 0x19c   :  { %6940 = vrsqrt.f32 %v5063_v46  ;;  %v6554_v46 = vld [vmem:[#allocation4 + $0x248] ss:$40 sps:$4 sm:$0xff]  }
 0x19d   :  { %4389 = vmatpush2.bf16.msra.mxu0 %v6506_v39 }
 0x19e   :  { %4430 = vmatpush2.bf16.msra.mxu1 %v6509_v40  ;;  %4390 = vmatprep.subr.bf16.mxu0 %v6514_v42  ;;  %v6548_v40 = vld [vmem:[#allocation4 + $0xc90] ss:$40 sps:$4 sm:$0xff]  }
 0x19f   :  { %4431 = vmatprep.subr.bf16.mxu1 %v6517_v43  ;;  %v6556_v43 = vld [vmem:[#allocation4 + $0x24c] ss:$40 sps:$4 sm:$0xff]  }
 0x1a1   :  { %4391 = vmatpush2.bf16.msra.mxu0 %v6512_v48  ;;  %v6557_v48 = vld [vmem:[#allocation4 + $0x748] ss:$40 sps:$4 sm:$0xff]  }
 0x1a2   :  { %4432 = vmatpush2.bf16.msra.mxu1 %v6515_v49  ;;  %4392 = vmatprep.subr.bf16.mxu0 %v6520_v52  ;;  %v6562_v49 = vld [vmem:[#allocation4 + $0x1fc] ss:$40 sps:$4 sm:$0xff]  }
 0x1a3   :  { %4433 = vmatprep.subr.bf16.mxu1 %v6523_v53  ;;  %v6565_v52 = vld [vmem:[#allocation4 + $0x6fc] ss:$40 sps:$4 sm:$0xff]   ;;  %v6560_v53 = vld [vmem:[#allocation4 + $0x1f8] ss:$40 sps:$4 sm:$0xff]  }
 0x1a5   :  { %4393 = vmatpush2.bf16.msra.mxu0 %v6518_v55 }
 0x1a6   :  { %4434 = vmatpush2.bf16.msra.mxu1 %v6521_v56  ;;  %4394 = vmatprep.subr.bf16.mxu0 %v6526_v58 }
 0x1a7   :  { %4435 = vmatprep.subr.bf16.mxu1 %v6529_v59  ;;  %v6939_v4 = vpop.eup %6938  ;;  %v6563_v59 = vld [vmem:[#allocation4 + $0x6f8] ss:$40 sps:$4 sm:$0xff]  }
 0x1a8   :  { %v5120_v10 = vmul.f32 %v6939_v4, %v5083_v62  ;;  %v6568_v62 = vld [vmem:[#allocation4 + $0x1ac] ss:$40 sps:$4 sm:$0xff]  }
 0x1a9   :  { %4395 = vmatpush2.bf16.msra.mxu0 %v6524_v60  ;;  %v6941_v13 = vpop.eup %6940 }
 0x1aa   :  { %4436 = vmatpush2.bf16.msra.mxu1 %v6527_v61  ;;  %v5139_v15 = vrot.slane %v5120_v10, %v7206_v1  ;;  %4396 = vmatprep.subr.bf16.mxu0 %v6532_v63  ;;  %v5121_v21 = vmul.f32 %v6941_v13, %v5087_v5  ;;  %v6571_v63 = vld [vmem:[#allocation4 + $0x6ac] ss:$40 sps:$4 sm:$0xff]   ;;  %v6577_v13 = vld [vmem:[#allocation4 + $0x65c] ss:$40 sps:$4 sm:$0xff]  }
 0x1ab   :  { %4437 = vmatprep.subr.bf16.mxu1 %v6535_v0 }
 0x1ac   :  { %v5168_v23 = vmul.f32 %v5139_v15, %v5128_v14  ;;  %v5143_v28 = vrot.slane %v5121_v21, %v7206_v1  ;;  %v6572_v14 = vld [vmem:[#allocation4 + $0x158] ss:$40 sps:$4 sm:$0xff]   ;;  %v6583_v21 = vld [vmem:[#allocation4 + $0x60c] ss:$40 sps:$4 sm:$0xff]  }
 0x1ad   :  { %4397 = vmatpush2.bf16.msra.mxu0 %v6530_v8  ;;  %v6566_v8 = vld [vmem:[#allocation4 + $0x1a8] ss:$40 sps:$4 sm:$0xff]   ;;  %v6575_v15 = vld [vmem:[#allocation4 + $0x658] ss:$40 sps:$4 sm:$0xff]  }
 0x1ae   :  { %4438 = vmatpush2.bf16.msra.mxu1 %v6533_v9  ;;  %4398 = vmatprep.subr.bf16.mxu0 %v6538_v11  ;;  %v5218_v50 = vadd.f32 %v5181_v19, %v5168_v23  ;;  %v5169_v31 = vmul.f32 %v5143_v28, %v5129_v25  ;;  %v6569_v9 = vld [vmem:[#allocation4 + $0x6a8] ss:$40 sps:$4 sm:$0xff]   ;;  %v6580_v19 = vld [vmem:[#allocation4 + $0x10c] ss:$40 sps:$4 sm:$0xff]   ;;  %v6586_v23 = vld [vmem:[#allocation4 + $0xbc] ss:$40 sps:$4 sm:$0xff]  }
 0x1af   :  { %4439 = vmatprep.subr.bf16.mxu1 %v6541_v12  ;;  %v6574_v12 = vld [vmem:[#allocation4 + $0x15c] ss:$40 sps:$4 sm:$0xff]   ;;  %v6587_v25 = vld [vmem:[#allocation4 + $0x5b8] ss:$40 sps:$4 sm:$0xff]   ;;  %v6592_v28 = vld [vmem:[#allocation4 + $0x6c] ss:$40 sps:$4 sm:$0xff]  }
 0x1b0   :  { %v5219_v33 = vadd.f32 %v5185_v20, %v5169_v31  ;;  %v5268_v38 = vmul.f32 %v5231_v30, %v5218_v50  ;;  %v6595_v20 = vld [vmem:[#allocation4 + $0x56c] ss:$40 sps:$4 sm:$0xff]   ;;  %v6590_v50 = vld [vmem:[#allocation4 + $0x68] ss:$40 sps:$4 sm:$0xff]   ;;  %v6598_v31 = vld [vmem:[#allocation4 + $0x1c] ss:$40 sps:$4 sm:$0xff]  }
 0x1b1   :  { %4399 = vmatpush2.bf16.msra.mxu0 %v6536_v44  ;;  %v6578_v44 = vld [vmem:[#allocation4 + $0x108] ss:$40 sps:$4 sm:$0xff]  }
 0x1b2   :  { %4440 = vmatpush2.bf16.msra.mxu1 %v6539_v22  ;;  %4400 = vmatprep.subr.bf16.mxu0 %v6544_v24  ;;  %v5269_v39 = vmul.f32 %v5235_v32, %v5219_v33  ;;  %v6581_v22 = vld [vmem:[#allocation4 + $0x608] ss:$40 sps:$4 sm:$0xff]   ;;  %v6589_v24 = vld [vmem:[#allocation4 + $0x5bc] ss:$40 sps:$4 sm:$0xff]   ;;  %v6596_v33 = vld [vmem:[#allocation4 + $0x18] ss:$40 sps:$4 sm:$0xff]  }
 0x1b3   :  { %4441 = vmatprep.subr.bf16.mxu1 %v6547_v26  ;;  %v6584_v26 = vld [vmem:[#allocation4 + $0xb8] ss:$40 sps:$4 sm:$0xff]   ;;  %v6593_v30 = vld [vmem:[#allocation4 + $0x568] ss:$40 sps:$4 sm:$0xff]   ;;  %v6601_v32 = vld [vmem:[#allocation4 + $0x51c] ss:$40 sps:$4 sm:$0xff]  }
 0x1b4   :  { %v7268_v42 = vadd.f32 %v5269_v39, %v5268_v38  ;;  %v6605_v38 = vld [vmem:[#allocation4 + $0x9c8] ss:$40 sps:$4 sm:$0xff]   ;;  %v6610_v39 = vld [vmem:[#allocation4 + $0x47c] ss:$40 sps:$4 sm:$0xff]  }
 0x1b5   :  { %4401 = vmatpush2.bf16.msra.mxu0 %v6542_v29  ;;  %v6599_v29 = vld [vmem:[#allocation4 + $0x518] ss:$40 sps:$4 sm:$0xff]  }
 0x1b6   :  { %4442 = vmatpush2.bf16.msra.mxu1 %v6545_v35  ;;  %4402 = vmatprep.subr.bf16.mxu0 %v6550_v27  ;;  %v6604_v35 = vld [vmem:[#allocation4 + $0x4cc] ss:$40 sps:$4 sm:$0xff]  }
 0x1b7   :  { %4443 = vmatprep.subr.bf16.mxu1 %v6553_v34  ;;  %v6607_v27 = vld [vmem:[#allocation4 + $0x9cc] ss:$40 sps:$4 sm:$0xff]   ;;  %v6602_v34 = vld [vmem:[#allocation4 + $0x4c8] ss:$40 sps:$4 sm:$0xff]  }
 0x1b9   :  { %4403 = vmatpush2.bf16.msra.mxu0 %v6548_v40  ;;  %v6613_v40 = vld [vmem:[#allocation4 + $0x97c] ss:$40 sps:$4 sm:$0xff]  }
 0x1ba   :  { %4444 = vmatpush2.bf16.msra.mxu1 %v6551_v41  ;;  %4454 = vmatprep.subr.bf16.mxu0 %v6556_v43  ;;  %v6608_v41 = vld [vmem:[#allocation4 + $0x478] ss:$40 sps:$4 sm:$0xff]  }
 0x1bb   :  { %4495 = vmatprep.subr.bf16.mxu1 %v6559_v45  ;;  %v6611_v43 = vld [vmem:[#allocation4 + $0x978] ss:$40 sps:$4 sm:$0xff]   ;;  %v6616_v45 = vld [vmem:[#allocation4 + $0x42c] ss:$40 sps:$4 sm:$0xff]  }
 0x1bc   :  { %v4160_v55 = vpop.f32.mrf.mxu0  ;;  %4405 = vmatmul.mubr.bf16.vlgmr.msra.gmra.mxu0 %v7181_v16 }
 0x1bd   :  { %v4201_v56 = vpop.f32.mrf.mxu1  ;;  %4446 = vmatmul.mubr.bf16.vlgmr.msra.gmra.mxu1 %v7185_v17  ;;  %4455 = vmatpush1.bf16.msra.mxu0 %v6554_v46  ;;  %v6619_v46 = vld [vmem:[#allocation4 + $0x92c] ss:$40 sps:$4 sm:$0xff]  }
 0x1be   :  { %v7272_v58 = vadd.f32 %v4201_v56, %v4160_v55  ;;  %4496 = vmatpush1.bf16.msra.mxu1 %v6557_v48  ;;  %v4162_v60 = vpop.f32.mrf.mxu0  ;;  %4456 = vmatprep.subr.bf16.mxu0 %v6562_v49  ;;  %v6614_v48 = vld [vmem:[#allocation4 + $0x428] ss:$40 sps:$4 sm:$0xff]   ;;  %v6620_v55 = vld [vmem:[#allocation4 + $0x3d8] ss:$40 sps:$4 sm:$0xff]  }
 0x1bf   :  { %v4203_v61 = vpop.f32.mrf.mxu1  ;;  %4497 = vmatprep.subr.bf16.mxu1 %v6565_v52  ;;  %4486 = vmatprep.mubr.bf16.mxu0 %v7144_v47  ;;  %v6617_v49 = vld [vmem:[#allocation4 + $0x928] ss:$40 sps:$4 sm:$0xff]   ;;  %v6622_v52 = vld [vmem:[#allocation4 + $0x3dc] ss:$40 sps:$4 sm:$0xff]   ;;  %v6623_v56 = vld [vmem:[#allocation4 + $0x8d8] ss:$40 sps:$4 sm:$0xff]  }
 0x1c0   :  { %v7274_v0 = vadd.f32 %v4203_v61, %v4162_v60  ;;  %4527 = vmatprep.mubr.bf16.mxu1 %v7149_v51  ;;  %v4164_v4 = vpop.f32.mrf.mxu0  ;;  %v6631_v60 = vld [vmem:[#allocation4 + $0x88c] ss:$40 sps:$4 sm:$0xff]   ;;  %v6626_v61 = vld [vmem:[#allocation4 + $0x388] ss:$40 sps:$4 sm:$0xff]  }
 0x1c1   :  { %v4205_v5 = vpop.f32.mrf.mxu1  ;;  %4457 = vmatpush1.bf16.msra.mxu0 %v6560_v53  ;;  %v6625_v53 = vld [vmem:[#allocation4 + $0x8dc] ss:$40 sps:$4 sm:$0xff]  }
 0x1c2   :  { %4498 = vmatpush1.bf16.msra.mxu1 %v6563_v59  ;;  %v4165_v10 = vpop.f32.mrf.mxu0  ;;  %4458 = vmatprep.subr.bf16.mxu0 %v6568_v62  ;;  %v6628_v59 = vld [vmem:[#allocation4 + $0x38c] ss:$40 sps:$4 sm:$0xff]   ;;  %v6629_v62 = vld [vmem:[#allocation4 + $0x888] ss:$40 sps:$4 sm:$0xff]   ;;  %v6637_v4 = vld [vmem:[#allocation4 + $0x83c] ss:$40 sps:$4 sm:$0xff]  }
 0x1c3   :  { %v4206_v11 = vpop.f32.mrf.mxu1  ;;  %4499 = vmatprep.subr.bf16.mxu1 %v6571_v63  ;;  %v6634_v63 = vld [vmem:[#allocation4 + $0x33c] ss:$40 sps:$4 sm:$0xff]   ;;  %v6632_v5 = vld [vmem:[#allocation4 + $0x338] ss:$40 sps:$4 sm:$0xff]   ;;  %v6643_v10 = vld [vmem:[#allocation4 + $0x7ec] ss:$40 sps:$4 sm:$0xff]  }
 0x1c4   :  { %v6638_v11 = vld [vmem:[#allocation4 + $0x2e8] ss:$40 sps:$4 sm:$0xff]  }
 0x1c5   :  { %4459 = vmatpush1.bf16.msra.mxu0 %v6566_v8  ;;  %v6635_v8 = vld [vmem:[#allocation4 + $0x838] ss:$40 sps:$4 sm:$0xff]  }
 0x1c6   :  { %4500 = vmatpush1.bf16.msra.mxu1 %v6569_v9  ;;  %4460 = vmatprep.subr.bf16.mxu0 %v6574_v12  ;;  %v6640_v9 = vld [vmem:[#allocation4 + $0x2ec] ss:$40 sps:$4 sm:$0xff]   ;;  %v6641_v12 = vld [vmem:[#allocation4 + $0x7e8] ss:$40 sps:$4 sm:$0xff]  }
 0x1c7   :  { %4501 = vmatprep.subr.bf16.mxu1 %v6577_v13  ;;  %v6646_v13 = vld [vmem:[#allocation4 + $0x29c] ss:$40 sps:$4 sm:$0xff]  }
 0x1c9   :  { %4461 = vmatpush1.bf16.msra.mxu0 %v6572_v14  ;;  %v6649_v14 = vld [vmem:[#allocation4 + $0x79c] ss:$40 sps:$4 sm:$0xff]  }
 0x1ca   :  { %4502 = vmatpush1.bf16.msra.mxu1 %v6575_v15  ;;  %4462 = vmatprep.subr.bf16.mxu0 %v6580_v19  ;;  %v6644_v15 = vld [vmem:[#allocation4 + $0x298] ss:$40 sps:$4 sm:$0xff]  }
 0x1cb   :  { %4503 = vmatprep.subr.bf16.mxu1 %v6583_v21  ;;  %v6647_v19 = vld [vmem:[#allocation4 + $0x798] ss:$40 sps:$4 sm:$0xff]   ;;  %v6652_v21 = vld [vmem:[#allocation4 + $0xc4c] ss:$40 sps:$4 sm:$0xff]  }
 0x1cd   :  { %4463 = vmatpush1.bf16.msra.mxu0 %v6578_v44  ;;  %v6655_v44 = vld [vmem:[#allocation4 + $0x114c] ss:$40 sps:$4 sm:$0xff]  }
 0x1ce   :  { %4504 = vmatpush1.bf16.msra.mxu1 %v6581_v22  ;;  %4464 = vmatprep.subr.bf16.mxu0 %v6586_v23  ;;  %v7279_v22 = vsub.s32 2, %v7203_v57  ;;  %v6650_v23 = vld [vmem:[#allocation4 + $0xc48] ss:$40 sps:$4 sm:$0xff]  }
 0x1cf   :  { %4505 = vmatprep.subr.bf16.mxu1 %v6589_v24  ;;  %v6653_v24 = vld [vmem:[#allocation4 + $0x1148] ss:$40 sps:$4 sm:$0xff]  }
 0x1d1   :  { %4465 = vmatpush1.bf16.msra.mxu0 %v6584_v26  ;;  %v6658_v26 = vld [vmem:[#allocation4 + $0xbfc] ss:$40 sps:$4 sm:$0xff]  }
 0x1d2   :  { %4506 = vmatpush1.bf16.msra.mxu1 %v6587_v25  ;;  %4466 = vmatprep.subr.bf16.mxu0 %v6592_v28  ;;  %v6661_v25 = vld [vmem:[#allocation4 + $0x10fc] ss:$40 sps:$4 sm:$0xff]   ;;  %v7282_v28 = vsub.s32 3, %v7203_v57 }
 0x1d3   :  { %4507 = vmatprep.subr.bf16.mxu1 %v6595_v20 }
 0x1d5   :  { %4467 = vmatpush1.bf16.msra.mxu0 %v6590_v50 }
 0x1d6   :  { %4508 = vmatpush1.bf16.msra.mxu1 %v6593_v30  ;;  %4468 = vmatprep.subr.bf16.mxu0 %v6598_v31  ;;  %v7287_v31 = vld [vmem:[#allocation6] sm:$0xff] }
 0x1d7   :  { %4509 = vmatprep.subr.bf16.mxu1 %v6601_v32  ;;  %v4858_v32 = vrot.slane %v7287_v31, %v7279_v22 }
 0x1d9   :  { %4469 = vmatpush1.bf16.msra.mxu0 %v6596_v33  ;;  %v6656_v33 = vld [vmem:[#allocation4 + $0xbf8] ss:$40 sps:$4 sm:$0xff]  }
 0x1da   :  { %4510 = vmatpush1.bf16.msra.mxu1 %v6599_v29  ;;  %4470 = vmatprep.subr.bf16.mxu0 %v6604_v35  ;;  %v6659_v29 = vld [vmem:[#allocation4 + $0x10f8] ss:$40 sps:$4 sm:$0xff]  }
 0x1db   :  { %4511 = vmatprep.subr.bf16.mxu1 %v6607_v27 }
 0x1dd   :  { %4471 = vmatpush2.bf16.msra.mxu0 %v6602_v34  ;;  %v6664_v34 = vld [vmem:[#allocation4 + $0xbac] ss:$40 sps:$4 sm:$0xff]  }
 0x1de   :  { %4512 = vmatpush2.bf16.msra.mxu1 %v6605_v38  ;;  %4472 = vmatprep.subr.bf16.mxu0 %v6610_v39  ;;  %v6667_v38 = vld [vmem:[#allocation4 + $0x10ac] ss:$40 sps:$4 sm:$0xff]  }
 0x1df   :  { %4513 = vmatprep.subr.bf16.mxu1 %v6613_v40 }
 0x1e1   :  { %4473 = vmatpush2.bf16.msra.mxu0 %v6608_v41 }
 0x1e2   :  { %4514 = vmatpush2.bf16.msra.mxu1 %v6611_v43  ;;  %4474 = vmatprep.subr.bf16.mxu0 %v6616_v45 }
 0x1e3   :  { %4515 = vmatprep.subr.bf16.mxu1 %v6619_v46 }
 0x1e5   :  { %4475 = vmatpush2.bf16.msra.mxu0 %v6614_v48  ;;  %v6662_v48 = vld [vmem:[#allocation4 + $0xba8] ss:$40 sps:$4 sm:$0xff]  }
 0x1e6   :  { %4516 = vmatpush2.bf16.msra.mxu1 %v6617_v49  ;;  %4476 = vmatprep.subr.bf16.mxu0 %v6622_v52  ;;  %v6665_v49 = vld [vmem:[#allocation4 + $0x10a8] ss:$40 sps:$4 sm:$0xff]  }
 0x1e7   :  { %4517 = vmatprep.subr.bf16.mxu1 %v6625_v53 }
 0x1e9   :  { %4477 = vmatpush2.bf16.msra.mxu0 %v6620_v55  ;;  %v6673_v55 = vld [vmem:[#allocation4 + $0x105c] ss:$40 sps:$4 sm:$0xff]  }
 0x1ea   :  { %4518 = vmatpush2.bf16.msra.mxu1 %v6623_v56  ;;  %4478 = vmatprep.subr.bf16.mxu0 %v6628_v59 }
 0x1eb   :  { %4519 = vmatprep.subr.bf16.mxu1 %v6631_v60 }
 0x1ed   :  { %4479 = vmatpush2.bf16.msra.mxu0 %v6626_v61 }
 0x1ee   :  { %4520 = vmatpush2.bf16.msra.mxu1 %v6629_v62  ;;  %4480 = vmatprep.subr.bf16.mxu0 %v6634_v63  ;;  %v6668_v62 = vld [vmem:[#allocation4 + $0xb58] ss:$40 sps:$4 sm:$0xff]  }
 0x1ef   :  { %4521 = vmatprep.subr.bf16.mxu1 %v6637_v4  ;;  %v6671_v63 = vld [vmem:[#allocation4 + $0x1058] ss:$40 sps:$4 sm:$0xff]  }
 0x1f1   :  { %4481 = vmatpush2.bf16.msra.mxu0 %v6632_v5 }
 0x1f2   :  { %4522 = vmatpush2.bf16.msra.mxu1 %v6635_v8  ;;  %4482 = vmatprep.subr.bf16.mxu0 %v6640_v9  ;;  %v6676_v8 = vld [vmem:[#allocation4 + $0xb0c] ss:$40 sps:$4 sm:$0xff]  }
 0x1f3   :  { %4523 = vmatprep.subr.bf16.mxu1 %v6643_v10  ;;  %v6679_v9 = vld [vmem:[#allocation4 + $0x100c] ss:$40 sps:$4 sm:$0xff]  }
 0x1f5   :  { %4483 = vmatpush2.bf16.msra.mxu0 %v6638_v11 }
 0x1f6   :  { %4524 = vmatpush2.bf16.msra.mxu1 %v6641_v12  ;;  %4484 = vmatprep.subr.bf16.mxu0 %v6646_v13 }
 0x1f7   :  { %4525 = vmatprep.subr.bf16.mxu1 %v6649_v14 }
 0x1f9   :  { %4485 = vmatpush2.bf16.msra.mxu0 %v6644_v15  ;;  %v6674_v15 = vld [vmem:[#allocation4 + $0xb08] ss:$40 sps:$4 sm:$0xff]  }
 0x1fa   :  { %4526 = vmatpush2.bf16.msra.mxu1 %v6647_v19  ;;  %4536 = vmatprep.subr.bf16.mxu0 %v6652_v21  ;;  %v6677_v19 = vld [vmem:[#allocation4 + $0x1008] ss:$40 sps:$4 sm:$0xff]  }
 0x1fb   :  { %4577 = vmatprep.subr.bf16.mxu1 %v6655_v44 }
 0x1fc   :  { %v4242_v20 = vpop.f32.mrf.mxu0  ;;  %4487 = vmatmul.mubr.bf16.vlgmr.msra.gmra.mxu0 %v7153_v6 }
 0x1fd   :  { %v4283_v50 = vpop.f32.mrf.mxu1  ;;  %4528 = vmatmul.mubr.bf16.vlgmr.msra.gmra.mxu1 %v7155_v7  ;;  %v4243_v30 = vadd.f32 %v4242_v20, %v7272_v58  ;;  %4537 = vmatpush1.bf16.msra.mxu0 %v6650_v23  ;;  %v4862_v58 = vrot.slane %v7287_v31, %v7282_v28 }
 0x1fe   :  { %4578 = vmatpush1.bf16.msra.mxu1 %v6653_v24  ;;  %v4244_v35 = vpop.f32.mrf.mxu0  ;;  %4538 = vmatprep.subr.bf16.mxu0 %v6658_v26  ;;  %v6682_v26 = vld [vmem:[#allocation4 + $0xabc] ss:$40 sps:$4 sm:$0xff]  }
 0x1ff   :  { %v4285_v27 = vpop.f32.mrf.mxu1  ;;  %4579 = vmatprep.subr.bf16.mxu1 %v6661_v25  ;;  %v4284_v39 = vadd.f32 %v4283_v50, %v4243_v30  ;;  %v4245_v40 = vadd.f32 %v4244_v35, %v7274_v0  ;;  %4568 = vmatprep.mubr.bf16.mxu0 %v7171_v36  ;;  %v6670_v0 = vld [vmem:[#allocation4 + $0xb5c] ss:$40 sps:$4 sm:$0xff]  }
 0x200   :  { %4609 = vmatprep.mubr.bf16.mxu1 %v7175_v37  ;;  %v4246_v41 = vpop.f32.mrf.mxu0  ;;  %v6685_v25 = vld [vmem:[#allocation4 + $0xfbc] ss:$40 sps:$4 sm:$0xff]  }
 0x201   :  { %v4287_v43 = vpop.f32.mrf.mxu1  ;;  %v7296_v45 = vadd.f32 %v4858_v32, %v4284_v39  ;;  %v4286_v46 = vadd.f32 %v4285_v27, %v4245_v40  ;;  %4539 = vmatpush1.bf16.msra.mxu0 %v6656_v33  ;;  %v6680_v33 = vld [vmem:[#allocation4 + $0xab8] ss:$40 sps:$4 sm:$0xff]   ;;  %v6688_v39 = vld [vmem:[#allocation4 + $0xa6c] ss:$40 sps:$4 sm:$0xff]  }
 0x202   :  { %4580 = vmatpush1.bf16.msra.mxu1 %v6659_v29  ;;  %v4247_v52 = vpop.f32.mrf.mxu0  ;;  %4540 = vmatprep.subr.bf16.mxu0 %v6664_v34  ;;  %v6683_v29 = vld [vmem:[#allocation4 + $0xfb8] ss:$40 sps:$4 sm:$0xff]   ;;  %v6691_v40 = vld [vmem:[#allocation4 + $0xf6c] ss:$40 sps:$4 sm:$0xff]  }
 0x203   :  { %v4288_v53 = vpop.f32.mrf.mxu1  ;;  %4581 = vmatprep.subr.bf16.mxu1 %v6667_v38  ;;  %v4909_v56 = vmax.f32 %v7296_v45, 0.0  ;;  %v7299_v59 = vadd.f32 %v4862_v58, %v4286_v46 }
 0x205   :  { %v4920_v60 = vsel %vm4917_vm0, %v4909_v56, 0.0  ;;  %v4910_v61 = vmax.f32 %v7299_v59, 0.0  ;;  %4541 = vmatpush1.bf16.msra.mxu0 %v6662_v48  ;;  %v6686_v48 = vld [vmem:[#allocation4 + $0xa68] ss:$40 sps:$4 sm:$0xff]  }
 0x206   :  { %4582 = vmatpush1.bf16.msra.mxu1 %v6665_v49  ;;  %v4938_v4 = vrot.slane %v4920_v60, 4  ;;  %v4984_v5 = vmul.f32 %v4920_v60, %v4920_v60  ;;  %4542 = vmatprep.subr.bf16.mxu0 %v6670_v0  ;;  %v6689_v49 = vld [vmem:[#allocation4 + $0xf68] ss:$40 sps:$4 sm:$0xff]  }
 0x207   :  { %4583 = vmatprep.subr.bf16.mxu1 %v6673_v55  ;;  %v4921_v10 = vsel %vm4917_vm0, %v4910_v61, 0.0 }
 0x208   :  { %v4939_v11 = vadd.f32 %v4938_v4, %v4920_v60  ;;  %v5002_v12 = vrot.slane %v4984_v5, 4  ;;  %v4944_v13 = vrot.slane %v4921_v10, 4  ;;  %v4985_v14 = vmul.f32 %v4921_v10, %v4921_v10  ;;  %v6694_v60 = vld [vmem:[#allocation4 + $0xa1c] ss:$40 sps:$4 sm:$0xff]  }
 0x209   :  { %4543 = vmatpush1.bf16.msra.mxu0 %v6668_v62  ;;  %v6697_v62 = vld [vmem:[#allocation4 + $0xf1c] ss:$40 sps:$4 sm:$0xff]  }
 0x20a   :  { %4584 = vmatpush1.bf16.msra.mxu1 %v6671_v63  ;;  %v4940_v21 = vrot.slane %v4939_v11, 2  ;;  %v5003_v44 = vadd.f32 %v5002_v12, %v4984_v5  ;;  %v4945_v23 = vadd.f32 %v4944_v13, %v4921_v10  ;;  %v5008_v24 = vrot.slane %v4985_v14, 4  ;;  %4544 = vmatprep.subr.bf16.mxu0 %v6676_v8  ;;  %v6695_v10 = vld [vmem:[#allocation4 + $0xf18] ss:$40 sps:$4 sm:$0xff]   ;;  %v6700_v13 = vld [vmem:[#allocation4 + $0xecc] ss:$40 sps:$4 sm:$0xff]  }
 0x20b   :  { %4585 = vmatprep.subr.bf16.mxu1 %v6679_v9  ;;  %v6692_v9 = vld [vmem:[#allocation4 + $0xa18] ss:$40 sps:$4 sm:$0xff]  }
 0x20c   :  { %v4941_v20 = vadd.f32 %v4940_v21, %v4939_v11  ;;  %v5004_v50 = vrot.slane %v5003_v44, 2  ;;  %v4946_v30 = vrot.slane %v4945_v23, 2  ;;  %v5009_v32 = vadd.f32 %v5008_v24, %v4985_v14  ;;  %v6703_v14 = vld [vmem:[#allocation4 + $0x13cc] ss:$40 sps:$4 sm:$0xff]   ;;  %v6706_v24 = vld [vmem:[#allocation4 + $0xe7c] ss:$40 sps:$4 sm:$0xff]  }
 0x20d   :  { %4545 = vmatpush1.bf16.msra.mxu0 %v6674_v15 }
 0x20e   :  { %4586 = vmatpush1.bf16.msra.mxu1 %v6677_v19  ;;  %v4942_v35 = vrot.slane %v4941_v20, 1  ;;  %v5005_v27 = vadd.f32 %v5004_v50, %v5003_v44  ;;  %v4947_v34 = vadd.f32 %v4946_v30, %v4945_v23  ;;  %v5010_v38 = vrot.slane %v5009_v32, 2  ;;  %4546 = vmatprep.subr.bf16.mxu0 %v6682_v26  ;;  %v6698_v44 = vld [vmem:[#allocation4 + $0xec8] ss:$40 sps:$4 sm:$0xff]   ;;  %v6709_v26 = vld [vmem:[#allocation4 + $0x137c] ss:$40 sps:$4 sm:$0xff]  }
 0x20f   :  { %4587 = vmatprep.subr.bf16.mxu1 %v6685_v25  ;;  %v6701_v23 = vld [vmem:[#allocation4 + $0x13c8] ss:$40 sps:$4 sm:$0xff]   ;;  %v6707_v50 = vld [vmem:[#allocation4 + $0x1378] ss:$40 sps:$4 sm:$0xff]   ;;  %v6712_v30 = vld [vmem:[#allocation4 + $0xe2c] ss:$40 sps:$4 sm:$0xff]  }
 0x210   :  { %v4943_v58 = vadd.f32 %v4942_v35, %v4941_v20  ;;  %v5006_v41 = vrot.slane %v5005_v27, 1  ;;  %v4948_v43 = vrot.slane %v4947_v34, 1  ;;  %v5011_v46 = vadd.f32 %v5010_v38, %v5009_v32  ;;  %v6704_v20 = vld [vmem:[#allocation4 + $0xe78] ss:$40 sps:$4 sm:$0xff]   ;;  %v6715_v32 = vld [vmem:[#allocation4 + $0x132c] ss:$40 sps:$4 sm:$0xff]  }
 0x211   :  { %4547 = vmatpush1.bf16.msra.mxu0 %v6680_v33  ;;  %v6710_v33 = vld [vmem:[#allocation4 + $0xe28] ss:$40 sps:$4 sm:$0xff]   ;;  %v6718_v35 = vld [vmem:[#allocation4 + $0xddc] ss:$40 sps:$4 sm:$0xff]   ;;  %v6716_v38 = vld [vmem:[#allocation4 + $0xdd8] ss:$40 sps:$4 sm:$0xff]  }
 0x212   :  { %4588 = vmatpush1.bf16.msra.mxu1 %v6683_v29  ;;  %v7310_v52 = vmul.f32 0.5, %v4943_v58  ;;  %v5007_v53 = vadd.f32 %v5006_v41, %v5005_v27  ;;  %v4949_v0 = vadd.f32 %v4948_v43, %v4947_v34  ;;  %v5012_v55 = vrot.slane %v5011_v46, 1  ;;  %4548 = vmatprep.subr.bf16.mxu0 %v6688_v39  ;;  %v6713_v29 = vld [vmem:[#allocation4 + $0x1328] ss:$40 sps:$4 sm:$0xff]   ;;  %v6721_v27 = vld [vmem:[#allocation4 + $0x12dc] ss:$40 sps:$4 sm:$0xff]  }
 0x213   :  { %4589 = vmatprep.subr.bf16.mxu1 %v6691_v40  ;;  %v5091_v34 = vrot.slane %v7242_v54, %v7279_v22  ;;  %v6719_v39 = vld [vmem:[#allocation4 + $0x12d8] ss:$40 sps:$4 sm:$0xff]   ;;  %v6724_v40 = vld [vmem:[#allocation4 + $0xd8c] ss:$40 sps:$4 sm:$0xff]   ;;  %v5095_v43 = vrot.slane %v7242_v54, %v7282_v28 }
 0x214   :  { %v5040_v63 = vmul.f32 0.5, %v5007_v53  ;;  %v5048_v4 = vmul.f32 %v7310_v52, %v7310_v52  ;;  %v7314_v5 = vmul.f32 0.5, %v4949_v0  ;;  %v5013_v8 = vadd.f32 %v5012_v55, %v5011_v46  ;;  %v6727_v58 = vld [vmem:[#allocation4 + $0x128c] ss:$40 sps:$4 sm:$0xff]  }
 0x215   :  { %4549 = vmatpush1.bf16.msra.mxu0 %v6686_v48  ;;  %v6722_v48 = vld [vmem:[#allocation4 + $0xd88] ss:$40 sps:$4 sm:$0xff]   ;;  %v5130_v0 = vsub.f32 %v4909_v56, %v7310_v52  ;;  %v5193_v56 = vrot.slane %v7246_v3, %v7282_v28  ;;  %v6728_v52 = vld [vmem:[#allocation4 + $0xd38] ss:$40 sps:$4 sm:$0xff]  }
 0x216   :  { %4590 = vmatpush1.bf16.msra.mxu1 %v6689_v49  ;;  %v5056_v11 = vsub.f32 %v5040_v63, %v5048_v4  ;;  %v5049_v12 = vmul.f32 %v7314_v5, %v7314_v5  ;;  %4550 = vmatprep.subr.bf16.mxu0 %v6694_v60  ;;  %v5041_v15 = vmul.f32 0.5, %v5013_v8  ;;  %v6725_v49 = vld [vmem:[#allocation4 + $0x1288] ss:$40 sps:$4 sm:$0xff]   ;;  %v5189_v60 = vrot.slane %v7246_v3, %v7279_v22  ;;  %v6733_v63 = vld [vmem:[#allocation4 + $0x123c] ss:$40 sps:$4 sm:$0xff]  }
 0x217   :  { %4591 = vmatprep.subr.bf16.mxu1 %v6697_v62  ;;  %v6730_v62 = vld [vmem:[#allocation4 + $0xd3c] ss:$40 sps:$4 sm:$0xff]   ;;  %v5239_v8 = vrot.slane %v7254_v18, %v7279_v22  ;;  %v5243_v22 = vrot.slane %v7254_v18, %v7282_v28 }
 0x218   :  { %v5064_v19 = vadd.f32 1e-05, %v5056_v11  ;;  %v5057_v21 = vsub.f32 %v5041_v15, %v5049_v12  ;;  %v6736_v12 = vld [vmem:[#allocation4 + $0xcec] ss:$40 sps:$4 sm:$0xff]   ;;  %v6737_v15 = vld [vmem:[#allocation4 + $0x11e8] ss:$40 sps:$4 sm:$0xff]  }
 0x219   :  { %4551 = vmatpush1.bf16.msra.mxu0 %v6692_v9  ;;  %v5131_v9 = vsub.f32 %v4910_v61, %v7314_v5  ;;  %v6734_v5 = vld [vmem:[#allocation4 + $0xce8] ss:$40 sps:$4 sm:$0xff]   ;;  %v6742_v3 = vld [vmem:[#allocation4 + $0xc9c] ss:$40 sps:$4 sm:$0xff]  }
 0x21a   :  { %4592 = vmatpush1.bf16.msra.mxu1 %v6695_v10  ;;  %6942 = vrsqrt.f32 %v5064_v19  ;;  %4552 = vmatprep.subr.bf16.mxu0 %v6700_v13  ;;  %v5065_v25 = vadd.f32 1e-05, %v5057_v21  ;;  %v6731_v10 = vld [vmem:[#allocation4 + $0x1238] ss:$40 sps:$4 sm:$0xff]   ;;  %v6739_v13 = vld [vmem:[#allocation4 + $0x11ec] ss:$40 sps:$4 sm:$0xff]  }
 0x21b   :  { %4593 = vmatprep.subr.bf16.mxu1 %v6703_v14  ;;  %v6745_v19 = vld [vmem:[#allocation4 + $0x119c] ss:$40 sps:$4 sm:$0xff]  }
 0x21c   :  { %6944 = vrsqrt.f32 %v5065_v25  ;;  %v6748_v18 = vld [vmem:[#allocation4 + $0x254] ss:$40 sps:$4 sm:$0xff]   ;;  %v6746_v25 = vld [vmem:[#allocation4 + $0x250] ss:$40 sps:$4 sm:$0xff]  }
 0x21d   :  { %4553 = vmatpush2.bf16.msra.mxu0 %v6698_v44  ;;  %v6751_v28 = vld [vmem:[#allocation4 + $0x754] ss:$40 sps:$4 sm:$0xff]  }
 0x21e   :  { %4594 = vmatpush2.bf16.msra.mxu1 %v6701_v23  ;;  %4554 = vmatprep.subr.bf16.mxu0 %v6706_v24  ;;  %v6740_v23 = vld [vmem:[#allocation4 + $0xc98] ss:$40 sps:$4 sm:$0xff]  }
 0x21f   :  { %4595 = vmatprep.subr.bf16.mxu1 %v6709_v26  ;;  %v6743_v24 = vld [vmem:[#allocation4 + $0x1198] ss:$40 sps:$4 sm:$0xff]  }
 0x221   :  { %4555 = vmatpush2.bf16.msra.mxu0 %v6704_v20  ;;  %v6749_v20 = vld [vmem:[#allocation4 + $0x750] ss:$40 sps:$4 sm:$0xff]  }
 0x222   :  { %4596 = vmatpush2.bf16.msra.mxu1 %v6707_v50  ;;  %4556 = vmatprep.subr.bf16.mxu0 %v6712_v30  ;;  %v6754_v50 = vld [vmem:[#allocation4 + $0x204] ss:$40 sps:$4 sm:$0xff]  }
 0x223   :  { %4597 = vmatprep.subr.bf16.mxu1 %v6715_v32  ;;  %v6757_v30 = vld [vmem:[#allocation4 + $0x704] ss:$40 sps:$4 sm:$0xff]  }
 0x225   :  { %4557 = vmatpush2.bf16.msra.mxu0 %v6710_v33 }
 0x226   :  { %4598 = vmatpush2.bf16.msra.mxu1 %v6713_v29  ;;  %4558 = vmatprep.subr.bf16.mxu0 %v6718_v35  ;;  %v6752_v29 = vld [vmem:[#allocation4 + $0x200] ss:$40 sps:$4 sm:$0xff]  }
 0x227   :  { %4599 = vmatprep.subr.bf16.mxu1 %v6721_v27  ;;  %v6943_v41 = vpop.eup %6942  ;;  %v6755_v35 = vld [vmem:[#allocation4 + $0x700] ss:$40 sps:$4 sm:$0xff]  }
 0x228   :  { %v5122_v46 = vmul.f32 %v6943_v41, %v5091_v34 }
 0x229   :  { %4559 = vmatpush2.bf16.msra.mxu0 %v6716_v38  ;;  %v6945_v53 = vpop.eup %6944  ;;  %v6760_v38 = vld [vmem:[#allocation4 + $0x1b4] ss:$40 sps:$4 sm:$0xff]  }
 0x22a   :  { %4600 = vmatpush2.bf16.msra.mxu1 %v6719_v39  ;;  %v5147_v55 = vrot.slane %v5122_v46, %v7206_v1  ;;  %4560 = vmatprep.subr.bf16.mxu0 %v6724_v40  ;;  %v5123_v54 = vmul.f32 %v6945_v53, %v5095_v43  ;;  %v6763_v39 = vld [vmem:[#allocation4 + $0x6b4] ss:$40 sps:$4 sm:$0xff]   ;;  %v6758_v43 = vld [vmem:[#allocation4 + $0x1b0] ss:$40 sps:$4 sm:$0xff]   ;;  %v6766_v53 = vld [vmem:[#allocation4 + $0x164] ss:$40 sps:$4 sm:$0xff]  }
 0x22b   :  { %4601 = vmatprep.subr.bf16.mxu1 %v6727_v58  ;;  %v6761_v46 = vld [vmem:[#allocation4 + $0x6b0] ss:$40 sps:$4 sm:$0xff]  }
 0x22c   :  { %v5170_v4 = vmul.f32 %v5147_v55, %v5130_v0  ;;  %v5151_v45 = vrot.slane %v5123_v54, %v7206_v1  ;;  %v6769_v0 = vld [vmem:[#allocation4 + $0x664] ss:$40 sps:$4 sm:$0xff]   ;;  %v6764_v55 = vld [vmem:[#allocation4 + $0x160] ss:$40 sps:$4 sm:$0xff]  }
 0x22d   :  { %4561 = vmatpush2.bf16.msra.mxu0 %v6722_v48  ;;  %v6778_v54 = vld [vmem:[#allocation4 + $0xc4] ss:$40 sps:$4 sm:$0xff]  }
 0x22e   :  { %4602 = vmatpush2.bf16.msra.mxu1 %v6725_v49  ;;  %v5220_v11 = vadd.f32 %v5189_v60, %v5170_v4  ;;  %4562 = vmatprep.subr.bf16.mxu0 %v6730_v62  ;;  %v5171_v14 = vmul.f32 %v5151_v45, %v5131_v9  ;;  %v6767_v60 = vld [vmem:[#allocation4 + $0x660] ss:$40 sps:$4 sm:$0xff]   ;;  %v6770_v62 = vld [vmem:[#allocation4 + $0x110] ss:$40 sps:$4 sm:$0xff]   ;;  %v6781_v4 = vld [vmem:[#allocation4 + $0x5c4] ss:$40 sps:$4 sm:$0xff]  }
 0x22f   :  { %4603 = vmatprep.subr.bf16.mxu1 %v6733_v63  ;;  %v6773_v63 = vld [vmem:[#allocation4 + $0x610] ss:$40 sps:$4 sm:$0xff]   ;;  %v6779_v9 = vld [vmem:[#allocation4 + $0x5c0] ss:$40 sps:$4 sm:$0xff]   ;;  %v6784_v45 = vld [vmem:[#allocation4 + $0x74] ss:$40 sps:$4 sm:$0xff]  }
 0x230   :  { %v5270_v59 = vmul.f32 %v5239_v8, %v5220_v11  ;;  %v5221_v61 = vadd.f32 %v5193_v56, %v5171_v14  ;;  %v6776_v8 = vld [vmem:[#allocation4 + $0xc0] ss:$40 sps:$4 sm:$0xff]   ;;  %v6787_v56 = vld [vmem:[#allocation4 + $0x574] ss:$40 sps:$4 sm:$0xff]   ;;  %v6790_v11 = vld [vmem:[#allocation4 + $0x24] ss:$40 sps:$4 sm:$0xff]  }
 0x231   :  { %4563 = vmatpush2.bf16.msra.mxu0 %v6728_v52  ;;  %v6782_v52 = vld [vmem:[#allocation4 + $0x70] ss:$40 sps:$4 sm:$0xff]   ;;  %v6791_v14 = vld [vmem:[#allocation4 + $0x520] ss:$40 sps:$4 sm:$0xff]  }
 0x232   :  { %4604 = vmatpush2.bf16.msra.mxu1 %v6731_v10  ;;  %4564 = vmatprep.subr.bf16.mxu0 %v6736_v12  ;;  %v5277_v21 = vadd.f32 %v7268_v42, %v5270_v59  ;;  %v5271_v44 = vmul.f32 %v5243_v22, %v5221_v61  ;;  %v6785_v10 = vld [vmem:[#allocation4 + $0x570] ss:$40 sps:$4 sm:$0xff]   ;;  %v6793_v12 = vld [vmem:[#allocation4 + $0x524] ss:$40 sps:$4 sm:$0xff]   ;;  %v6796_v22 = vld [vmem:[#allocation4 + $0x4d4] ss:$40 sps:$4 sm:$0xff]  }
 0x233   :  { %4605 = vmatprep.subr.bf16.mxu1 %v6739_v13  ;;  %v6788_v13 = vld [vmem:[#allocation4 + $0x20] ss:$40 sps:$4 sm:$0xff]   ;;  %v6799_v59 = vld [vmem:[#allocation4 + $0x9d4] ss:$40 sps:$4 sm:$0xff]   ;;  %v6794_v61 = vld [vmem:[#allocation4 + $0x4d0] ss:$40 sps:$4 sm:$0xff]  }
 0x234   :  { %v7339_v26 = vadd.f32 %v5277_v21, %v5271_v44  ;;  %v6803_v21 = vld [vmem:[#allocation4 + $0x980] ss:$40 sps:$4 sm:$0xff]   ;;  %v6808_v44 = vld [vmem:[#allocation4 + $0x434] ss:$40 sps:$4 sm:$0xff]  }
 0x235   :  { %4565 = vmatpush2.bf16.msra.mxu0 %v6734_v5  ;;  %v6797_v5 = vld [vmem:[#allocation4 + $0x9d0] ss:$40 sps:$4 sm:$0xff]  }
 0x236   :  { %4606 = vmatpush2.bf16.msra.mxu1 %v6737_v15  ;;  %4566 = vmatprep.subr.bf16.mxu0 %v6742_v3  ;;  %v6802_v15 = vld [vmem:[#allocation4 + $0x484] ss:$40 sps:$4 sm:$0xff]  }
 0x237   :  { %4607 = vmatprep.subr.bf16.mxu1 %v6745_v19  ;;  %v6805_v3 = vld [vmem:[#allocation4 + $0x984] ss:$40 sps:$4 sm:$0xff]   ;;  %v6800_v19 = vld [vmem:[#allocation4 + $0x480] ss:$40 sps:$4 sm:$0xff]  }
 0x239   :  { %4567 = vmatpush2.bf16.msra.mxu0 %v6740_v23  ;;  %v6811_v23 = vld [vmem:[#allocation4 + $0x934] ss:$40 sps:$4 sm:$0xff]  }
 0x23a   :  { %4608 = vmatpush2.bf16.msra.mxu1 %v6743_v24  ;;  %4618 = vmatprep.subr.bf16.mxu0 %v6748_v18  ;;  %v6806_v24 = vld [vmem:[#allocation4 + $0x430] ss:$40 sps:$4 sm:$0xff]  }
 0x23b   :  { %4659 = vmatprep.subr.bf16.mxu1 %v6751_v28  ;;  %v6809_v18 = vld [vmem:[#allocation4 + $0x930] ss:$40 sps:$4 sm:$0xff]   ;;  %v6814_v28 = vld [vmem:[#allocation4 + $0x3e4] ss:$40 sps:$4 sm:$0xff]  }
 0x23c   :  { %v4324_v42 = vpop.f32.mrf.mxu0  ;;  %4569 = vmatmul.mubr.bf16.vlgmr.msra.gmra.mxu0 %v7181_v16 }
 0x23d   :  { %v4365_v32 = vpop.f32.mrf.mxu1  ;;  %4610 = vmatmul.mubr.bf16.vlgmr.msra.gmra.mxu1 %v7185_v17  ;;  %4619 = vmatpush1.bf16.msra.mxu0 %v6746_v25  ;;  %v6817_v25 = vld [vmem:[#allocation4 + $0x8e4] ss:$40 sps:$4 sm:$0xff]  }
 0x23e   :  { %v7343_v33 = vadd.f32 %v4365_v32, %v4324_v42  ;;  %4660 = vmatpush1.bf16.msra.mxu1 %v6749_v20  ;;  %v4326_v27 = vpop.f32.mrf.mxu0  ;;  %4620 = vmatprep.subr.bf16.mxu0 %v6754_v50  ;;  %v6812_v20 = vld [vmem:[#allocation4 + $0x3e0] ss:$40 sps:$4 sm:$0xff]   ;;  %v6823_v42 = vld [vmem:[#allocation4 + $0x894] ss:$40 sps:$4 sm:$0xff]   ;;  %v6818_v32 = vld [vmem:[#allocation4 + $0x390] ss:$40 sps:$4 sm:$0xff]  }
 0x23f   :  { %v4367_v34 = vpop.f32.mrf.mxu1  ;;  %4661 = vmatprep.subr.bf16.mxu1 %v6757_v30  ;;  %4650 = vmatprep.mubr.bf16.mxu0 %v7144_v47  ;;  %v6772_v47 = vld [vmem:[#allocation4 + $0x114] ss:$40 sps:$4 sm:$0xff]   ;;  %v6815_v50 = vld [vmem:[#allocation4 + $0x8e0] ss:$40 sps:$4 sm:$0xff]  }
 0x240   :  { %v7345_v40 = vadd.f32 %v4367_v34, %v4326_v27  ;;  %4691 = vmatprep.mubr.bf16.mxu1 %v7149_v51  ;;  %v4328_v58 = vpop.f32.mrf.mxu0  ;;  %v6775_v51 = vld [vmem:[#allocation4 + $0x614] ss:$40 sps:$4 sm:$0xff]   ;;  %v6829_v27 = vld [vmem:[#allocation4 + $0x844] ss:$40 sps:$4 sm:$0xff]   ;;  %v6824_v34 = vld [vmem:[#allocation4 + $0x340] ss:$40 sps:$4 sm:$0xff]  }
 0x241   :  { %v4369_v41 = vpop.f32.mrf.mxu1  ;;  %4621 = vmatpush1.bf16.msra.mxu0 %v6752_v29  ;;  %v6820_v30 = vld [vmem:[#allocation4 + $0x394] ss:$40 sps:$4 sm:$0xff]   ;;  %v6821_v29 = vld [vmem:[#allocation4 + $0x890] ss:$40 sps:$4 sm:$0xff]  }
 0x242   :  { %4662 = vmatpush1.bf16.msra.mxu1 %v6755_v35  ;;  %v4329_v48 = vpop.f32.mrf.mxu0  ;;  %4622 = vmatprep.subr.bf16.mxu0 %v6760_v38  ;;  %v6826_v35 = vld [vmem:[#allocation4 + $0x344] ss:$40 sps:$4 sm:$0xff]   ;;  %v6827_v38 = vld [vmem:[#allocation4 + $0x840] ss:$40 sps:$4 sm:$0xff]   ;;  %v6835_v58 = vld [vmem:[#allocation4 + $0x7f4] ss:$40 sps:$4 sm:$0xff]  }
 0x243   :  { %v4370_v49 = vpop.f32.mrf.mxu1  ;;  %4663 = vmatprep.subr.bf16.mxu1 %v6763_v39  ;;  %v6832_v39 = vld [vmem:[#allocation4 + $0x2f4] ss:$40 sps:$4 sm:$0xff]   ;;  %v6830_v41 = vld [vmem:[#allocation4 + $0x2f0] ss:$40 sps:$4 sm:$0xff]   ;;  %v6841_v48 = vld [vmem:[#allocation4 + $0x7a4] ss:$40 sps:$4 sm:$0xff]  }
 0x244   :  { %v6836_v49 = vld [vmem:[#allocation4 + $0x2a0] ss:$40 sps:$4 sm:$0xff]  }
 0x245   :  { %4623 = vmatpush1.bf16.msra.mxu0 %v6758_v43  ;;  %v6833_v43 = vld [vmem:[#allocation4 + $0x7f0] ss:$40 sps:$4 sm:$0xff]  }
 0x246   :  { %4664 = vmatpush1.bf16.msra.mxu1 %v6761_v46  ;;  %4624 = vmatprep.subr.bf16.mxu0 %v6766_v53  ;;  %v6838_v46 = vld [vmem:[#allocation4 + $0x2a4] ss:$40 sps:$4 sm:$0xff]   ;;  %v6839_v53 = vld [vmem:[#allocation4 + $0x7a0] ss:$40 sps:$4 sm:$0xff]  }
 0x247   :  { %4665 = vmatprep.subr.bf16.mxu1 %v6769_v0  ;;  %v6844_v0 = vld [vmem:[#allocation4 + $0xc54] ss:$40 sps:$4 sm:$0xff]  }
 0x249   :  { %4625 = vmatpush1.bf16.msra.mxu0 %v6764_v55  ;;  %v6847_v55 = vld [vmem:[#allocation4 + $0x1154] ss:$40 sps:$4 sm:$0xff]  }
 0x24a   :  { %4666 = vmatpush1.bf16.msra.mxu1 %v6767_v60  ;;  %4626 = vmatprep.subr.bf16.mxu0 %v6772_v47  ;;  %v7350_v60 = vsub.s32 4, %v7203_v57  ;;  %v6842_v47 = vld [vmem:[#allocation4 + $0xc50] ss:$40 sps:$4 sm:$0xff]  }
 0x24b   :  { %4667 = vmatprep.subr.bf16.mxu1 %v6775_v51  ;;  %v6845_v51 = vld [vmem:[#allocation4 + $0x1150] ss:$40 sps:$4 sm:$0xff]  }
 0x24d   :  { %4627 = vmatpush1.bf16.msra.mxu0 %v6770_v62  ;;  %v6850_v62 = vld [vmem:[#allocation4 + $0xc04] ss:$40 sps:$4 sm:$0xff]  }
 0x24e   :  { %4668 = vmatpush1.bf16.msra.mxu1 %v6773_v63  ;;  %4628 = vmatprep.subr.bf16.mxu0 %v6778_v54  ;;  %v6853_v63 = vld [vmem:[#allocation4 + $0x1104] ss:$40 sps:$4 sm:$0xff]   ;;  %v7353_v54 = vsub.s32 5, %v7203_v57 }
 0x24f   :  { %4669 = vmatprep.subr.bf16.mxu1 %v6781_v4 }
 0x251   :  { %4629 = vmatpush1.bf16.msra.mxu0 %v6776_v8 }
 0x252   :  { %4670 = vmatpush1.bf16.msra.mxu1 %v6779_v9  ;;  %4630 = vmatprep.subr.bf16.mxu0 %v6784_v45  ;;  %v4866_v45 = vrot.slane %v7287_v31, %v7350_v60 }
 0x253   :  { %4671 = vmatprep.subr.bf16.mxu1 %v6787_v56  ;;  %v6848_v56 = vld [vmem:[#allocation4 + $0xc00] ss:$40 sps:$4 sm:$0xff]  }
 0x255   :  { %4631 = vmatpush1.bf16.msra.mxu0 %v6782_v52  ;;  %v6851_v52 = vld [vmem:[#allocation4 + $0x1100] ss:$40 sps:$4 sm:$0xff]  }
 0x256   :  { %4672 = vmatpush1.bf16.msra.mxu1 %v6785_v10  ;;  %4632 = vmatprep.subr.bf16.mxu0 %v6790_v11 }
 0x257   :  { %4673 = vmatprep.subr.bf16.mxu1 %v6793_v12  ;;  %v6856_v12 = vld [vmem:[#allocation4 + $0xbb4] ss:$40 sps:$4 sm:$0xff]  }
 0x259   :  { %4633 = vmatpush1.bf16.msra.mxu0 %v6788_v13  ;;  %v6859_v13 = vld [vmem:[#allocation4 + $0x10b4] ss:$40 sps:$4 sm:$0xff]  }
 0x25a   :  { %4674 = vmatpush1.bf16.msra.mxu1 %v6791_v14  ;;  %4634 = vmatprep.subr.bf16.mxu0 %v6796_v22 }
 0x25b   :  { %4675 = vmatprep.subr.bf16.mxu1 %v6799_v59 }
 0x25d   :  { %4635 = vmatpush2.bf16.msra.mxu0 %v6794_v61 }
 0x25e   :  { %4676 = vmatpush2.bf16.msra.mxu1 %v6797_v5  ;;  %4636 = vmatprep.subr.bf16.mxu0 %v6802_v15  ;;  %v6854_v5 = vld [vmem:[#allocation4 + $0xbb0] ss:$40 sps:$4 sm:$0xff]  }
 0x25f   :  { %4677 = vmatprep.subr.bf16.mxu1 %v6805_v3  ;;  %v6857_v15 = vld [vmem:[#allocation4 + $0x10b0] ss:$40 sps:$4 sm:$0xff]  }
 0x261   :  { %4637 = vmatpush2.bf16.msra.mxu0 %v6800_v19 }
 0x262   :  { %4678 = vmatpush2.bf16.msra.mxu1 %v6803_v21  ;;  %4638 = vmatprep.subr.bf16.mxu0 %v6808_v44  ;;  %v6865_v21 = vld [vmem:[#allocation4 + $0x1064] ss:$40 sps:$4 sm:$0xff]  }
 0x263   :  { %4679 = vmatprep.subr.bf16.mxu1 %v6811_v23  ;;  %v6860_v23 = vld [vmem:[#allocation4 + $0xb60] ss:$40 sps:$4 sm:$0xff]  }
 0x265   :  { %4639 = vmatpush2.bf16.msra.mxu0 %v6806_v24  ;;  %v6863_v24 = vld [vmem:[#allocation4 + $0x1060] ss:$40 sps:$4 sm:$0xff]  }
 0x266   :  { %4680 = vmatpush2.bf16.msra.mxu1 %v6809_v18  ;;  %4640 = vmatprep.subr.bf16.mxu0 %v6814_v28 }
 0x267   :  { %4681 = vmatprep.subr.bf16.mxu1 %v6817_v25  ;;  %v6868_v25 = vld [vmem:[#allocation4 + $0xb14] ss:$40 sps:$4 sm:$0xff]  }
 0x269   :  { %4641 = vmatpush2.bf16.msra.mxu0 %v6812_v20  ;;  %v6871_v20 = vld [vmem:[#allocation4 + $0x1014] ss:$40 sps:$4 sm:$0xff]  }
 0x26a   :  { %4682 = vmatpush2.bf16.msra.mxu1 %v6815_v50  ;;  %4642 = vmatprep.subr.bf16.mxu0 %v6820_v30 }
 0x26b   :  { %4683 = vmatprep.subr.bf16.mxu1 %v6823_v42 }
 0x26d   :  { %4643 = vmatpush2.bf16.msra.mxu0 %v6818_v32 }
 0x26e   :  { %4684 = vmatpush2.bf16.msra.mxu1 %v6821_v29  ;;  %4644 = vmatprep.subr.bf16.mxu0 %v6826_v35  ;;  %v6866_v35 = vld [vmem:[#allocation4 + $0xb10] ss:$40 sps:$4 sm:$0xff]  }
 0x26f   :  { %4685 = vmatprep.subr.bf16.mxu1 %v6829_v27  ;;  %v6869_v27 = vld [vmem:[#allocation4 + $0x1010] ss:$40 sps:$4 sm:$0xff]  }
 0x271   :  { %4645 = vmatpush2.bf16.msra.mxu0 %v6824_v34 }
 0x272   :  { %4686 = vmatpush2.bf16.msra.mxu1 %v6827_v38  ;;  %4646 = vmatprep.subr.bf16.mxu0 %v6832_v39 }
 0x273   :  { %4687 = vmatprep.subr.bf16.mxu1 %v6835_v58 }
 0x275   :  { %4647 = vmatpush2.bf16.msra.mxu0 %v6830_v41  ;;  %v6874_v41 = vld [vmem:[#allocation4 + $0xac4] ss:$40 sps:$4 sm:$0xff]  }
 0x276   :  { %4688 = vmatpush2.bf16.msra.mxu1 %v6833_v43  ;;  %4648 = vmatprep.subr.bf16.mxu0 %v6838_v46  ;;  %v6877_v43 = vld [vmem:[#allocation4 + $0xfc4] ss:$40 sps:$4 sm:$0xff]  }
 0x277   :  { %4689 = vmatprep.subr.bf16.mxu1 %v6841_v48 }
 0x279   :  { %4649 = vmatpush2.bf16.msra.mxu0 %v6836_v49 }
 0x27a   :  { %4690 = vmatpush2.bf16.msra.mxu1 %v6839_v53  ;;  %4700 = vmatprep.subr.bf16.mxu0 %v6844_v0  ;;  %v6872_v0 = vld [vmem:[#allocation4 + $0xac0] ss:$40 sps:$4 sm:$0xff]  }
 0x27b   :  { %4741 = vmatprep.subr.bf16.mxu1 %v6847_v55  ;;  %v6875_v55 = vld [vmem:[#allocation4 + $0xfc0] ss:$40 sps:$4 sm:$0xff]  }
 0x27c   :  { %v4406_v4 = vpop.f32.mrf.mxu0  ;;  %4651 = vmatmul.mubr.bf16.vlgmr.msra.gmra.mxu0 %v7153_v6 }
 0x27d   :  { %v4447_v8 = vpop.f32.mrf.mxu1  ;;  %4692 = vmatmul.mubr.bf16.vlgmr.msra.gmra.mxu1 %v7155_v7  ;;  %v4407_v9 = vadd.f32 %v4406_v4, %v7343_v33  ;;  %4701 = vmatpush1.bf16.msra.mxu0 %v6842_v47  ;;  %v4870_v7 = vrot.slane %v7287_v31, %v7353_v54  ;;  %v6880_v4 = vld [vmem:[#allocation4 + $0xa74] ss:$40 sps:$4 sm:$0xff]  }
 0x27e   :  { %4742 = vmatpush1.bf16.msra.mxu1 %v6845_v51  ;;  %v4408_v10 = vpop.f32.mrf.mxu0  ;;  %4702 = vmatprep.subr.bf16.mxu0 %v6850_v62 }
 0x27f   :  { %v4449_v11 = vpop.f32.mrf.mxu1  ;;  %4743 = vmatprep.subr.bf16.mxu1 %v6853_v63  ;;  %v4448_v14 = vadd.f32 %v4447_v8, %v4407_v9  ;;  %v4409_v6 = vadd.f32 %v4408_v10, %v7345_v40  ;;  %4732 = vmatprep.mubr.bf16.mxu0 %v7171_v36  ;;  %v6862_v40 = vld [vmem:[#allocation4 + $0xb64] ss:$40 sps:$4 sm:$0xff]   ;;  %v6883_v8 = vld [vmem:[#allocation4 + $0xf74] ss:$40 sps:$4 sm:$0xff]   ;;  %v6878_v10 = vld [vmem:[#allocation4 + $0xa70] ss:$40 sps:$4 sm:$0xff]  }
 0x280   :  { %4773 = vmatprep.mubr.bf16.mxu1 %v7175_v37  ;;  %v4410_v33 = vpop.f32.mrf.mxu0 }
 0x281   :  { %v4451_v22 = vpop.f32.mrf.mxu1  ;;  %v7365_v59 = vadd.f32 %v4866_v45, %v4448_v14  ;;  %v4450_v61 = vadd.f32 %v4449_v11, %v4409_v6  ;;  %4703 = vmatpush1.bf16.msra.mxu0 %v6848_v56  ;;  %v6881_v11 = vld [vmem:[#allocation4 + $0xf70] ss:$40 sps:$4 sm:$0xff]   ;;  %v6889_v33 = vld [vmem:[#allocation4 + $0xf24] ss:$40 sps:$4 sm:$0xff]  }
 0x282   :  { %4744 = vmatpush1.bf16.msra.mxu1 %v6851_v52  ;;  %v4411_v3 = vpop.f32.mrf.mxu0  ;;  %4704 = vmatprep.subr.bf16.mxu0 %v6856_v12 }
 0x283   :  { %v4452_v19 = vpop.f32.mrf.mxu1  ;;  %4745 = vmatprep.subr.bf16.mxu1 %v6859_v13  ;;  %v4911_v31 = vmax.f32 %v7365_v59, 0.0  ;;  %v7368_v36 = vadd.f32 %v4870_v7, %v4450_v61  ;;  %v6886_v7 = vld [vmem:[#allocation4 + $0xa24] ss:$40 sps:$4 sm:$0xff]   ;;  %v6884_v3 = vld [vmem:[#allocation4 + $0xa20] ss:$40 sps:$4 sm:$0xff]  }
 0x284   :  { %v6887_v19 = vld [vmem:[#allocation4 + $0xf20] ss:$40 sps:$4 sm:$0xff]  }
 0x285   :  { %v4922_v37 = vsel %vm4917_vm0, %v4911_v31, 0.0  ;;  %v4912_v44 = vmax.f32 %v7368_v36, 0.0  ;;  %4705 = vmatpush1.bf16.msra.mxu0 %v6854_v5 }
 0x286   :  { %4746 = vmatpush1.bf16.msra.mxu1 %v6857_v15  ;;  %v4950_v18 = vrot.slane %v4922_v37, 4  ;;  %v4986_v28 = vmul.f32 %v4922_v37, %v4922_v37  ;;  %4706 = vmatprep.subr.bf16.mxu0 %v6862_v40 }
 0x287   :  { %4747 = vmatprep.subr.bf16.mxu1 %v6865_v21  ;;  %v4923_v50 = vsel %vm4917_vm0, %v4912_v44, 0.0 }
 0x288   :  { %v4951_v30 = vadd.f32 %v4950_v18, %v4922_v37  ;;  %v5014_v42 = vrot.slane %v4986_v28, 4  ;;  %v4956_v32 = vrot.slane %v4923_v50, 4  ;;  %v4987_v29 = vmul.f32 %v4923_v50, %v4923_v50  ;;  %v6892_v37 = vld [vmem:[#allocation4 + $0xed4] ss:$40 sps:$4 sm:$0xff]  }
 0x289   :  { %4707 = vmatpush1.bf16.msra.mxu0 %v6860_v23  ;;  %v6895_v23 = vld [vmem:[#allocation4 + $0x13d4] ss:$40 sps:$4 sm:$0xff]  }
 0x28a   :  { %4748 = vmatpush1.bf16.msra.mxu1 %v6863_v24  ;;  %v4952_v34 = vrot.slane %v4951_v30, 2  ;;  %v5015_v38 = vadd.f32 %v5014_v42, %v4986_v28  ;;  %v4957_v39 = vadd.f32 %v4956_v32, %v4923_v50  ;;  %v5020_v58 = vrot.slane %v4987_v29, 4  ;;  %4708 = vmatprep.subr.bf16.mxu0 %v6868_v25  ;;  %v6890_v25 = vld [vmem:[#allocation4 + $0xed0] ss:$40 sps:$4 sm:$0xff]   ;;  %v6898_v50 = vld [vmem:[#allocation4 + $0xe84] ss:$40 sps:$4 sm:$0xff]  }
 0x28b   :  { %4749 = vmatprep.subr.bf16.mxu1 %v6871_v20  ;;  %v6893_v20 = vld [vmem:[#allocation4 + $0x13d0] ss:$40 sps:$4 sm:$0xff]   ;;  %v6896_v32 = vld [vmem:[#allocation4 + $0xe80] ss:$40 sps:$4 sm:$0xff]  }
 0x28c   :  { %v4953_v46 = vadd.f32 %v4952_v34, %v4951_v30  ;;  %v5016_v48 = vrot.slane %v5015_v38, 2  ;;  %v4958_v49 = vrot.slane %v4957_v39, 2  ;;  %v5021_v53 = vadd.f32 %v5020_v58, %v4987_v29  ;;  %v6901_v30 = vld [vmem:[#allocation4 + $0x1384] ss:$40 sps:$4 sm:$0xff]   ;;  %v6899_v29 = vld [vmem:[#allocation4 + $0x1380] ss:$40 sps:$4 sm:$0xff]  }
 0x28d   :  { %4709 = vmatpush1.bf16.msra.mxu0 %v6866_v35  ;;  %v6904_v35 = vld [vmem:[#allocation4 + $0xe34] ss:$40 sps:$4 sm:$0xff]   ;;  %v6902_v34 = vld [vmem:[#allocation4 + $0xe30] ss:$40 sps:$4 sm:$0xff]   ;;  %v6913_v58 = vld [vmem:[#allocation4 + $0x12e4] ss:$40 sps:$4 sm:$0xff]  }
 0x28e   :  { %4750 = vmatpush1.bf16.msra.mxu1 %v6869_v27  ;;  %v4954_v47 = vrot.slane %v4953_v46, 1  ;;  %v5017_v51 = vadd.f32 %v5016_v48, %v5015_v38  ;;  %v4959_v62 = vadd.f32 %v4958_v49, %v4957_v39  ;;  %v5022_v63 = vrot.slane %v5021_v53, 2  ;;  %4710 = vmatprep.subr.bf16.mxu0 %v6874_v41  ;;  %v6907_v27 = vld [vmem:[#allocation4 + $0x1334] ss:$40 sps:$4 sm:$0xff]   ;;  %v6905_v38 = vld [vmem:[#allocation4 + $0x1330] ss:$40 sps:$4 sm:$0xff]  }
 0x28f   :  { %4751 = vmatprep.subr.bf16.mxu1 %v6877_v43  ;;  %v6910_v39 = vld [vmem:[#allocation4 + $0xde4] ss:$40 sps:$4 sm:$0xff]   ;;  %v6911_v48 = vld [vmem:[#allocation4 + $0x12e0] ss:$40 sps:$4 sm:$0xff]   ;;  %v6916_v49 = vld [vmem:[#allocation4 + $0xd94] ss:$40 sps:$4 sm:$0xff]  }
 0x290   :  { %v4955_v9 = vadd.f32 %v4954_v47, %v4953_v46  ;;  %v5018_v45 = vrot.slane %v5017_v51, 1  ;;  %v4960_v56 = vrot.slane %v4959_v62, 1  ;;  %v5023_v52 = vadd.f32 %v5022_v63, %v5021_v53  ;;  %v7387_v41 = vld [vmem:[#allocation8] sm:$0xff]  ;;  %v6919_v53 = vld [vmem:[#allocation4 + $0x1294] ss:$40 sps:$4 sm:$0xff]  }
 0x291   :  { %4711 = vmatpush1.bf16.msra.mxu0 %v6872_v0  ;;  %v5099_v43 = vrot.slane %v7387_v41, %v7350_v60  ;;  %v6908_v46 = vld [vmem:[#allocation4 + $0xde0] ss:$40 sps:$4 sm:$0xff]  }
 0x292   :  { %4752 = vmatpush1.bf16.msra.mxu1 %v6875_v55  ;;  %v7379_v12 = vmul.f32 0.5, %v4955_v9  ;;  %v5019_v13 = vadd.f32 %v5018_v45, %v5017_v51  ;;  %v4961_v14 = vadd.f32 %v4960_v56, %v4959_v62  ;;  %v5024_v6 = vrot.slane %v5023_v52, 1  ;;  %4712 = vmatprep.subr.bf16.mxu0 %v6880_v4  ;;  %v6914_v51 = vld [vmem:[#allocation4 + $0xd90] ss:$40 sps:$4 sm:$0xff]   ;;  %v6922_v56 = vld [vmem:[#allocation4 + $0xd44] ss:$40 sps:$4 sm:$0xff]  }
 0x293   :  { %4753 = vmatprep.subr.bf16.mxu1 %v6883_v8  ;;  %v5103_v55 = vrot.slane %v7387_v41, %v7353_v54  ;;  %v6917_v62 = vld [vmem:[#allocation4 + $0x1290] ss:$40 sps:$4 sm:$0xff]  }
 0x294   :  { %v5042_v22 = vmul.f32 0.5, %v5019_v13  ;;  %v5050_v61 = vmul.f32 %v7379_v12, %v7379_v12  ;;  %v7383_v5 = vmul.f32 0.5, %v4961_v14  ;;  %v5025_v15 = vadd.f32 %v5024_v6, %v5023_v52  ;;  %v7397_v9 = vld [vmem:[#allocation9] sm:$0xff]  ;;  %v6925_v52 = vld [vmem:[#allocation4 + $0x1244] ss:$40 sps:$4 sm:$0xff]   ;;  %v7401_v13 = vld [vmem:[#allocation11] sm:$0xff] }
 0x295   :  { %4713 = vmatpush1.bf16.msra.mxu0 %v6878_v10  ;;  %v5132_v4 = vsub.f32 %v4911_v31, %v7379_v12  ;;  %v5197_v45 = vrot.slane %v7397_v9, %v7350_v60  ;;  %v5247_v14 = vrot.slane %v7401_v13, %v7350_v60  ;;  %v6920_v12 = vld [vmem:[#allocation4 + $0xd40] ss:$40 sps:$4 sm:$0xff]   ;;  %v5251_v60 = vrot.slane %v7401_v13, %v7353_v54 }
 0x296   :  { %4754 = vmatpush1.bf16.msra.mxu1 %v6881_v11  ;;  %v5058_v40 = vsub.f32 %v5042_v22, %v5050_v61  ;;  %v5051_v21 = vmul.f32 %v7383_v5, %v7383_v5  ;;  %4714 = vmatprep.subr.bf16.mxu0 %v6886_v7  ;;  %v5043_v24 = vmul.f32 0.5, %v5025_v15  ;;  %v5133_v59 = vsub.f32 %v4912_v44, %v7383_v5  ;;  %v6923_v6 = vld [vmem:[#allocation4 + $0x1240] ss:$40 sps:$4 sm:$0xff]   ;;  %v6928_v22 = vld [vmem:[#allocation4 + $0xcf4] ss:$40 sps:$4 sm:$0xff]  }
 0x297   :  { %4755 = vmatprep.subr.bf16.mxu1 %v6889_v33  ;;  %v5201_v7 = vrot.slane %v7397_v9, %v7353_v54  ;;  %v6931_v61 = vld [vmem:[#allocation4 + $0x11f4] ss:$40 sps:$4 sm:$0xff]   ;;  %v6926_v44 = vld [vmem:[#allocation4 + $0xcf0] ss:$40 sps:$4 sm:$0xff]  }
 0x298   :  { %v5066_v18 = vadd.f32 1e-05, %v5058_v40  ;;  %v5059_v28 = vsub.f32 %v5043_v24, %v5051_v21  ;;  %v6929_v5 = vld [vmem:[#allocation4 + $0x11f0] ss:$40 sps:$4 sm:$0xff]   ;;  %v6937_v40 = vld [vmem:[#allocation4 + $0x11a4] ss:$40 sps:$4 sm:$0xff]  }
 0x299   :  { %4715 = vmatpush1.bf16.msra.mxu0 %v6884_v3  ;;  %v6935_v24 = vld [vmem:[#allocation4 + $0x11a0] ss:$40 sps:$4 sm:$0xff]  }
 0x29a   :  { %4756 = vmatpush1.bf16.msra.mxu1 %v6887_v19  ;;  %6946 = vrsqrt.f32 %v5066_v18  ;;  %4716 = vmatprep.subr.bf16.mxu0 %v6892_v37  ;;  %v5067_v42 = vadd.f32 1e-05, %v5059_v28  ;;  %v6934_v19 = vld [vmem:[#allocation4 + $0xca4] ss:$40 sps:$4 sm:$0xff]  }
 0x29b   :  { %4757 = vmatprep.subr.bf16.mxu1 %v6895_v23  ;;  %v6932_v23 = vld [vmem:[#allocation4 + $0xca0] ss:$40 sps:$4 sm:$0xff]  }
 0x29c   :  { %6948 = vrsqrt.f32 %v5067_v42 }
 0x29d   :  { %4717 = vmatpush2.bf16.msra.mxu0 %v6890_v25 }
 0x29e   :  { %4758 = vmatpush2.bf16.msra.mxu1 %v6893_v20  ;;  %4718 = vmatprep.subr.bf16.mxu0 %v6898_v50 }
 0x29f   :  { %4759 = vmatprep.subr.bf16.mxu1 %v6901_v30 }
 0x2a1   :  { %4719 = vmatpush2.bf16.msra.mxu0 %v6896_v32  ;;  %v7419_v32 = vsub.s32 6, %v7203_v57 }
 0x2a2   :  { %4760 = vmatpush2.bf16.msra.mxu1 %v6899_v29  ;;  %4720 = vmatprep.subr.bf16.mxu0 %v6904_v35  ;;  %v7422_v35 = vsub.s32 7, %v7203_v57 }
 0x2a3   :  { %4761 = vmatprep.subr.bf16.mxu1 %v6907_v27 }
 0x2a5   :  { %4721 = vmatpush2.bf16.msra.mxu0 %v6902_v34 }
 0x2a6   :  { %4762 = vmatpush2.bf16.msra.mxu1 %v6905_v38  ;;  %4722 = vmatprep.subr.bf16.mxu0 %v6910_v39 }
 0x2a7   :  { %4763 = vmatprep.subr.bf16.mxu1 %v6913_v58  ;;  %v6947_v0 = vpop.eup %6946 }
 0x2a8   :  { %v5124_v47 = vmul.f32 %v6947_v0, %v5099_v43 }
 0x2a9   :  { %4723 = vmatpush2.bf16.msra.mxu0 %v6908_v46  ;;  %v6949_v63 = vpop.eup %6948 }
 0x2aa   :  { %4764 = vmatpush2.bf16.msra.mxu1 %v6911_v48  ;;  %v5155_v8 = vrot.slane %v5124_v47, %v7206_v1  ;;  %4724 = vmatprep.subr.bf16.mxu0 %v6916_v49  ;;  %v5125_v10 = vmul.f32 %v6949_v63, %v5103_v55 }
 0x2ab   :  { %4765 = vmatprep.subr.bf16.mxu1 %v6919_v53 }
 0x2ac   :  { %v5172_v11 = vmul.f32 %v5155_v8, %v5132_v4  ;;  %v5159_v31 = vrot.slane %v5125_v10, %v7206_v1 }
 0x2ad   :  { %4725 = vmatpush2.bf16.msra.mxu0 %v6914_v51 }
 0x2ae   :  { %4766 = vmatpush2.bf16.msra.mxu1 %v6917_v62  ;;  %v5222_v33 = vadd.f32 %v5197_v45, %v5172_v11  ;;  %4726 = vmatprep.subr.bf16.mxu0 %v6922_v56  ;;  %v5173_v15 = vmul.f32 %v5159_v31, %v5133_v59 }
 0x2af   :  { %4767 = vmatprep.subr.bf16.mxu1 %v6925_v52 }
 0x2b0   :  { %v5272_v36 = vmul.f32 %v5247_v14, %v5222_v33  ;;  %v5223_v3 = vadd.f32 %v5201_v7, %v5173_v15 }
 0x2b1   :  { %4727 = vmatpush2.bf16.msra.mxu0 %v6920_v12 }
 0x2b2   :  { %4768 = vmatpush2.bf16.msra.mxu1 %v6923_v6  ;;  %4728 = vmatprep.subr.bf16.mxu0 %v6928_v22  ;;  %v5279_v21 = vadd.f32 %v7339_v26, %v5272_v36  ;;  %v5273_v37 = vmul.f32 %v5251_v60, %v5223_v3 }
 0x2b3   :  { %4769 = vmatprep.subr.bf16.mxu1 %v6931_v61 }
 0x2b4   :  { %v7414_v18 = vadd.f32 %v5279_v21, %v5273_v37 }
 0x2b5   :  { %4729 = vmatpush2.bf16.msra.mxu0 %v6926_v44 }
 0x2b6   :  { %4770 = vmatpush2.bf16.msra.mxu1 %v6929_v5  ;;  %4730 = vmatprep.subr.bf16.mxu0 %v6934_v19 }
 0x2b7   :  { %4771 = vmatprep.subr.bf16.mxu1 %v6937_v40 }
 0x2b9   :  { %4731 = vmatpush2.bf16.msra.mxu0 %v6932_v23 }
 0x2ba   :  { %4772 = vmatpush2.bf16.msra.mxu1 %v6935_v24 }
 0x2bc   :  { %v4488_v54 = vpop.f32.mrf.mxu0  ;;  %4733 = vmatmul.mubr.bf16.vlgmr.msra.gmra.mxu0 %v7181_v16  ;;  %v6962_v16 = vld [vmem:[#allocation6] sm:$0xff] }
 0x2bd   :  { %v4529_v28 = vpop.f32.mrf.mxu1  ;;  %4774 = vmatmul.mubr.bf16.vlgmr.msra.gmra.mxu1 %v7185_v17  ;;  %v4874_v17 = vrot.slane %v6962_v16, %v7419_v32  ;;  %v4878_v49 = vrot.slane %v6962_v16, %v7422_v35  ;;  %v5111_v16 = vrot.slane %v7387_v41, %v7422_v35 }
 0x2be   :  { %v4490_v25 = vpop.f32.mrf.mxu0  ;;  %v4530_v29 = vadd.f32 %v4529_v28, %v4488_v54 }
 0x2bf   :  { %v4531_v20 = vpop.f32.mrf.mxu1 }
 0x2c0   :  { %v4492_v26 = vpop.f32.mrf.mxu0  ;;  %v4532_v38 = vadd.f32 %v4531_v20, %v4490_v25 }
 0x2c1   :  { %v4533_v50 = vpop.f32.mrf.mxu1 }
 0x2c2   :  { %v4493_v30 = vpop.f32.mrf.mxu0 }
 0x2c3   :  { %v4534_v42 = vpop.f32.mrf.mxu1 }
 0x2fc   :  { %v4570_v27 = vpop.f32.mrf.mxu0 }
 0x2fd   :  { %v4611_v34 = vpop.f32.mrf.mxu1  ;;  %v4571_v39 = vadd.f32 %v4570_v27, %v4530_v29 }
 0x2fe   :  { %v4572_v58 = vpop.f32.mrf.mxu0 }
 0x2ff   :  { %v4613_v43 = vpop.f32.mrf.mxu1  ;;  %v4612_v46 = vadd.f32 %v4611_v34, %v4571_v39  ;;  %v4573_v48 = vadd.f32 %v4572_v58, %v4532_v38  ;;  %v5107_v38 = vrot.slane %v7387_v41, %v7419_v32 }
 0x300   :  { %v4574_v53 = vpop.f32.mrf.mxu0 }
 0x301   :  { %v4615_v0 = vpop.f32.mrf.mxu1  ;;  %v4903_v55 = vadd.f32 %v4874_v17, %v4612_v46  ;;  %v4614_v47 = vadd.f32 %v4613_v43, %v4573_v48  ;;  %v5205_v48 = vrot.slane %v7397_v9, %v7419_v32 }
 0x302   :  { %v4575_v51 = vpop.f32.mrf.mxu0  ;;  %v5255_v0 = vrot.slane %v7401_v13, %v7419_v32 }
 0x303   :  { %v4616_v62 = vpop.f32.mrf.mxu1  ;;  %v4913_v63 = vmax.f32 %v4903_v55, 0.0  ;;  %v4904_v4 = vadd.f32 %v4878_v49, %v4614_v47  ;;  %v5209_v51 = vrot.slane %v7397_v9, %v7422_v35 }
 0x305   :  { %v4924_v8 = vsel %vm4917_vm0, %v4913_v63, 0.0  ;;  %v4914_v45 = vmax.f32 %v4904_v4, 0.0 }
 0x306   :  { %v4962_v56 = vrot.slane %v4924_v8, 4  ;;  %v4988_v52 = vmul.f32 %v4924_v8, %v4924_v8 }
 0x307   :  { %v4925_v10 = vsel %vm4917_vm0, %v4914_v45, 0.0 }
 0x308   :  { %v4963_v11 = vadd.f32 %v4962_v56, %v4924_v8  ;;  %v5026_v14 = vrot.slane %v4988_v52, 4  ;;  %v4968_v59 = vrot.slane %v4925_v10, 4  ;;  %v4989_v31 = vmul.f32 %v4925_v10, %v4925_v10 }
 0x30a   :  { %v4964_v12 = vrot.slane %v4963_v11, 2  ;;  %v5027_v6 = vadd.f32 %v5026_v14, %v4988_v52  ;;  %v4969_v7 = vadd.f32 %v4968_v59, %v4925_v10  ;;  %v5032_v33 = vrot.slane %v4989_v31, 4 }
 0x30c   :  { %v4965_v22 = vadd.f32 %v4964_v12, %v4963_v11  ;;  %v5028_v61 = vrot.slane %v5027_v6, 2  ;;  %v4970_v15 = vrot.slane %v4969_v7, 2  ;;  %v5033_v60 = vadd.f32 %v5032_v33, %v4989_v31 }
 0x30e   :  { %v4966_v36 = vrot.slane %v4965_v22, 1  ;;  %v5029_v44 = vadd.f32 %v5028_v61, %v5027_v6  ;;  %v4971_v5 = vadd.f32 %v4970_v15, %v4969_v7  ;;  %v5034_v3 = vrot.slane %v5033_v60, 2  ;;  %v4844_v7 = vld [vmem:[#allocation6 + $0x8] sm:$0x3] }
 0x30f   :  { %v4882_v61 = vrot.slane %v4844_v7, %v7206_v1 }
 0x310   :  { %v4967_v19 = vadd.f32 %v4966_v36, %v4965_v22  ;;  %v5030_v40 = vrot.slane %v5029_v44, 1  ;;  %v4972_v57 = vrot.slane %v4971_v5, 1  ;;  %v5035_v21 = vadd.f32 %v5034_v3, %v5033_v60 }
 0x312   :  { %v4980_v37 = vmul.f32 0.5, %v4967_v19  ;;  %v5031_v23 = vadd.f32 %v5030_v40, %v5029_v44  ;;  %v4973_v24 = vadd.f32 %v4972_v57, %v4971_v5  ;;  %v5036_v54 = vrot.slane %v5035_v21, 1 }
 0x313   :  { %v4886_v44 = vrot.slane %v4844_v7, %v7209_v2 }
 0x314   :  { %v5044_v28 = vmul.f32 0.5, %v5031_v23  ;;  %v5052_v25 = vmul.f32 %v4980_v37, %v4980_v37  ;;  %v4981_v20 = vmul.f32 0.5, %v4973_v24  ;;  %v5037_v26 = vadd.f32 %v5036_v54, %v5035_v21 }
 0x315   :  { %v5134_v43 = vsub.f32 %v4913_v63, %v4980_v37  ;;  %v5259_v63 = vrot.slane %v7401_v13, %v7422_v35 }
 0x316   :  { %v5060_v50 = vsub.f32 %v5044_v28, %v5052_v25  ;;  %v5053_v30 = vmul.f32 %v4981_v20, %v4981_v20  ;;  %v5045_v42 = vmul.f32 0.5, %v5037_v26  ;;  %v5135_v55 = vsub.f32 %v4914_v45, %v4981_v20 }
 0x318   :  { %v5068_v29 = vadd.f32 1e-05, %v5060_v50  ;;  %v5061_v27 = vsub.f32 %v5045_v42, %v5053_v30 }
 0x31a   :  { %6950 = vrsqrt.f32 %v5068_v29  ;;  %v5069_v34 = vadd.f32 1e-05, %v5061_v27 }
 0x31c   :  { %6952 = vrsqrt.f32 %v5069_v34 }
 0x327   :  { %v6951_v39 = vpop.eup %6950 }
 0x328   :  { %v5126_v17 = vmul.f32 %v6951_v39, %v5107_v38 }
 0x329   :  { %v6953_v58 = vpop.eup %6952 }
 0x32a   :  { %v5163_v46 = vrot.slane %v5126_v17, %v7206_v1  ;;  %v5127_v49 = vmul.f32 %v6953_v58, %v5111_v16 }
 0x32c   :  { %v5174_v53 = vmul.f32 %v5163_v46, %v5134_v43  ;;  %v5167_v47 = vrot.slane %v5127_v49, %v7206_v1  ;;  %v5286_v1 = vstv %s7465_s6 }
 0x32e   :  { %v5224_v41 = vadd.f32 %v5205_v48, %v5174_v53  ;;  %v5175_v62 = vmul.f32 %v5167_v47, %v5135_v55 }
 0x330   :  { %v5274_v4 = vmul.f32 %v5255_v0, %v5224_v41  ;;  %v5225_v8 = vadd.f32 %v5209_v51, %v5175_v62 }
 0x332   :  { %v5281_v56 = vadd.f32 %v7414_v18, %v5274_v4  ;;  %v5275_v52 = vmul.f32 %v5259_v63, %v5225_v8 }
 0x334   :  { %v5282_v10 = vadd.f32 %v5281_v56, %v5275_v52 }
 0x336   :  { %5283 = vadd.xlane.f32.xlu0 %v5282_v10 }
 0x33c   :  { %v4652_v11 = vpop.f32.mrf.mxu0 }
 0x33d   :  { %v4693_v32 = vpop.f32.mrf.mxu1 }
 0x33e   :  { %v4654_v45 = vpop.f32.mrf.mxu0  ;;  %v4694_v6 = vadd.f32 %v4693_v32, %v4652_v11 }
 0x33f   :  { %v4695_v14 = vpop.f32.mrf.mxu1 }
 0x340   :  { %v4656_v59 = vpop.f32.mrf.mxu0  ;;  %v4696_v33 = vadd.f32 %v4695_v14, %v4654_v45 }
 0x341   :  { %v4697_v31 = vpop.f32.mrf.mxu1 }
 0x342   :  { %v4657_v12 = vpop.f32.mrf.mxu0 }
 0x343   :  { %v4698_v9 = vpop.f32.mrf.mxu1 }
 0x37c   :  { %v4734_v22 = vpop.f32.mrf.mxu0 }
 0x37d   :  { %v4775_v13 = vpop.f32.mrf.mxu1  ;;  %v4735_v35 = vadd.f32 %v4734_v22, %v4694_v6 }
 0x37e   :  { %v4736_v18 = vpop.f32.mrf.mxu0 }
 0x37f   :  { %v4777_v15 = vpop.f32.mrf.mxu1  ;;  %v4737_v60 = vadd.f32 %v4736_v18, %v4696_v33  ;;  %v4776_v36 = vadd.f32 %v4775_v13, %v4735_v35 }
 0x380   :  { %v4738_v5 = vpop.f32.mrf.mxu0 }
 0x381   :  { %v4779_v3 = vpop.f32.mrf.mxu1  ;;  %v4905_v19 = vadd.f32 %v4882_v61, %v4776_v36  ;;  %v4778_v40 = vadd.f32 %v4777_v15, %v4737_v60 }
 0x382   :  { %v4739_v57 = vpop.f32.mrf.mxu0 }
 0x383   :  { %v4780_v21 = vpop.f32.mrf.mxu1  ;;  %5297 = vst [vmem:[%s7466_s7] sm:$0xff] %v4905_v19  ;;  %v4906_v37 = vadd.f32 %v4886_v44, %v4778_v40 }
 0x385   :  { %5298 = vst [vmem:[%s7468_s9] sm:$0xff] %v4906_v37 }
 0x3bf   :  { %v5284_v2 = vpop.xlane.xlu0 %5283 }
 0x3c0   :  { %v5287_v23 = vadd.f32 %v5286_v1, %v5284_v2 }
 0x3c2   :  { %v5288_v24 = vand.u32 2147483647, %v5287_v23  ;;  %vm5294_vm1 = vcmp.ge.f32.partialorder %v5287_v23, 0.0 }
 0x3c4   :  { %v5289_v54 = vsub.f32 0.0, %v5288_v24 }
 0x3c6   :  { %v5290_v28 = vmul.f32 1.442695, %v5289_v54 }
 0x3c8   :  { %6954 = vpow2.f32 %v5290_v28 }
 0x3d5   :  { %v6955_v25 = vpop.eup %6954 }
 0x3d6   :  { %v5292_v20 = vadd.f32 1.0, %v6955_v25 }
 0x3d8   :  { %6956 = vrcp.f32 %v5292_v20 }
 0x3e5   :  { %v6957_v26 = vpop.eup %6956 }
 0x3e6   :  { %v5295_v50 = vmul.f32 %v6957_v26, %v6955_v25 }
 0x3e8   :  { %v5296_v30 = vsel %vm5294_vm1, %v6957_v26, %v5295_v50 }
 0x3e9   :  { %5299 = vst [vmem:[%s7467_s8] sm:$0xff] %v5296_v30 }
 0x3ea   :  { %5312 = vsyncpa [#allocation5], 1 }
 0x3eb   :  { %5313 = vsyncpa [#allocation7], 1 }
 0x3ec   :  { %5314 = vsyncpa [#allocation10], 1 }

</bundles_post_ra>
